<compile_context>
chip_gen: v7x
topology: tpu7x:2x2x1
jax: 0.10.0
libtpu: 0.0.40
codegen_flags: <defaults>
</compile_context>

<pallas_src>
import jax
import jax.numpy as jnp
from jax import lax
from jax.experimental import pallas as pl
from jax.experimental.pallas import tpu as pltpu

# ----------------------------- model sizes -----------------------------
B = 2                 # batch
INPUT_DIM = 32        # recommender embedding dim
HIDDEN = 128          # llama hidden size
NUM_HEADS = 4
HEAD_DIM = HIDDEN // NUM_HEADS
INTER = 256           # SwiGLU intermediate
N_LAYERS = 2
OUTPUT_DIM = 16       # number of classes for the score head
NUM_USERS = 10
NUM_ITEMS = 20
VOCAB = 32            # tiny "tokenizer" vocab for instruct/response tokens
REC_SEQ = 8           # inputs: [user_id, 7 item_ids]
INSTRUCT_IDS = (1, 2, 3, 4)
RESPONSE_IDS = (5, 6, 7, 8)
N_INSTRUCT = len(INSTRUCT_IDS)
N_RESPONSE = len(RESPONSE_IDS)
SEQ_LEN = N_INSTRUCT + REC_SEQ + N_RESPONSE      # 16
BL = B * SEQ_LEN                                 # 32 folded rows per grid step
SCORE_PAD = 128       # lane-dense padded width of the score head output


# ----------------------------- fused Pallas kernel -----------------------------
def _rms_norm(v, gamma, eps=1e-6):
    var = jnp.mean(v * v, axis=-1, keepdims=True)
    return v * lax.rsqrt(var + eps) * gamma


def _llm4rec_kernel(rec_ref, bias_ref, tmpl_ref, projw_ref,
                    wq_ref, wqr_ref, wk_ref, wkr_ref, wv_ref, wo_ref,
                    wgu_ref, wdown_ref, norms_ref, fnorm_ref,
                    cos_ref, sin_ref, score_ref, out_ref):
    """Single grid step = whole (folded) batch; entire forward stays in VMEM."""
    f32, bf16 = jnp.float32, jnp.bfloat16
    M, H, NH, DH = BL, HIDDEN, NUM_HEADS, HEAD_DIM

    # ---- sequence assembly: template (tokens + proj biases) + fused projection ----
    # rec_ref rows are zero outside the rec positions, so one matmul covers both
    # the user and item projections (weights stacked along K in the wrapper).
    x = tmpl_ref[...] + jnp.dot(rec_ref[...], projw_ref[...],
                                preferred_element_type=f32)          # [M, H] f32

    # Hoisted broadcasts (JAX does not CSE broadcast_in_dim inside loops).
    bias3 = jnp.broadcast_to(bias_ref[...][None], (NH, M, M))        # additive, finite -1e9
    cos3 = jnp.broadcast_to(cos_ref[...][None], (NH, M, DH))
    sin3 = jnp.broadcast_to(sin_ref[...][None], (NH, M, DH))

    # ---- decoder layers (statically unrolled; weights resident in VMEM) ----
    for li in range(N_LAYERS):
        ln = norms_ref[li]                                           # [2, H]

        # --- attention: head-major batched matmuls, RoPE via pre-rotated weights ---
        h1 = _rms_norm(x, ln[0:1, :]).astype(bf16)                   # [M, H]
        h1b = jnp.broadcast_to(h1[None], (NH, M, H))                 # [NH, M, H]

        def hmm(w_ref):   # [NH,M,H] x [NH,H,DH] -> [NH,M,DH], f32 accumulate
            return jnp.einsum('hme,hed->hmd', h1b, w_ref[li],
                              preferred_element_type=f32)

        # RoPE: q_rot = q*cos + rotate_half(q)*sin; rotate_half (and the
        # 1/sqrt(DH) scale for Q) are folded into wqr/wkr (wq) in the wrapper.
        q = hmm(wq_ref) * cos3 + hmm(wqr_ref) * sin3                 # [NH, M, DH]
        k = hmm(wk_ref) * cos3 + hmm(wkr_ref) * sin3
        v = hmm(wv_ref)

        s = jnp.einsum('hqd,hkd->hqk', q.astype(bf16), k.astype(bf16),
                       preferred_element_type=f32) + bias3           # [NH, M, M]
        m = jnp.max(s, axis=-1, keepdims=True)
        p = jnp.exp(s - m)
        # finite -1e9 bias => denominator >= 1 even for fully-masked rows.
        p = p * pl.reciprocal(jnp.sum(p, axis=-1, keepdims=True), approx=True)
        ctx = jnp.einsum('hqk,hkd->hqd', p.astype(bf16), v.astype(bf16),
                         preferred_element_type=f32)                 # [NH, M, DH]
        attn = jnp.einsum('hqd,hde->hqe', ctx.astype(bf16), wo_ref[li],
                          preferred_element_type=f32)                # [NH, M, H]
        x = x + jnp.sum(attn, axis=0)                                # per-head W_O summed

        # --- SwiGLU MLP (fused gate+up; 256-lane tile-aligned slices) ---
        h2 = _rms_norm(x, ln[1:2, :]).astype(bf16)
        gu = jnp.dot(h2, wgu_ref[li], preferred_element_type=f32)    # [M, 2*INTER]
        act = jax.nn.silu(gu[:, :INTER]) * gu[:, INTER:]
        x = x + jnp.dot(act.astype(bf16), wdown_ref[li],
                        preferred_element_type=f32)

    # ---- final norm + lane-dense score head over ALL rows (wrapper picks last tokens) ----
    xf = _rms_norm(x, fnorm_ref[...]).astype(bf16)
    out_ref[...] = jnp.dot(xf, score_ref[...], preferred_element_type=f32)


# ----------------------------- plain-JAX glue -----------------------------
def rope_cos_sin(L, dh, base=10000.0):
    inv_freq = 1.0 / (base ** (jnp.arange(0, dh, 2, dtype=jnp.float32) / dh))
    t = jnp.arange(L, dtype=jnp.float32)
    freqs = jnp.outer(t, inv_freq)                       # [L, dh/2]
    emb = jnp.concatenate([freqs, freqs], axis=-1)       # [L, dh]
    return jnp.cos(emb), jnp.sin(emb)


def _rotate_half_cols(w):
    """rotate_half applied to the output (head-dim) columns of a weight."""
    h = HEAD_DIM // 2
    return jnp.concatenate([-w[..., h:], w[..., :h]], axis=-1)


def _const_spec(shape):
    zeros = (0,) * len(shape)
    return pl.BlockSpec(shape, lambda i: zeros)


def init_params(key):
    def nrm(k, shape, scale=0.02):
        return scale * jax.random.normal(k, shape, dtype=jnp.float32)

    keys = jax.random.split(key, 14)
    return {
        "user_embeds": nrm(keys[0], (NUM_USERS, INPUT_DIM), 1.0),
        "input_embeds": nrm(keys[1], (NUM_ITEMS, INPUT_DIM), 1.0),
        "token_embeds": nrm(keys[2], (VOCAB, HIDDEN), 0.02),
        # proj_w[0]/proj_b[0] = user projection, proj_w[1]/proj_b[1] = item projection
        "proj_w": nrm(keys[3], (2, INPUT_DIM, HIDDEN)),
        "proj_b": nrm(keys[4], (2, 1, HIDDEN)),
        "wq": nrm(keys[5], (N_LAYERS, HIDDEN, HIDDEN)),
        "wk": nrm(keys[6], (N_LAYERS, HIDDEN, HIDDEN)),
        "wv": nrm(keys[7], (N_LAYERS, HIDDEN, HIDDEN)),
        "wo": nrm(keys[8], (N_LAYERS, HIDDEN, HIDDEN)),
        "wgu": nrm(keys[9], (N_LAYERS, HIDDEN, 2 * INTER)),
        "wdown": nrm(keys[10], (N_LAYERS, INTER, HIDDEN)),
        "norms": jnp.ones((N_LAYERS, 2, HIDDEN), jnp.float32),  # [:,0]=attn,[:,1]=mlp
        "final_norm": jnp.ones((1, HIDDEN), jnp.float32),
        "score_w": nrm(keys[11], (HIDDEN, OUTPUT_DIM)),          # score: no bias
    }


@jax.jit
def llm4rec_forward(params, inputs, inputs_mask, labels):
    """Mirrors LLM4Rec.forward for task_type == 'general'."""
    f32, bf16 = jnp.float32, jnp.bfloat16

    # ---- frozen embedding lookups (plain JAX gathers) ----
    user_vec = params["user_embeds"][inputs[:, 0]]                  # [B, IN]
    item_vec = params["input_embeds"][inputs[:, 1:]]                # [B, 7, IN]

    # ---- fused user/item projection input: [BL, 2*IN] bf16, zero outside rec rows ----
    rec_full = jnp.zeros((B, SEQ_LEN, 2 * INPUT_DIM), f32)
    rec_full = rec_full.at[:, N_INSTRUCT, :INPUT_DIM].set(user_vec)
    rec_full = rec_full.at[:, N_INSTRUCT + 1:N_INSTRUCT + REC_SEQ, INPUT_DIM:].set(item_vec)
    rec_full = rec_full.reshape(BL, 2 * INPUT_DIM).astype(bf16)

    # stacked projection weights: rows 0:IN = user W, rows IN:2*IN = item W
    proj_w = params["proj_w"].reshape(2 * INPUT_DIM, HIDDEN).astype(bf16)

    # ---- [BL, H] template: instruct/response token embeddings + proj biases in rec rows ----
    tok_ids = jnp.array(INSTRUCT_IDS + RESPONSE_IDS, jnp.int32)
    tok_e = params["token_embeds"][tok_ids]                         # [8, H]
    tmpl = jnp.zeros((SEQ_LEN, HIDDEN), f32)
    tmpl = tmpl.at[0:N_INSTRUCT].set(tok_e[:N_INSTRUCT])
    tmpl = tmpl.at[N_INSTRUCT + REC_SEQ:].set(tok_e[N_INSTRUCT:])
    tmpl = tmpl.at[N_INSTRUCT].set(params["proj_b"][0, 0])          # user bias
    tmpl = tmpl.at[N_INSTRUCT + 1:N_INSTRUCT + REC_SEQ].set(
        jnp.broadcast_to(params["proj_b"][1, 0], (REC_SEQ - 1, HIDDEN)))
    tmpl = jnp.tile(tmpl, (B, 1))                                   # [BL, H]

    # ---- precomputed block-diagonal causal + key-padding additive bias [BL, BL] ----
    attn_mask = jnp.concatenate(
        [jnp.ones((B, N_INSTRUCT), f32), inputs_mask.astype(f32),
         jnp.ones((B, N_RESPONSE), f32)], axis=1)                   # [B, L]
    assert attn_mask.shape == (B, SEQ_LEN)
    idx = jnp.arange(BL)
    same_batch = (idx[:, None] // SEQ_LEN) == (idx[None, :] // SEQ_LEN)
    causal = (idx[:, None] % SEQ_LEN) >= (idx[None, :] % SEQ_LEN)
    key_ok = attn_mask.reshape(-1)[None, :] > 0.5
    bias = jnp.where(same_batch & causal & key_ok, 0.0, -1e9).astype(f32)

    # ---- RoPE tables per head-dim lane, tiled over the folded batch ----
    cos_l, sin_l = rope_cos_sin(SEQ_LEN, HEAD_DIM)                  # [L, DH]
    cos_md = jnp.tile(cos_l, (B, 1))
    sin_md = jnp.tile(sin_l, (B, 1))

    # ---- head-major decoder weights; rotate_half + 1/sqrt(DH) folded into Q/K copies ----
    scale = 1.0 / (HEAD_DIM ** 0.5)

    def head_major(w):   # [NL, H, H] -> [NL, NH, H, DH]
        return w.reshape(N_LAYERS, HIDDEN, NUM_HEADS, HEAD_DIM).transpose(0, 2, 1, 3)

    wq_hm = head_major(params["wq"] * scale)
    wk_hm = head_major(params["wk"])
    wq_rot = _rotate_half_cols(wq_hm)
    wk_rot = _rotate_half_cols(wk_hm)
    wv_hm = head_major(params["wv"])
    wo_hm = params["wo"].reshape(N_LAYERS, NUM_HEADS, HEAD_DIM, HIDDEN)

    # lane-dense padded score head (logits computed in bf16, f32 accumulate)
    score_pad = jnp.zeros((HIDDEN, SCORE_PAD), f32).at[:, :OUTPUT_DIM].set(
        params["score_w"]).astype(bf16)

    args = (rec_full, bias, tmpl, proj_w,
            wq_hm.astype(bf16), wq_rot.astype(bf16),
            wk_hm.astype(bf16), wk_rot.astype(bf16),
            wv_hm.astype(bf16), wo_hm.astype(bf16),
            params["wgu"].astype(bf16), params["wdown"].astype(bf16),
            params["norms"], params["final_norm"], cos_md, sin_md, score_pad)

    logits_all = pl.pallas_call(
        _llm4rec_kernel,
        out_shape=jax.ShapeDtypeStruct((BL, SCORE_PAD), f32),
        grid=(1,),                      # whole batch folded into one fat step
        in_specs=[_const_spec(a.shape) for a in args],
        out_specs=_const_spec((BL, SCORE_PAD)),
        compiler_params=pltpu.CompilerParams(
            # On v7x, split the fold in half (grid=(2,)) to keep both TCs busy.
            dimension_semantics=("parallel",)),
    )(*args)

    # last token of each sequence, first OUTPUT_DIM classes
    pooled_logits = logits_all.reshape(B, SEQ_LEN, SCORE_PAD)[:, -1, :OUTPUT_DIM]

    loss = None
    if labels is not None:
        logp = jax.nn.log_softmax(pooled_logits, axis=-1)
        loss = -jnp.mean(jnp.take_along_axis(logp, labels.reshape(-1, 1), axis=1))
    return loss, pooled_logits


# ----------------------------- driver -----------------------------
if __name__ == "__main__":
    key = jax.random.PRNGKey(0)
    pkey, ikey, mkey = jax.random.split(key, 3)
    params = init_params(pkey)

    # inputs: [user_id, 7 item_ids] per batch row
    user_ids = jax.random.randint(ikey, (B, 1), 0, NUM_USERS)
    item_ids = jax.random.randint(jax.random.fold_in(ikey, 1), (B, REC_SEQ - 1), 0, NUM_ITEMS)
    inputs = jnp.concatenate([user_ids, item_ids], axis=1).astype(jnp.int32)   # [2, 8]

    inputs_mask = jnp.ones((B, REC_SEQ), jnp.float32)
    inputs_mask = inputs_mask.at[1, -1].set(0.0)   # exercise the padding mask
    labels = jnp.array([3, 7], jnp.int32)

    loss, logits = llm4rec_forward(params, inputs, inputs_mask, labels)
    jax.block_until_ready((loss, logits))
    assert logits.shape == (B, OUTPUT_DIM)
    assert jnp.isfinite(loss)
    # TODO(synk): pretrained LLaMA-7B weights / tokenizer / LoRA + int8 prep have
    # no in-script equivalent; a tiny deterministic LLaMA-style decoder stands in.
    print("KERNEL_OK")
</pallas_src>

<mosaic_0001>
module attributes {stable_mosaic.version = 11 : i64} {
  func.func @_llm4rec_kernel(%arg0: i32, %arg1: memref<32x64xbf16, #tpu.memory_space<vmem>>, %arg2: memref<32x32xf32, #tpu.memory_space<vmem>>, %arg3: memref<32x128xf32, #tpu.memory_space<vmem>>, %arg4: memref<64x128xbf16, #tpu.memory_space<vmem>>, %arg5: memref<2x4x128x32xbf16, #tpu.memory_space<vmem>>, %arg6: memref<2x4x128x32xbf16, #tpu.memory_space<vmem>>, %arg7: memref<2x4x128x32xbf16, #tpu.memory_space<vmem>>, %arg8: memref<2x4x128x32xbf16, #tpu.memory_space<vmem>>, %arg9: memref<2x4x128x32xbf16, #tpu.memory_space<vmem>>, %arg10: memref<2x4x32x128xbf16, #tpu.memory_space<vmem>>, %arg11: memref<2x128x512xbf16, #tpu.memory_space<vmem>>, %arg12: memref<2x256x128xbf16, #tpu.memory_space<vmem>>, %arg13: memref<2x2x128xf32, #tpu.memory_space<vmem>>, %arg14: memref<1x128xf32, #tpu.memory_space<vmem>>, %arg15: memref<32x32xf32, #tpu.memory_space<vmem>>, %arg16: memref<32x32xf32, #tpu.memory_space<vmem>>, %arg17: memref<128x128xbf16, #tpu.memory_space<vmem>>, %arg18: memref<32x128xf32, #tpu.memory_space<vmem>>) attributes {dimension_semantics = [#tpu.dimension_semantics<parallel>], iteration_bounds = array<i64: 1>, scalar_prefetch = 0 : i64, scratch_operands = 0 : i64, tpu.core_type = #tpu.core_type<tc>, window_params = [{pipeline_mode = #tpu.pipeline_mode<synchronous>, transform_indices = @transform_0, window_bounds = array<i64: 32, 64>}, {pipeline_mode = #tpu.pipeline_mode<synchronous>, transform_indices = @transform_1, window_bounds = array<i64: 32, 32>}, {pipeline_mode = #tpu.pipeline_mode<synchronous>, transform_indices = @transform_2, window_bounds = array<i64: 32, 128>}, {pipeline_mode = #tpu.pipeline_mode<synchronous>, transform_indices = @transform_3, window_bounds = array<i64: 64, 128>}, {pipeline_mode = #tpu.pipeline_mode<synchronous>, transform_indices = @transform_4, window_bounds = array<i64: 2, 4, 128, 32>}, {pipeline_mode = #tpu.pipeline_mode<synchronous>, transform_indices = @transform_5, window_bounds = array<i64: 2, 4, 128, 32>}, {pipeline_mode = #tpu.pipeline_mode<synchronous>, transform_indices = @transform_6, window_bounds = array<i64: 2, 4, 128, 32>}, {pipeline_mode = #tpu.pipeline_mode<synchronous>, transform_indices = @transform_7, window_bounds = array<i64: 2, 4, 128, 32>}, {pipeline_mode = #tpu.pipeline_mode<synchronous>, transform_indices = @transform_8, window_bounds = array<i64: 2, 4, 128, 32>}, {pipeline_mode = #tpu.pipeline_mode<synchronous>, transform_indices = @transform_9, window_bounds = array<i64: 2, 4, 32, 128>}, {pipeline_mode = #tpu.pipeline_mode<synchronous>, transform_indices = @transform_10, window_bounds = array<i64: 2, 128, 512>}, {pipeline_mode = #tpu.pipeline_mode<synchronous>, transform_indices = @transform_11, window_bounds = array<i64: 2, 256, 128>}, {pipeline_mode = #tpu.pipeline_mode<synchronous>, transform_indices = @transform_12, window_bounds = array<i64: 2, 2, 128>}, {pipeline_mode = #tpu.pipeline_mode<synchronous>, transform_indices = @transform_13, window_bounds = array<i64: 1, 128>}, {pipeline_mode = #tpu.pipeline_mode<synchronous>, transform_indices = @transform_14, window_bounds = array<i64: 32, 32>}, {pipeline_mode = #tpu.pipeline_mode<synchronous>, transform_indices = @transform_15, window_bounds = array<i64: 32, 32>}, {pipeline_mode = #tpu.pipeline_mode<synchronous>, transform_indices = @transform_16, window_bounds = array<i64: 128, 128>}, {pipeline_mode = #tpu.pipeline_mode<synchronous>, transform_indices = @transform_17, window_bounds = array<i64: 32, 128>}]} {
    %c0 = arith.constant 0 : index
    %c0_0 = arith.constant 0 : index
    %0 = vector.load %arg3[%c0, %c0_0] : memref<32x128xf32, #tpu.memory_space<vmem>>, vector<32x128xf32>
    %c0_1 = arith.constant 0 : index
    %c0_2 = arith.constant 0 : index
    %1 = vector.load %arg1[%c0_1, %c0_2] : memref<32x64xbf16, #tpu.memory_space<vmem>>, vector<32x64xbf16>
    %c0_3 = arith.constant 0 : index
    %c0_4 = arith.constant 0 : index
    %2 = vector.load %arg4[%c0_3, %c0_4] : memref<64x128xbf16, #tpu.memory_space<vmem>>, vector<64x128xbf16>
    %cst = arith.constant dense<0.000000e+00> : vector<32x128xf32>
    %3 = tpu.matmul %1, %2, %cst {dimension_numbers = #tpu.dot_dimension_numbers<[1], [0], [0], [1], [0, 0, 1, 1], [], []>} : vector<32x64xbf16>, vector<64x128xbf16>, vector<32x128xf32> -> vector<32x128xf32>
    %4 = arith.addf %0, %3 : vector<32x128xf32>
    %c0_5 = arith.constant 0 : index
    %c0_6 = arith.constant 0 : index
    %5 = vector.load %arg2[%c0_5, %c0_6] : memref<32x32xf32, #tpu.memory_space<vmem>>, vector<32x32xf32>
    %6 = vector.shape_cast %5 : vector<32x32xf32> to vector<1x32x32xf32>
    %7 = vector.shape_cast %6 : vector<1x32x32xf32> to vector<1x32x32xf32>
    %8 = vector.broadcast %7 : vector<1x32x32xf32> to vector<4x32x32xf32>
    %c0_7 = arith.constant 0 : index
    %c0_8 = arith.constant 0 : index
    %9 = vector.load %arg15[%c0_7, %c0_8] : memref<32x32xf32, #tpu.memory_space<vmem>>, vector<32x32xf32>
    %10 = vector.shape_cast %9 : vector<32x32xf32> to vector<1x32x32xf32>
    %11 = vector.shape_cast %10 : vector<1x32x32xf32> to vector<1x32x32xf32>
    %12 = vector.broadcast %11 : vector<1x32x32xf32> to vector<4x32x32xf32>
    %c0_9 = arith.constant 0 : index
    %c0_10 = arith.constant 0 : index
    %13 = vector.load %arg16[%c0_9, %c0_10] : memref<32x32xf32, #tpu.memory_space<vmem>>, vector<32x32xf32>
    %14 = vector.shape_cast %13 : vector<32x32xf32> to vector<1x32x32xf32>
    %15 = vector.shape_cast %14 : vector<1x32x32xf32> to vector<1x32x32xf32>
    %16 = vector.broadcast %15 : vector<1x32x32xf32> to vector<4x32x32xf32>
    %c0_11 = arith.constant 0 : index
    %c0_12 = arith.constant 0 : index
    %c0_13 = arith.constant 0 : index
    %17 = vector.load %arg13[%c0_11, %c0_12, %c0_13] : memref<2x2x128xf32, #tpu.memory_space<vmem>>, vector<1x2x128xf32>
    %18 = vector.shape_cast %17 : vector<1x2x128xf32> to vector<2x128xf32>
    %19 = vector.extract_strided_slice %18 {offsets = [0, 0], sizes = [1, 128], strides = [1, 1]} : vector<2x128xf32> to vector<1x128xf32>
    %20 = arith.mulf %4, %4 : vector<32x128xf32>
    %cst_14 = arith.constant dense<0.000000e+00> : vector<32xf32>
    %21 = vector.multi_reduction <add>, %20, %cst_14 [1] : vector<32x128xf32> to vector<32xf32>
    %22 = vector.shape_cast %21 : vector<32xf32> to vector<32x1xf32>
    %cst_15 = arith.constant 1.280000e+02 : f32
    %23 = vector.broadcast %cst_15 : f32 to vector<32x1xf32>
    %24 = arith.divf %22, %23 : vector<32x1xf32>
    %cst_16 = arith.constant 9.99999997E-7 : f32
    %25 = vector.broadcast %cst_16 : f32 to vector<32x1xf32>
    %26 = arith.addf %24, %25 : vector<32x1xf32>
    %27 = math.rsqrt %26 : vector<32x1xf32>
    %28 = vector.broadcast %27 : vector<32x1xf32> to vector<32x128xf32>
    %29 = arith.mulf %4, %28 : vector<32x128xf32>
    %30 = vector.broadcast %19 : vector<1x128xf32> to vector<32x128xf32>
    %31 = arith.mulf %29, %30 : vector<32x128xf32>
    %32 = arith.truncf %31 : vector<32x128xf32> to vector<32x128xbf16>
    %33 = vector.shape_cast %32 : vector<32x128xbf16> to vector<1x32x128xbf16>
    %34 = vector.shape_cast %33 : vector<1x32x128xbf16> to vector<1x32x128xbf16>
    %35 = vector.broadcast %34 : vector<1x32x128xbf16> to vector<4x32x128xbf16>
    %c0_17 = arith.constant 0 : index
    %c0_18 = arith.constant 0 : index
    %c0_19 = arith.constant 0 : index
    %c0_20 = arith.constant 0 : index
    %36 = vector.load %arg5[%c0_17, %c0_18, %c0_19, %c0_20] : memref<2x4x128x32xbf16, #tpu.memory_space<vmem>>, vector<1x4x128x32xbf16>
    %37 = vector.shape_cast %36 : vector<1x4x128x32xbf16> to vector<4x128x32xbf16>
    "tpu.trace_start"() <{level = 10 : i32, message = "hme,hed->hmd"}> : () -> ()
    %cst_21 = arith.constant dense<0.000000e+00> : vector<4x32x32xf32>
    %38 = tpu.matmul %35, %37, %cst_21 {dimension_numbers = #tpu.dot_dimension_numbers<[2], [1], [1], [2], [0, 0, 0, 1, 1, 2], [0], [0]>} : vector<4x32x128xbf16>, vector<4x128x32xbf16>, vector<4x32x32xf32> -> vector<4x32x32xf32>
    "tpu.trace_stop"() : () -> ()
    %39 = arith.mulf %38, %12 : vector<4x32x32xf32>
    %c0_22 = arith.constant 0 : index
    %c0_23 = arith.constant 0 : index
    %c0_24 = arith.constant 0 : index
    %c0_25 = arith.constant 0 : index
    %40 = vector.load %arg6[%c0_22, %c0_23, %c0_24, %c0_25] : memref<2x4x128x32xbf16, #tpu.memory_space<vmem>>, vector<1x4x128x32xbf16>
    %41 = vector.shape_cast %40 : vector<1x4x128x32xbf16> to vector<4x128x32xbf16>
    "tpu.trace_start"() <{level = 10 : i32, message = "hme,hed->hmd"}> : () -> ()
    %cst_26 = arith.constant dense<0.000000e+00> : vector<4x32x32xf32>
    %42 = tpu.matmul %35, %41, %cst_26 {dimension_numbers = #tpu.dot_dimension_numbers<[2], [1], [1], [2], [0, 0, 0, 1, 1, 2], [0], [0]>} : vector<4x32x128xbf16>, vector<4x128x32xbf16>, vector<4x32x32xf32> -> vector<4x32x32xf32>
    "tpu.trace_stop"() : () -> ()
    %43 = arith.mulf %42, %16 : vector<4x32x32xf32>
    %44 = arith.addf %39, %43 : vector<4x32x32xf32>
    %c0_27 = arith.constant 0 : index
    %c0_28 = arith.constant 0 : index
    %c0_29 = arith.constant 0 : index
    %c0_30 = arith.constant 0 : index
    %45 = vector.load %arg7[%c0_27, %c0_28, %c0_29, %c0_30] : memref<2x4x128x32xbf16, #tpu.memory_space<vmem>>, vector<1x4x128x32xbf16>
    %46 = vector.shape_cast %45 : vector<1x4x128x32xbf16> to vector<4x128x32xbf16>
    "tpu.trace_start"() <{level = 10 : i32, message = "hme,hed->hmd"}> : () -> ()
    %cst_31 = arith.constant dense<0.000000e+00> : vector<4x32x32xf32>
    %47 = tpu.matmul %35, %46, %cst_31 {dimension_numbers = #tpu.dot_dimension_numbers<[2], [1], [1], [2], [0, 0, 0, 1, 1, 2], [0], [0]>} : vector<4x32x128xbf16>, vector<4x128x32xbf16>, vector<4x32x32xf32> -> vector<4x32x32xf32>
    "tpu.trace_stop"() : () -> ()
    %48 = arith.mulf %47, %12 : vector<4x32x32xf32>
    %c0_32 = arith.constant 0 : index
    %c0_33 = arith.constant 0 : index
    %c0_34 = arith.constant 0 : index
    %c0_35 = arith.constant 0 : index
    %49 = vector.load %arg8[%c0_32, %c0_33, %c0_34, %c0_35] : memref<2x4x128x32xbf16, #tpu.memory_space<vmem>>, vector<1x4x128x32xbf16>
    %50 = vector.shape_cast %49 : vector<1x4x128x32xbf16> to vector<4x128x32xbf16>
    "tpu.trace_start"() <{level = 10 : i32, message = "hme,hed->hmd"}> : () -> ()
    %cst_36 = arith.constant dense<0.000000e+00> : vector<4x32x32xf32>
    %51 = tpu.matmul %35, %50, %cst_36 {dimension_numbers = #tpu.dot_dimension_numbers<[2], [1], [1], [2], [0, 0, 0, 1, 1, 2], [0], [0]>} : vector<4x32x128xbf16>, vector<4x128x32xbf16>, vector<4x32x32xf32> -> vector<4x32x32xf32>
    "tpu.trace_stop"() : () -> ()
    %52 = arith.mulf %51, %16 : vector<4x32x32xf32>
    %53 = arith.addf %48, %52 : vector<4x32x32xf32>
    %c0_37 = arith.constant 0 : index
    %c0_38 = arith.constant 0 : index
    %c0_39 = arith.constant 0 : index
    %c0_40 = arith.constant 0 : index
    %54 = vector.load %arg9[%c0_37, %c0_38, %c0_39, %c0_40] : memref<2x4x128x32xbf16, #tpu.memory_space<vmem>>, vector<1x4x128x32xbf16>
    %55 = vector.shape_cast %54 : vector<1x4x128x32xbf16> to vector<4x128x32xbf16>
    "tpu.trace_start"() <{level = 10 : i32, message = "hme,hed->hmd"}> : () -> ()
    %cst_41 = arith.constant dense<0.000000e+00> : vector<4x32x32xf32>
    %56 = tpu.matmul %35, %55, %cst_41 {dimension_numbers = #tpu.dot_dimension_numbers<[2], [1], [1], [2], [0, 0, 0, 1, 1, 2], [0], [0]>} : vector<4x32x128xbf16>, vector<4x128x32xbf16>, vector<4x32x32xf32> -> vector<4x32x32xf32>
    "tpu.trace_stop"() : () -> ()
    %57 = arith.truncf %44 : vector<4x32x32xf32> to vector<4x32x32xbf16>
    %58 = arith.truncf %53 : vector<4x32x32xf32> to vector<4x32x32xbf16>
    "tpu.trace_start"() <{level = 10 : i32, message = "hqd,hkd->hqk"}> : () -> ()
    %cst_42 = arith.constant dense<0.000000e+00> : vector<4x32x32xf32>
    %59 = tpu.matmul %57, %58, %cst_42 {dimension_numbers = #tpu.dot_dimension_numbers<[2], [2], [1], [1], [0, 0, 0, 1, 1, 1], [0], [0]>} : vector<4x32x32xbf16>, vector<4x32x32xbf16>, vector<4x32x32xf32> -> vector<4x32x32xf32>
    "tpu.trace_stop"() : () -> ()
    %60 = arith.addf %59, %8 : vector<4x32x32xf32>
    %cst_43 = arith.constant dense<0xFF800000> : vector<4x32xf32>
    %61 = vector.multi_reduction <maximumf>, %60, %cst_43 [2] : vector<4x32x32xf32> to vector<4x32xf32>
    %62 = vector.shape_cast %61 : vector<4x32xf32> to vector<4x32x1xf32>
    %63 = vector.broadcast %62 : vector<4x32x1xf32> to vector<4x32x32xf32>
    %64 = arith.subf %60, %63 : vector<4x32x32xf32>
    %65 = math.exp %64 : vector<4x32x32xf32>
    %cst_44 = arith.constant dense<0.000000e+00> : vector<4x32xf32>
    %66 = vector.multi_reduction <add>, %65, %cst_44 [2] : vector<4x32x32xf32> to vector<4x32xf32>
    %67 = vector.shape_cast %66 : vector<4x32xf32> to vector<4x32x1xf32>
    %68 = tpu.reciprocal %67 {approx = true} : vector<4x32x1xf32> -> vector<4x32x1xf32>
    %69 = vector.broadcast %68 : vector<4x32x1xf32> to vector<4x32x32xf32>
    %70 = arith.mulf %65, %69 : vector<4x32x32xf32>
    %71 = arith.truncf %70 : vector<4x32x32xf32> to vector<4x32x32xbf16>
    %72 = arith.truncf %56 : vector<4x32x32xf32> to vector<4x32x32xbf16>
    "tpu.trace_start"() <{level = 10 : i32, message = "hqk,hkd->hqd"}> : () -> ()
    %cst_45 = arith.constant dense<0.000000e+00> : vector<4x32x32xf32>
    %73 = tpu.matmul %71, %72, %cst_45 {dimension_numbers = #tpu.dot_dimension_numbers<[2], [1], [1], [2], [0, 0, 0, 1, 1, 2], [0], [0]>} : vector<4x32x32xbf16>, vector<4x32x32xbf16>, vector<4x32x32xf32> -> vector<4x32x32xf32>
    "tpu.trace_stop"() : () -> ()
    %74 = arith.truncf %73 : vector<4x32x32xf32> to vector<4x32x32xbf16>
    %c0_46 = arith.constant 0 : index
    %c0_47 = arith.constant 0 : index
    %c0_48 = arith.constant 0 : index
    %c0_49 = arith.constant 0 : index
    %75 = vector.load %arg10[%c0_46, %c0_47, %c0_48, %c0_49] : memref<2x4x32x128xbf16, #tpu.memory_space<vmem>>, vector<1x4x32x128xbf16>
    %76 = vector.shape_cast %75 : vector<1x4x32x128xbf16> to vector<4x32x128xbf16>
    "tpu.trace_start"() <{level = 10 : i32, message = "hqd,hde->hqe"}> : () -> ()
    %cst_50 = arith.constant dense<0.000000e+00> : vector<4x32x128xf32>
    %77 = tpu.matmul %74, %76, %cst_50 {dimension_numbers = #tpu.dot_dimension_numbers<[2], [1], [1], [2], [0, 0, 0, 1, 1, 2], [0], [0]>} : vector<4x32x32xbf16>, vector<4x32x128xbf16>, vector<4x32x128xf32> -> vector<4x32x128xf32>
    "tpu.trace_stop"() : () -> ()
    %cst_51 = arith.constant dense<0.000000e+00> : vector<32x128xf32>
    %78 = vector.multi_reduction <add>, %77, %cst_51 [0] : vector<4x32x128xf32> to vector<32x128xf32>
    %79 = arith.addf %4, %78 : vector<32x128xf32>
    %80 = vector.extract_strided_slice %18 {offsets = [1, 0], sizes = [1, 128], strides = [1, 1]} : vector<2x128xf32> to vector<1x128xf32>
    %81 = arith.mulf %79, %79 : vector<32x128xf32>
    %cst_52 = arith.constant dense<0.000000e+00> : vector<32xf32>
    %82 = vector.multi_reduction <add>, %81, %cst_52 [1] : vector<32x128xf32> to vector<32xf32>
    %83 = vector.shape_cast %82 : vector<32xf32> to vector<32x1xf32>
    %cst_53 = arith.constant 1.280000e+02 : f32
    %84 = vector.broadcast %cst_53 : f32 to vector<32x1xf32>
    %85 = arith.divf %83, %84 : vector<32x1xf32>
    %cst_54 = arith.constant 9.99999997E-7 : f32
    %86 = vector.broadcast %cst_54 : f32 to vector<32x1xf32>
    %87 = arith.addf %85, %86 : vector<32x1xf32>
    %88 = math.rsqrt %87 : vector<32x1xf32>
    %89 = vector.broadcast %88 : vector<32x1xf32> to vector<32x128xf32>
    %90 = arith.mulf %79, %89 : vector<32x128xf32>
    %91 = vector.broadcast %80 : vector<1x128xf32> to vector<32x128xf32>
    %92 = arith.mulf %90, %91 : vector<32x128xf32>
    %93 = arith.truncf %92 : vector<32x128xf32> to vector<32x128xbf16>
    %c0_55 = arith.constant 0 : index
    %c0_56 = arith.constant 0 : index
    %c0_57 = arith.constant 0 : index
    %94 = vector.load %arg11[%c0_55, %c0_56, %c0_57] : memref<2x128x512xbf16, #tpu.memory_space<vmem>>, vector<1x128x512xbf16>
    %95 = vector.shape_cast %94 : vector<1x128x512xbf16> to vector<128x512xbf16>
    %cst_58 = arith.constant dense<0.000000e+00> : vector<32x512xf32>
    %96 = tpu.matmul %93, %95, %cst_58 {dimension_numbers = #tpu.dot_dimension_numbers<[1], [0], [0], [1], [0, 0, 1, 1], [], []>} : vector<32x128xbf16>, vector<128x512xbf16>, vector<32x512xf32> -> vector<32x512xf32>
    %97 = vector.extract_strided_slice %96 {offsets = [0, 0], sizes = [32, 256], strides = [1, 1]} : vector<32x512xf32> to vector<32x256xf32>
    %98 = arith.negf %97 : vector<32x256xf32>
    %99 = math.exp %98 : vector<32x256xf32>
    %cst_59 = arith.constant 1.000000e+00 : f32
    %100 = vector.broadcast %cst_59 : f32 to vector<32x256xf32>
    %101 = arith.addf %100, %99 : vector<32x256xf32>
    %102 = arith.divf %100, %101 : vector<32x256xf32>
    %103 = arith.mulf %97, %102 : vector<32x256xf32>
    %104 = vector.extract_strided_slice %96 {offsets = [0, 256], sizes = [32, 256], strides = [1, 1]} : vector<32x512xf32> to vector<32x256xf32>
    %105 = arith.mulf %103, %104 : vector<32x256xf32>
    %106 = arith.truncf %105 : vector<32x256xf32> to vector<32x256xbf16>
    %c0_60 = arith.constant 0 : index
    %c0_61 = arith.constant 0 : index
    %c0_62 = arith.constant 0 : index
    %107 = vector.load %arg12[%c0_60, %c0_61, %c0_62] : memref<2x256x128xbf16, #tpu.memory_space<vmem>>, vector<1x256x128xbf16>
    %108 = vector.shape_cast %107 : vector<1x256x128xbf16> to vector<256x128xbf16>
    %cst_63 = arith.constant dense<0.000000e+00> : vector<32x128xf32>
    %109 = tpu.matmul %106, %108, %cst_63 {dimension_numbers = #tpu.dot_dimension_numbers<[1], [0], [0], [1], [0, 0, 1, 1], [], []>} : vector<32x256xbf16>, vector<256x128xbf16>, vector<32x128xf32> -> vector<32x128xf32>
    %110 = arith.addf %79, %109 : vector<32x128xf32>
    %c1 = arith.constant 1 : index
    %c0_64 = arith.constant 0 : index
    %c0_65 = arith.constant 0 : index
    %111 = vector.load %arg13[%c1, %c0_64, %c0_65] : memref<2x2x128xf32, #tpu.memory_space<vmem>>, vector<1x2x128xf32>
    %112 = vector.shape_cast %111 : vector<1x2x128xf32> to vector<2x128xf32>
    %113 = vector.extract_strided_slice %112 {offsets = [0, 0], sizes = [1, 128], strides = [1, 1]} : vector<2x128xf32> to vector<1x128xf32>
    %114 = arith.mulf %110, %110 : vector<32x128xf32>
    %cst_66 = arith.constant dense<0.000000e+00> : vector<32xf32>
    %115 = vector.multi_reduction <add>, %114, %cst_66 [1] : vector<32x128xf32> to vector<32xf32>
    %116 = vector.shape_cast %115 : vector<32xf32> to vector<32x1xf32>
    %cst_67 = arith.constant 1.280000e+02 : f32
    %117 = vector.broadcast %cst_67 : f32 to vector<32x1xf32>
    %118 = arith.divf %116, %117 : vector<32x1xf32>
    %cst_68 = arith.constant 9.99999997E-7 : f32
    %119 = vector.broadcast %cst_68 : f32 to vector<32x1xf32>
    %120 = arith.addf %118, %119 : vector<32x1xf32>
    %121 = math.rsqrt %120 : vector<32x1xf32>
    %122 = vector.broadcast %121 : vector<32x1xf32> to vector<32x128xf32>
    %123 = arith.mulf %110, %122 : vector<32x128xf32>
    %124 = vector.broadcast %113 : vector<1x128xf32> to vector<32x128xf32>
    %125 = arith.mulf %123, %124 : vector<32x128xf32>
    %126 = arith.truncf %125 : vector<32x128xf32> to vector<32x128xbf16>
    %127 = vector.shape_cast %126 : vector<32x128xbf16> to vector<1x32x128xbf16>
    %128 = vector.shape_cast %127 : vector<1x32x128xbf16> to vector<1x32x128xbf16>
    %129 = vector.broadcast %128 : vector<1x32x128xbf16> to vector<4x32x128xbf16>
    %c1_69 = arith.constant 1 : index
    %c0_70 = arith.constant 0 : index
    %c0_71 = arith.constant 0 : index
    %c0_72 = arith.constant 0 : index
    %130 = vector.load %arg5[%c1_69, %c0_70, %c0_71, %c0_72] : memref<2x4x128x32xbf16, #tpu.memory_space<vmem>>, vector<1x4x128x32xbf16>
    %131 = vector.shape_cast %130 : vector<1x4x128x32xbf16> to vector<4x128x32xbf16>
    "tpu.trace_start"() <{level = 10 : i32, message = "hme,hed->hmd"}> : () -> ()
    %cst_73 = arith.constant dense<0.000000e+00> : vector<4x32x32xf32>
    %132 = tpu.matmul %129, %131, %cst_73 {dimension_numbers = #tpu.dot_dimension_numbers<[2], [1], [1], [2], [0, 0, 0, 1, 1, 2], [0], [0]>} : vector<4x32x128xbf16>, vector<4x128x32xbf16>, vector<4x32x32xf32> -> vector<4x32x32xf32>
    "tpu.trace_stop"() : () -> ()
    %133 = arith.mulf %132, %12 : vector<4x32x32xf32>
    %c1_74 = arith.constant 1 : index
    %c0_75 = arith.constant 0 : index
    %c0_76 = arith.constant 0 : index
    %c0_77 = arith.constant 0 : index
    %134 = vector.load %arg6[%c1_74, %c0_75, %c0_76, %c0_77] : memref<2x4x128x32xbf16, #tpu.memory_space<vmem>>, vector<1x4x128x32xbf16>
    %135 = vector.shape_cast %134 : vector<1x4x128x32xbf16> to vector<4x128x32xbf16>
    "tpu.trace_start"() <{level = 10 : i32, message = "hme,hed->hmd"}> : () -> ()
    %cst_78 = arith.constant dense<0.000000e+00> : vector<4x32x32xf32>
    %136 = tpu.matmul %129, %135, %cst_78 {dimension_numbers = #tpu.dot_dimension_numbers<[2], [1], [1], [2], [0, 0, 0, 1, 1, 2], [0], [0]>} : vector<4x32x128xbf16>, vector<4x128x32xbf16>, vector<4x32x32xf32> -> vector<4x32x32xf32>
    "tpu.trace_stop"() : () -> ()
    %137 = arith.mulf %136, %16 : vector<4x32x32xf32>
    %138 = arith.addf %133, %137 : vector<4x32x32xf32>
    %c1_79 = arith.constant 1 : index
    %c0_80 = arith.constant 0 : index
    %c0_81 = arith.constant 0 : index
    %c0_82 = arith.constant 0 : index
    %139 = vector.load %arg7[%c1_79, %c0_80, %c0_81, %c0_82] : memref<2x4x128x32xbf16, #tpu.memory_space<vmem>>, vector<1x4x128x32xbf16>
    %140 = vector.shape_cast %139 : vector<1x4x128x32xbf16> to vector<4x128x32xbf16>
    "tpu.trace_start"() <{level = 10 : i32, message = "hme,hed->hmd"}> : () -> ()
    %cst_83 = arith.constant dense<0.000000e+00> : vector<4x32x32xf32>
    %141 = tpu.matmul %129, %140, %cst_83 {dimension_numbers = #tpu.dot_dimension_numbers<[2], [1], [1], [2], [0, 0, 0, 1, 1, 2], [0], [0]>} : vector<4x32x128xbf16>, vector<4x128x32xbf16>, vector<4x32x32xf32> -> vector<4x32x32xf32>
    "tpu.trace_stop"() : () -> ()
    %142 = arith.mulf %141, %12 : vector<4x32x32xf32>
    %c1_84 = arith.constant 1 : index
    %c0_85 = arith.constant 0 : index
    %c0_86 = arith.constant 0 : index
    %c0_87 = arith.constant 0 : index
    %143 = vector.load %arg8[%c1_84, %c0_85, %c0_86, %c0_87] : memref<2x4x128x32xbf16, #tpu.memory_space<vmem>>, vector<1x4x128x32xbf16>
    %144 = vector.shape_cast %143 : vector<1x4x128x32xbf16> to vector<4x128x32xbf16>
    "tpu.trace_start"() <{level = 10 : i32, message = "hme,hed->hmd"}> : () -> ()
    %cst_88 = arith.constant dense<0.000000e+00> : vector<4x32x32xf32>
    %145 = tpu.matmul %129, %144, %cst_88 {dimension_numbers = #tpu.dot_dimension_numbers<[2], [1], [1], [2], [0, 0, 0, 1, 1, 2], [0], [0]>} : vector<4x32x128xbf16>, vector<4x128x32xbf16>, vector<4x32x32xf32> -> vector<4x32x32xf32>
    "tpu.trace_stop"() : () -> ()
    %146 = arith.mulf %145, %16 : vector<4x32x32xf32>
    %147 = arith.addf %142, %146 : vector<4x32x32xf32>
    %c1_89 = arith.constant 1 : index
    %c0_90 = arith.constant 0 : index
    %c0_91 = arith.constant 0 : index
    %c0_92 = arith.constant 0 : index
    %148 = vector.load %arg9[%c1_89, %c0_90, %c0_91, %c0_92] : memref<2x4x128x32xbf16, #tpu.memory_space<vmem>>, vector<1x4x128x32xbf16>
    %149 = vector.shape_cast %148 : vector<1x4x128x32xbf16> to vector<4x128x32xbf16>
    "tpu.trace_start"() <{level = 10 : i32, message = "hme,hed->hmd"}> : () -> ()
    %cst_93 = arith.constant dense<0.000000e+00> : vector<4x32x32xf32>
    %150 = tpu.matmul %129, %149, %cst_93 {dimension_numbers = #tpu.dot_dimension_numbers<[2], [1], [1], [2], [0, 0, 0, 1, 1, 2], [0], [0]>} : vector<4x32x128xbf16>, vector<4x128x32xbf16>, vector<4x32x32xf32> -> vector<4x32x32xf32>
    "tpu.trace_stop"() : () -> ()
    %151 = arith.truncf %138 : vector<4x32x32xf32> to vector<4x32x32xbf16>
    %152 = arith.truncf %147 : vector<4x32x32xf32> to vector<4x32x32xbf16>
    "tpu.trace_start"() <{level = 10 : i32, message = "hqd,hkd->hqk"}> : () -> ()
    %cst_94 = arith.constant dense<0.000000e+00> : vector<4x32x32xf32>
    %153 = tpu.matmul %151, %152, %cst_94 {dimension_numbers = #tpu.dot_dimension_numbers<[2], [2], [1], [1], [0, 0, 0, 1, 1, 1], [0], [0]>} : vector<4x32x32xbf16>, vector<4x32x32xbf16>, vector<4x32x32xf32> -> vector<4x32x32xf32>
    "tpu.trace_stop"() : () -> ()
    %154 = arith.addf %153, %8 : vector<4x32x32xf32>
    %cst_95 = arith.constant dense<0xFF800000> : vector<4x32xf32>
    %155 = vector.multi_reduction <maximumf>, %154, %cst_95 [2] : vector<4x32x32xf32> to vector<4x32xf32>
    %156 = vector.shape_cast %155 : vector<4x32xf32> to vector<4x32x1xf32>
    %157 = vector.broadcast %156 : vector<4x32x1xf32> to vector<4x32x32xf32>
    %158 = arith.subf %154, %157 : vector<4x32x32xf32>
    %159 = math.exp %158 : vector<4x32x32xf32>
    %cst_96 = arith.constant dense<0.000000e+00> : vector<4x32xf32>
    %160 = vector.multi_reduction <add>, %159, %cst_96 [2] : vector<4x32x32xf32> to vector<4x32xf32>
    %161 = vector.shape_cast %160 : vector<4x32xf32> to vector<4x32x1xf32>
    %162 = tpu.reciprocal %161 {approx = true} : vector<4x32x1xf32> -> vector<4x32x1xf32>
    %163 = vector.broadcast %162 : vector<4x32x1xf32> to vector<4x32x32xf32>
    %164 = arith.mulf %159, %163 : vector<4x32x32xf32>
    %165 = arith.truncf %164 : vector<4x32x32xf32> to vector<4x32x32xbf16>
    %166 = arith.truncf %150 : vector<4x32x32xf32> to vector<4x32x32xbf16>
    "tpu.trace_start"() <{level = 10 : i32, message = "hqk,hkd->hqd"}> : () -> ()
    %cst_97 = arith.constant dense<0.000000e+00> : vector<4x32x32xf32>
    %167 = tpu.matmul %165, %166, %cst_97 {dimension_numbers = #tpu.dot_dimension_numbers<[2], [1], [1], [2], [0, 0, 0, 1, 1, 2], [0], [0]>} : vector<4x32x32xbf16>, vector<4x32x32xbf16>, vector<4x32x32xf32> -> vector<4x32x32xf32>
    "tpu.trace_stop"() : () -> ()
    %168 = arith.truncf %167 : vector<4x32x32xf32> to vector<4x32x32xbf16>
    %c1_98 = arith.constant 1 : index
    %c0_99 = arith.constant 0 : index
    %c0_100 = arith.constant 0 : index
    %c0_101 = arith.constant 0 : index
    %169 = vector.load %arg10[%c1_98, %c0_99, %c0_100, %c0_101] : memref<2x4x32x128xbf16, #tpu.memory_space<vmem>>, vector<1x4x32x128xbf16>
    %170 = vector.shape_cast %169 : vector<1x4x32x128xbf16> to vector<4x32x128xbf16>
    "tpu.trace_start"() <{level = 10 : i32, message = "hqd,hde->hqe"}> : () -> ()
    %cst_102 = arith.constant dense<0.000000e+00> : vector<4x32x128xf32>
    %171 = tpu.matmul %168, %170, %cst_102 {dimension_numbers = #tpu.dot_dimension_numbers<[2], [1], [1], [2], [0, 0, 0, 1, 1, 2], [0], [0]>} : vector<4x32x32xbf16>, vector<4x32x128xbf16>, vector<4x32x128xf32> -> vector<4x32x128xf32>
    "tpu.trace_stop"() : () -> ()
    %cst_103 = arith.constant dense<0.000000e+00> : vector<32x128xf32>
    %172 = vector.multi_reduction <add>, %171, %cst_103 [0] : vector<4x32x128xf32> to vector<32x128xf32>
    %173 = arith.addf %110, %172 : vector<32x128xf32>
    %174 = vector.extract_strided_slice %112 {offsets = [1, 0], sizes = [1, 128], strides = [1, 1]} : vector<2x128xf32> to vector<1x128xf32>
    %175 = arith.mulf %173, %173 : vector<32x128xf32>
    %cst_104 = arith.constant dense<0.000000e+00> : vector<32xf32>
    %176 = vector.multi_reduction <add>, %175, %cst_104 [1] : vector<32x128xf32> to vector<32xf32>
    %177 = vector.shape_cast %176 : vector<32xf32> to vector<32x1xf32>
    %cst_105 = arith.constant 1.280000e+02 : f32
    %178 = vector.broadcast %cst_105 : f32 to vector<32x1xf32>
    %179 = arith.divf %177, %178 : vector<32x1xf32>
    %cst_106 = arith.constant 9.99999997E-7 : f32
    %180 = vector.broadcast %cst_106 : f32 to vector<32x1xf32>
    %181 = arith.addf %179, %180 : vector<32x1xf32>
    %182 = math.rsqrt %181 : vector<32x1xf32>
    %183 = vector.broadcast %182 : vector<32x1xf32> to vector<32x128xf32>
    %184 = arith.mulf %173, %183 : vector<32x128xf32>
    %185 = vector.broadcast %174 : vector<1x128xf32> to vector<32x128xf32>
    %186 = arith.mulf %184, %185 : vector<32x128xf32>
    %187 = arith.truncf %186 : vector<32x128xf32> to vector<32x128xbf16>
    %c1_107 = arith.constant 1 : index
    %c0_108 = arith.constant 0 : index
    %c0_109 = arith.constant 0 : index
    %188 = vector.load %arg11[%c1_107, %c0_108, %c0_109] : memref<2x128x512xbf16, #tpu.memory_space<vmem>>, vector<1x128x512xbf16>
    %189 = vector.shape_cast %188 : vector<1x128x512xbf16> to vector<128x512xbf16>
    %cst_110 = arith.constant dense<0.000000e+00> : vector<32x512xf32>
    %190 = tpu.matmul %187, %189, %cst_110 {dimension_numbers = #tpu.dot_dimension_numbers<[1], [0], [0], [1], [0, 0, 1, 1], [], []>} : vector<32x128xbf16>, vector<128x512xbf16>, vector<32x512xf32> -> vector<32x512xf32>
    %191 = vector.extract_strided_slice %190 {offsets = [0, 0], sizes = [32, 256], strides = [1, 1]} : vector<32x512xf32> to vector<32x256xf32>
    %192 = arith.negf %191 : vector<32x256xf32>
    %193 = math.exp %192 : vector<32x256xf32>
    %cst_111 = arith.constant 1.000000e+00 : f32
    %194 = vector.broadcast %cst_111 : f32 to vector<32x256xf32>
    %195 = arith.addf %194, %193 : vector<32x256xf32>
    %196 = arith.divf %194, %195 : vector<32x256xf32>
    %197 = arith.mulf %191, %196 : vector<32x256xf32>
    %198 = vector.extract_strided_slice %190 {offsets = [0, 256], sizes = [32, 256], strides = [1, 1]} : vector<32x512xf32> to vector<32x256xf32>
    %199 = arith.mulf %197, %198 : vector<32x256xf32>
    %200 = arith.truncf %199 : vector<32x256xf32> to vector<32x256xbf16>
    %c1_112 = arith.constant 1 : index
    %c0_113 = arith.constant 0 : index
    %c0_114 = arith.constant 0 : index
    %201 = vector.load %arg12[%c1_112, %c0_113, %c0_114] : memref<2x256x128xbf16, #tpu.memory_space<vmem>>, vector<1x256x128xbf16>
    %202 = vector.shape_cast %201 : vector<1x256x128xbf16> to vector<256x128xbf16>
    %cst_115 = arith.constant dense<0.000000e+00> : vector<32x128xf32>
    %203 = tpu.matmul %200, %202, %cst_115 {dimension_numbers = #tpu.dot_dimension_numbers<[1], [0], [0], [1], [0, 0, 1, 1], [], []>} : vector<32x256xbf16>, vector<256x128xbf16>, vector<32x128xf32> -> vector<32x128xf32>
    %204 = arith.addf %173, %203 : vector<32x128xf32>
    %c0_116 = arith.constant 0 : index
    %c0_117 = arith.constant 0 : index
    %205 = vector.load %arg14[%c0_116, %c0_117] : memref<1x128xf32, #tpu.memory_space<vmem>>, vector<1x128xf32>
    %206 = arith.mulf %204, %204 : vector<32x128xf32>
    %cst_118 = arith.constant dense<0.000000e+00> : vector<32xf32>
    %207 = vector.multi_reduction <add>, %206, %cst_118 [1] : vector<32x128xf32> to vector<32xf32>
    %208 = vector.shape_cast %207 : vector<32xf32> to vector<32x1xf32>
    %cst_119 = arith.constant 1.280000e+02 : f32
    %209 = vector.broadcast %cst_119 : f32 to vector<32x1xf32>
    %210 = arith.divf %208, %209 : vector<32x1xf32>
    %cst_120 = arith.constant 9.99999997E-7 : f32
    %211 = vector.broadcast %cst_120 : f32 to vector<32x1xf32>
    %212 = arith.addf %210, %211 : vector<32x1xf32>
    %213 = math.rsqrt %212 : vector<32x1xf32>
    %214 = vector.broadcast %213 : vector<32x1xf32> to vector<32x128xf32>
    %215 = arith.mulf %204, %214 : vector<32x128xf32>
    %216 = vector.broadcast %205 : vector<1x128xf32> to vector<32x128xf32>
    %217 = arith.mulf %215, %216 : vector<32x128xf32>
    %218 = arith.truncf %217 : vector<32x128xf32> to vector<32x128xbf16>
    %c0_121 = arith.constant 0 : index
    %c0_122 = arith.constant 0 : index
    %219 = vector.load %arg17[%c0_121, %c0_122] : memref<128x128xbf16, #tpu.memory_space<vmem>>, vector<128x128xbf16>
    %cst_123 = arith.constant dense<0.000000e+00> : vector<32x128xf32>
    %220 = tpu.matmul %218, %219, %cst_123 {dimension_numbers = #tpu.dot_dimension_numbers<[1], [0], [0], [1], [0, 0, 1, 1], [], []>} : vector<32x128xbf16>, vector<128x128xbf16>, vector<32x128xf32> -> vector<32x128xf32>
    %c0_124 = arith.constant 0 : index
    %c0_125 = arith.constant 0 : index
    %221 = vector.load %arg18[%c0_124, %c0_125] : memref<32x128xf32, #tpu.memory_space<vmem>>, vector<32x128xf32>
    tpu.vector_store %arg18[%c0_124, %c0_125], %220 {strides = array<i32>} : memref<32x128xf32, #tpu.memory_space<vmem>>, vector<32x128xf32>,
    return
  }
  func.func @transform_0(%arg0: i32) -> (i32, i32) {
    %c0_i32 = arith.constant 0 : i32
    %c0_i32_0 = arith.constant 0 : i32
    %c0_i32_1 = arith.constant 0 : i32
    return %c0_i32, %c0_i32_0 : i32, i32
  }
  func.func @transform_1(%arg0: i32) -> (i32, i32) {
    %c0_i32 = arith.constant 0 : i32
    %c0_i32_0 = arith.constant 0 : i32
    %c0_i32_1 = arith.constant 0 : i32
    return %c0_i32, %c0_i32_0 : i32, i32
  }
  func.func @transform_2(%arg0: i32) -> (i32, i32) {
    %c0_i32 = arith.constant 0 : i32
    %c0_i32_0 = arith.constant 0 : i32
    %c0_i32_1 = arith.constant 0 : i32
    return %c0_i32, %c0_i32_0 : i32, i32
  }
  func.func @transform_3(%arg0: i32) -> (i32, i32) {
    %c0_i32 = arith.constant 0 : i32
    %c0_i32_0 = arith.constant 0 : i32
    %c0_i32_1 = arith.constant 0 : i32
    return %c0_i32, %c0_i32_0 : i32, i32
  }
  func.func @transform_4(%arg0: i32) -> (i32, i32, i32, i32) {
    %c0_i32 = arith.constant 0 : i32
    %c0_i32_0 = arith.constant 0 : i32
    %c0_i32_1 = arith.constant 0 : i32
    %c0_i32_2 = arith.constant 0 : i32
    %c0_i32_3 = arith.constant 0 : i32
    return %c0_i32, %c0_i32_0, %c0_i32_1, %c0_i32_2 : i32, i32, i32, i32
  }
  func.func @transform_5(%arg0: i32) -> (i32, i32, i32, i32) {
    %c0_i32 = arith.constant 0 : i32
    %c0_i32_0 = arith.constant 0 : i32
    %c0_i32_1 = arith.constant 0 : i32
    %c0_i32_2 = arith.constant 0 : i32
    %c0_i32_3 = arith.constant 0 : i32
    return %c0_i32, %c0_i32_0, %c0_i32_1, %c0_i32_2 : i32, i32, i32, i32
  }
  func.func @transform_6(%arg0: i32) -> (i32, i32, i32, i32) {
    %c0_i32 = arith.constant 0 : i32
    %c0_i32_0 = arith.constant 0 : i32
    %c0_i32_1 = arith.constant 0 : i32
    %c0_i32_2 = arith.constant 0 : i32
    %c0_i32_3 = arith.constant 0 : i32
    return %c0_i32, %c0_i32_0, %c0_i32_1, %c0_i32_2 : i32, i32, i32, i32
  }
  func.func @transform_7(%arg0: i32) -> (i32, i32, i32, i32) {
    %c0_i32 = arith.constant 0 : i32
    %c0_i32_0 = arith.constant 0 : i32
    %c0_i32_1 = arith.constant 0 : i32
    %c0_i32_2 = arith.constant 0 : i32
    %c0_i32_3 = arith.constant 0 : i32
    return %c0_i32, %c0_i32_0, %c0_i32_1, %c0_i32_2 : i32, i32, i32, i32
  }
  func.func @transform_8(%arg0: i32) -> (i32, i32, i32, i32) {
    %c0_i32 = arith.constant 0 : i32
    %c0_i32_0 = arith.constant 0 : i32
    %c0_i32_1 = arith.constant 0 : i32
    %c0_i32_2 = arith.constant 0 : i32
    %c0_i32_3 = arith.constant 0 : i32
    return %c0_i32, %c0_i32_0, %c0_i32_1, %c0_i32_2 : i32, i32, i32, i32
  }
  func.func @transform_9(%arg0: i32) -> (i32, i32, i32, i32) {
    %c0_i32 = arith.constant 0 : i32
    %c0_i32_0 = arith.constant 0 : i32
    %c0_i32_1 = arith.constant 0 : i32
    %c0_i32_2 = arith.constant 0 : i32
    %c0_i32_3 = arith.constant 0 : i32
    return %c0_i32, %c0_i32_0, %c0_i32_1, %c0_i32_2 : i32, i32, i32, i32
  }
  func.func @transform_10(%arg0: i32) -> (i32, i32, i32) {
    %c0_i32 = arith.constant 0 : i32
    %c0_i32_0 = arith.constant 0 : i32
    %c0_i32_1 = arith.constant 0 : i32
    %c0_i32_2 = arith.constant 0 : i32
    return %c0_i32, %c0_i32_0, %c0_i32_1 : i32, i32, i32
  }
  func.func @transform_11(%arg0: i32) -> (i32, i32, i32) {
    %c0_i32 = arith.constant 0 : i32
    %c0_i32_0 = arith.constant 0 : i32
    %c0_i32_1 = arith.constant 0 : i32
    %c0_i32_2 = arith.constant 0 : i32
    return %c0_i32, %c0_i32_0, %c0_i32_1 : i32, i32, i32
  }
  func.func @transform_12(%arg0: i32) -> (i32, i32, i32) {
    %c0_i32 = arith.constant 0 : i32
    %c0_i32_0 = arith.constant 0 : i32
    %c0_i32_1 = arith.constant 0 : i32
    %c0_i32_2 = arith.constant 0 : i32
    return %c0_i32, %c0_i32_0, %c0_i32_1 : i32, i32, i32
  }
  func.func @transform_13(%arg0: i32) -> (i32, i32) {
    %c0_i32 = arith.constant 0 : i32
    %c0_i32_0 = arith.constant 0 : i32
    %c0_i32_1 = arith.constant 0 : i32
    return %c0_i32, %c0_i32_0 : i32, i32
  }
  func.func @transform_14(%arg0: i32) -> (i32, i32) {
    %c0_i32 = arith.constant 0 : i32
    %c0_i32_0 = arith.constant 0 : i32
    %c0_i32_1 = arith.constant 0 : i32
    return %c0_i32, %c0_i32_0 : i32, i32
  }
  func.func @transform_15(%arg0: i32) -> (i32, i32) {
    %c0_i32 = arith.constant 0 : i32
    %c0_i32_0 = arith.constant 0 : i32
    %c0_i32_1 = arith.constant 0 : i32
    return %c0_i32, %c0_i32_0 : i32, i32
  }
  func.func @transform_16(%arg0: i32) -> (i32, i32) {
    %c0_i32 = arith.constant 0 : i32
    %c0_i32_0 = arith.constant 0 : i32
    %c0_i32_1 = arith.constant 0 : i32
    return %c0_i32, %c0_i32_0 : i32, i32
  }
  func.func @transform_17(%arg0: i32) -> (i32, i32) {
    %c0_i32 = arith.constant 0 : i32
    %c0_i32_0 = arith.constant 0 : i32
    %c0_i32_1 = arith.constant 0 : i32
    return %c0_i32, %c0_i32_0 : i32, i32
  }
}

</mosaic_0001>

<bundles_post_ra>
// kernel: llm4rec_forward.1
= control target key start
LH: loop header
LB: loop body
LE: loop exit
PB: predicated region body
PF: predicated region fallthrough
CT: control target
= control target key end

     0   :  { %vm107_vm0 = vcmask 523264   ;;  %v209_v49 = vlaneseq  ;;  %vm2591_vm1 = vcmask 261120   ;;  %s14107_s3 = inlined_call_operand.vmem [shape: bf16[64,128], index: 3, kind: input, shape index: {}]   ;;  %s14108_s0 = inlined_call_operand.vmem [shape: bf16[32,64], index: 0, kind: input, shape index: {}]   ;;  %s14109_s4 = inlined_call_operand.vmem [shape: bf16[2,4,128,32], index: 4, kind: input, shape index: {}]   ;;  %s14110_s2 = inlined_call_operand.vmem [shape: f32[32,128], index: 2, kind: input, shape index: {}]   ;;  %s14111_s5 = inlined_call_operand.vmem [shape: bf16[2,4,128,32], index: 5, kind: input, shape index: {}]   ;;  %s14112_s6 = inlined_call_operand.vmem [shape: bf16[2,4,128,32], index: 6, kind: input, shape index: {}]   ;;  %s14113_s12 = inlined_call_operand.vmem [shape: f32[2,2,128], index: 12, kind: input, shape index: {}]   ;;  %s14114_s7 = inlined_call_operand.vmem [shape: bf16[2,4,128,32], index: 7, kind: input, shape index: {}]   ;;  %s14115_s8 = inlined_call_operand.vmem [shape: bf16[2,4,128,32], index: 8, kind: input, shape index: {}]   ;;  %s14116_s14 = inlined_call_operand.vmem [shape: f32[32,32], index: 14, kind: input, shape index: {}]   ;;  %s14117_s15 = inlined_call_operand.vmem [shape: f32[32,32], index: 15, kind: input, shape index: {}]   ;;  %s14118_s1 = inlined_call_operand.vmem [shape: f32[32,32], index: 1, kind: input, shape index: {}]   ;;  %s14119_s9 = inlined_call_operand.vmem [shape: bf16[2,4,32,128], index: 9, kind: input, shape index: {}]   ;;  %s14120_s10 = inlined_call_operand.vmem [shape: bf16[2,128,512], index: 10, kind: input, shape index: {}]   ;;  %s14121_s11 = inlined_call_operand.vmem [shape: bf16[2,256,128], index: 11, kind: input, shape index: {}]   ;;  %s14122_s16 = inlined_call_operand.vmem [shape: bf16[128,128], index: 16, kind: input, shape index: {}]   ;;  %s14123_s13 = inlined_call_operand.vmem [shape: f32[1,128], index: 13, kind: input, shape index: {}]   ;;  %s14124_s17 = inlined_call_operand.vmem [shape: f32[32,128], index: 17, kind: output, shape index: {}]  }
   0x1   :  { %14131 = sst [smem:[#allocation2_spill]] %s14107_s3  ;;  %v10825_v6 = vld [vmem:[%s14109_s4] sm:$0xff]   ;;  %v10827_v8 = vld [vmem:[%s14109_s4 + $0x8] sm:$0xff]   ;;  %v59_v10 = vld [vmem:[%s14110_s2 + $0x10] sm:$0xff] }
   0x2   :  { %14132 = sst [smem:[#allocation3_spill]] %s14108_s0  ;;  %s14133_s26 = sld [smem:[#allocation2_spill]]  ;;  %v10826_v7 = vld [vmem:[%s14109_s4 + $0x40] sm:$0xff]   ;;  %v10828_v9 = vld [vmem:[%s14109_s4 + $0x48] sm:$0xff]   ;;  %v60_v13 = vld [vmem:[%s14110_s2 + $0x18] sm:$0xff]  ;;  %v11734_v53 = vshrl.u32 %v209_v49, 7 }
   0x3   :  { %s14134_s19 = sld [smem:[#allocation3_spill]]  ;;  %9786 = vmatprep.subr.bf16.mxu0 %v10826_v7  ;;  %v57_v11 = vld [vmem:[%s14110_s2] sm:$0xff]  ;;  %v58_v16 = vld [vmem:[%s14110_s2 + $0x8] sm:$0xff]  ;;  %v10829_v26 = vld [vmem:[%s14109_s4 + $0x10] sm:$0xff]  }
   0x4   :  { %9787 = vmatpush3.bf16.msra.mxu0 %v10826_v7  ;;  %v10830_v27 = vld [vmem:[%s14109_s4 + $0x50] sm:$0xff]   ;;  %v10831_v28 = vld [vmem:[%s14109_s4 + $0x18] sm:$0xff]   ;;  %v10833_v30 = vld [vmem:[%s14109_s4 + $0x20] sm:$0xff]   ;;  %v14127_v55 = vsub.s32 0, %v11734_v53 }
   0x5   :  { %9788 = vmatprep.subr.bf16.mxu0 %v10828_v9  ;;  %v10832_v29 = vld [vmem:[%s14109_s4 + $0x58] sm:$0xff]   ;;  %v10834_v31 = vld [vmem:[%s14109_s4 + $0x60] sm:$0xff]   ;;  %v10835_v32 = vld [vmem:[%s14109_s4 + $0x28] sm:$0xff]  }
   0x6   :  { %v10836_v33 = vld [vmem:[%s14109_s4 + $0x68] sm:$0xff]   ;;  %v10837_v34 = vld [vmem:[%s14109_s4 + $0x30] sm:$0xff]   ;;  %v10839_v36 = vld [vmem:[%s14109_s4 + $0x38] sm:$0xff]  }
   0x7   :  { %v10838_v35 = vld [vmem:[%s14109_s4 + $0x70] sm:$0xff]   ;;  %v10840_v37 = vld [vmem:[%s14109_s4 + $0x78] sm:$0xff]   ;;  %v10841_v38 = vld [vmem:[%s14109_s4 + $0x80] sm:$0xff]  }
   0x8   :  { %v10819_v0 = vld [vmem:[%s14133_s26] sm:$0xff]   ;;  %v10820_v1 = vld [vmem:[%s14133_s26 + $0x8] sm:$0xff]   ;;  %v10821_v2 = vld [vmem:[%s14133_s26 + $0x10] sm:$0xff]   ;;  %9789 = vmatpush3.bf16.msra.mxu0 %v10828_v9 }
   0x9   :  { %9754 = vmatprep.subr.bf16.mxu1 %v10819_v0  ;;  %v10823_v3 = vld [vmem:[%s14134_s19] sm:$0xff]   ;;  %v10822_v4 = vld [vmem:[%s14133_s26 + $0x18] sm:$0xff]   ;;  %v10824_v5 = vld [vmem:[%s14134_s19 + $0x8] sm:$0xff]   ;;  %9790 = vmatprep.subr.bf16.mxu0 %v10830_v27 }
   0xa   :  { %9755 = vmatpush3.bf16.msra.mxu1 %v10819_v0  ;;  %9762 = vmatprep.mubr.msk.bf16.mxu1 %vm107_vm0, %v10823_v3  ;;  %v10842_v39 = vld [vmem:[%s14109_s4 + $0xc0] sm:$0xff]   ;;  %v10844_v7 = vld [vmem:[%s14109_s4 + $0xc8] sm:$0xff]   ;;  %v10845_v9 = vld [vmem:[%s14109_s4 + $0x90] sm:$0xff]  }
   0xb   :  { %9756 = vmatprep.subr.bf16.mxu1 %v10820_v1  ;;  %v179_v54 = vld [vmem:[%s14113_s12] sm:$0x3] }
   0xc   :  { %9791 = vmatpush3.bf16.msra.mxu0 %v10830_v27  ;;  %v212_v59 = vrot.slane %v179_v54, %v14127_v55  ;;  %v10859_v27 = vld [vmem:[%s14111_s5 + $0x8] sm:$0xff]   ;;  %v10881_v49 = vld [vmem:[%s14111_s5 + $0xa0] sm:$0xff]   ;;  %v10885_v54 = vld [vmem:[%s14111_s5 + $0xb0] sm:$0xff]  }
   0xd   :  { %9792 = vmatprep.subr.bf16.mxu0 %v10832_v29 }
   0xe   :  { %9757 = vmatpush3.bf16.msra.mxu1 %v10820_v1 }
   0xf   :  { %9758 = vmatprep.subr.bf16.mxu1 %v10821_v2 }
  0x10   :  { %9793 = vmatpush3.bf16.msra.mxu0 %v10832_v29  ;;  %v10861_v29 = vld [vmem:[%s14111_s5 + $0x10] sm:$0xff]  }
  0x11   :  { %9794 = vmatprep.subr.bf16.mxu0 %v10834_v31 }
  0x12   :  { %9759 = vmatpush3.bf16.msra.mxu1 %v10821_v2 }
  0x13   :  { %9760 = vmatprep.subr.bf16.mxu1 %v10822_v4 }
  0x14   :  { %9795 = vmatpush3.bf16.msra.mxu0 %v10834_v31  ;;  %v10863_v31 = vld [vmem:[%s14111_s5 + $0x18] sm:$0xff]  }
  0x15   :  { %9796 = vmatprep.subr.bf16.mxu0 %v10836_v33 }
  0x16   :  { %9761 = vmatpush3.bf16.msra.mxu1 %v10822_v4 }
  0x17   :  { %9766 = vmatprep.subr.bf16.mxu1 %v10825_v6 }
  0x18   :  { %9797 = vmatpush3.bf16.msra.mxu0 %v10836_v33  ;;  %v10865_v33 = vld [vmem:[%s14111_s5 + $0x20] sm:$0xff]  }
  0x19   :  { %9763 = vmatmul.mubr.msk.bf16.vlgmr.msra.gmra.mrb[0].mxu1 %vm107_vm0, %v10824_v5  ;;  %9798 = vmatprep.subr.bf16.mxu0 %v10838_v35 }
  0x1a   :  { %9767 = vmatpush3.bf16.msra.mxu1 %v10825_v6  ;;  %v10843_v6 = vld [vmem:[%s14109_s4 + $0x88] sm:$0xff]  }
  0x1b   :  { %9768 = vmatprep.subr.bf16.mxu1 %v10827_v8 }
  0x1c   :  { %9799 = vmatpush3.bf16.msra.mxu0 %v10838_v35  ;;  %v10867_v35 = vld [vmem:[%s14111_s5 + $0x28] sm:$0xff]  }
  0x1d   :  { %9800 = vmatprep.subr.bf16.mxu0 %v10840_v37 }
  0x1e   :  { %9769 = vmatpush3.bf16.msra.mxu1 %v10827_v8 }
  0x1f   :  { %9770 = vmatprep.subr.bf16.mxu1 %v10829_v26 }
  0x20   :  { %9801 = vmatpush3.bf16.msra.mxu0 %v10840_v37  ;;  %v10869_v37 = vld [vmem:[%s14111_s5 + $0x30] sm:$0xff]  }
  0x21   :  { %9826 = vmatprep.subr.bf16.mxu0 %v10842_v39 }
  0x22   :  { %9771 = vmatpush3.bf16.msra.mxu1 %v10829_v26  ;;  %v10858_v26 = vld [vmem:[%s14111_s5 + $0x40] sm:$0xff]  }
  0x23   :  { %9772 = vmatprep.subr.bf16.mxu1 %v10831_v28 }
  0x26   :  { %9773 = vmatpush3.bf16.msra.mxu1 %v10831_v28  ;;  %v10860_v28 = vld [vmem:[%s14111_s5 + $0x48] sm:$0xff]  }
  0x27   :  { %9774 = vmatprep.subr.bf16.mxu1 %v10833_v30 }
  0x2a   :  { %9775 = vmatpush3.bf16.msra.mxu1 %v10833_v30  ;;  %v10862_v30 = vld [vmem:[%s14111_s5 + $0x50] sm:$0xff]  }
  0x2b   :  { %9776 = vmatprep.subr.bf16.mxu1 %v10835_v32 }
  0x2e   :  { %9777 = vmatpush3.bf16.msra.mxu1 %v10835_v32  ;;  %v10864_v32 = vld [vmem:[%s14111_s5 + $0x58] sm:$0xff]  }
  0x2f   :  { %9778 = vmatprep.subr.bf16.mxu1 %v10837_v34 }
  0x32   :  { %9779 = vmatpush3.bf16.msra.mxu1 %v10837_v34  ;;  %v10866_v34 = vld [vmem:[%s14111_s5 + $0x60] sm:$0xff]  }
  0x33   :  { %9780 = vmatprep.subr.bf16.mxu1 %v10839_v36 }
  0x36   :  { %9781 = vmatpush3.bf16.msra.mxu1 %v10839_v36  ;;  %v10868_v36 = vld [vmem:[%s14111_s5 + $0x68] sm:$0xff]  }
  0x37   :  { %9806 = vmatprep.subr.bf16.mxu1 %v10841_v38 }
  0xec   :  { %v9764_v12 = vpop.f32.mrb[0].mxu1 }
  0xed   :  { %v11673_v14 = vadd.f32 %v9764_v12, %v59_v10  ;;  %v148_v15 = vpop.f32.mrb[1].mxu1  ;;  %v10846_v10 = vld [vmem:[%s14109_s4 + $0xd0] sm:$0xff]   ;;  %v10848_v12 = vld [vmem:[%s14109_s4 + $0xd8] sm:$0xff]  }
  0xee   :  { %v11678_v17 = vadd.f32 %v148_v15, %v57_v11  ;;  %v9765_v18 = vpop.f32.mrb[2].mxu1  ;;  %v10847_v11 = vld [vmem:[%s14109_s4 + $0x98] sm:$0xff]   ;;  %v10850_v15 = vld [vmem:[%s14109_s4 + $0xe0] sm:$0xff]  }
  0xef   :  { %v11680_v19 = vadd.f32 %v9765_v18, %v60_v13  ;;  %v151_v20 = vpop.f32.mrb[3].mxu1  ;;  %v182_v21 = vmul.f32 %v11673_v14, %v11673_v14  ;;  %v10849_v13 = vld [vmem:[%s14109_s4 + $0xa0] sm:$0xff]   ;;  %v10852_v18 = vld [vmem:[%s14109_s4 + $0xe8] sm:$0xff]  }
  0xf0   :  { %v11684_v22 = vadd.f32 %v151_v20, %v58_v16  ;;  %v180_v23 = vmul.f32 %v11678_v17, %v11678_v17  ;;  %v10851_v16 = vld [vmem:[%s14109_s4 + $0xa8] sm:$0xff]   ;;  %v10853_v20 = vld [vmem:[%s14109_s4 + $0xb0] sm:$0xff]  }
  0xf1   :  { %188 = vadd.xlane.f32.xlu1 %v182_v21  ;;  %v183_v24 = vmul.f32 %v11680_v19, %v11680_v19  ;;  %v10854_v21 = vld [vmem:[%s14109_s4 + $0xf0] sm:$0xff]  }
  0xf2   :  { %184 = vadd.xlane.f32.xlu0 %v180_v23  ;;  %v181_v25 = vmul.f32 %v11684_v22, %v11684_v22  ;;  %v10855_v23 = vld [vmem:[%s14109_s4 + $0xb8] sm:$0xff]  }
  0xf5   :  { %190 = vadd.xlane.f32.xlu1 %v183_v24  ;;  %v10856_v24 = vld [vmem:[%s14109_s4 + $0xf8] sm:$0xff]  }
  0xf6   :  { %186 = vadd.xlane.f32.xlu0 %v181_v25  ;;  %v10857_v25 = vld [vmem:[%s14111_s5] sm:$0xff]  }
 0x17e   :  { %v189_v40 = vpop.xlane.xlu1 %188 }
 0x17f   :  { %v195_v41 = vmul.f32 0.0078125, %v189_v40  ;;  %v185_v42 = vpop.xlane.xlu0 %184  ;;  %v10872_v40 = vld [vmem:[%s14111_s5 + $0x78] sm:$0xff]  }
 0x180   :  { %v193_v43 = vmul.f32 0.0078125, %v185_v42  ;;  %v10874_v42 = vld [vmem:[%s14111_s5 + $0xc0] sm:$0xff]  }
 0x181   :  { %v199_v44 = vadd.f32 1e-06, %v195_v41  ;;  %v10873_v41 = vld [vmem:[%s14111_s5 + $0x80] sm:$0xff]  }
 0x182   :  { %v197_v45 = vadd.f32 1e-06, %v193_v43  ;;  %v191_v46 = vpop.xlane.xlu1 %190  ;;  %v10875_v43 = vld [vmem:[%s14111_s5 + $0x88] sm:$0xff]  }
 0x183   :  { %v196_v47 = vmul.f32 0.0078125, %v191_v46  ;;  %v187_v48 = vpop.xlane.xlu0 %186  ;;  %v10878_v46 = vld [vmem:[%s14111_s5 + $0xd0] sm:$0xff]  }
 0x184   :  { %11297 = vrsqrt.f32 %v197_v45  ;;  %v194_v50 = vmul.f32 0.0078125, %v187_v48  ;;  %v10877_v45 = vld [vmem:[%s14111_s5 + $0x90] sm:$0xff]   ;;  %v10880_v48 = vld [vmem:[%s14111_s5 + $0xd8] sm:$0xff]  }
 0x185   :  { %11299 = vrsqrt.f32 %v199_v44  ;;  %v200_v51 = vadd.f32 1e-06, %v196_v47  ;;  %v10876_v44 = vld [vmem:[%s14111_s5 + $0xc8] sm:$0xff]   ;;  %v10879_v47 = vld [vmem:[%s14111_s5 + $0x98] sm:$0xff]  }
 0x186   :  { %v198_v52 = vadd.f32 1e-06, %v194_v50  ;;  %v10882_v50 = vld [vmem:[%s14111_s5 + $0xe0] sm:$0xff]  }
 0x187   :  { %11301 = vrsqrt.f32 %v200_v51  ;;  %v10883_v51 = vld [vmem:[%s14111_s5 + $0xa8] sm:$0xff]  }
 0x188   :  { %11303 = vrsqrt.f32 %v198_v52  ;;  %v10884_v52 = vld [vmem:[%s14111_s5 + $0xe8] sm:$0xff]  }
 0x18e   :  { %v11298_v56 = vpop.eup %11297 }
 0x18f   :  { %v11300_v57 = vpop.eup %11299  ;;  %v205_v60 = vmul.f32 %v11298_v56, %v11678_v17  ;;  %v10886_v56 = vld [vmem:[%s14111_s5 + $0xf0] sm:$0xff]  }
 0x190   :  { %v207_v62 = vmul.f32 %v11300_v57, %v11673_v14  ;;  %v10887_v57 = vld [vmem:[%s14111_s5 + $0xb8] sm:$0xff]  }
 0x191   :  { %v11302_v58 = vpop.eup %11301  ;;  %v213_v2 = vmul.f32 %v212_v59, %v205_v60  ;;  %v10890_v60 = vld [vmem:[%s14112_s6 + $0x40] sm:$0xff]  }
 0x192   :  { %v11304_v61 = vpop.eup %11303  ;;  %v208_v63 = vmul.f32 %v11302_v58, %v11680_v19  ;;  %v215_v4 = vmul.f32 %v212_v59, %v207_v62  ;;  %v10888_v58 = vld [vmem:[%s14111_s5 + $0xf8] sm:$0xff]   ;;  %v10892_v62 = vld [vmem:[%s14112_s6 + $0x48] sm:$0xff]  }
 0x193   :  { %v206_v0 = vmul.f32 %v11304_v61, %v11684_v22  ;;  %v10891_v61 = vld [vmem:[%s14112_s6 + $0x8] sm:$0xff]  }
 0x194   :  { %v216_v1 = vmul.f32 %v212_v59, %v208_v63  ;;  %v10893_v63 = vld [vmem:[%s14112_s6 + $0x10] sm:$0xff]  }
 0x195   :  { %v214_v3 = vmul.f32 %v212_v59, %v206_v0  ;;  %v10889_v59 = vld [vmem:[%s14112_s6] sm:$0xff]   ;;  %v10894_v0 = vld [vmem:[%s14112_s6 + $0x50] sm:$0xff]  }
 0x196   :  { %v11754_v8 = vpack.c.bf16 %v216_v1, %v215_v4  ;;  %v10895_v1 = vld [vmem:[%s14112_s6 + $0x18] sm:$0xff]   ;;  %v10898_v4 = vld [vmem:[%s14112_s6 + $0x60] sm:$0xff]  }
 0x197   :  { %v11746_v5 = vpack.c.bf16 %v214_v3, %v213_v2  ;;  %v10896_v2 = vld [vmem:[%s14112_s6 + $0x58] sm:$0xff]   ;;  %v10897_v3 = vld [vmem:[%s14112_s6 + $0x20] sm:$0xff]  }
 0x199   :  { %9782 = vmatprep.mubr.bf16.mxu1 %v11746_v5  ;;  %9802 = vmatprep.mubr.bf16.mxu0 %v11746_v5 }
 0x19a   :  { %9783 = vmatmul.mubr.bf16.vlgmr.msra.gmra.mrb[4].mxu1 %v11754_v8  ;;  %9803 = vmatmul.mubr.bf16.vlgmr.msra.gmra.mrb[0].mxu0 %v11754_v8 }
 0x19b   :  { %9807 = vmatpush3.bf16.msra.mxu1 %v10841_v38  ;;  %9827 = vmatpush3.bf16.msra.mxu0 %v10842_v39  ;;  %v10870_v38 = vld [vmem:[%s14111_s5 + $0x70] sm:$0xff]   ;;  %v10871_v39 = vld [vmem:[%s14111_s5 + $0x38] sm:$0xff]  }
 0x19c   :  { %9822 = vmatprep.mubr.bf16.mxu1 %v11746_v5  ;;  %9842 = vmatprep.mubr.bf16.mxu0 %v11746_v5 }
 0x19d   :  { %9808 = vmatprep.subr.bf16.mxu1 %v10843_v6  ;;  %9828 = vmatprep.subr.bf16.mxu0 %v10844_v7 }
 0x19f   :  { %9809 = vmatpush3.bf16.msra.mxu1 %v10843_v6  ;;  %9829 = vmatpush3.bf16.msra.mxu0 %v10844_v7  ;;  %v10899_v6 = vld [vmem:[%s14112_s6 + $0x28] sm:$0xff]  }
 0x1a0   :  { %9810 = vmatprep.subr.bf16.mxu1 %v10845_v9  ;;  %9830 = vmatprep.subr.bf16.mxu0 %v10846_v10  ;;  %v10900_v7 = vld [vmem:[%s14112_s6 + $0x68] sm:$0xff]  }
 0x1a3   :  { %9811 = vmatpush3.bf16.msra.mxu1 %v10845_v9  ;;  %9831 = vmatpush3.bf16.msra.mxu0 %v10846_v10  ;;  %v10901_v9 = vld [vmem:[%s14112_s6 + $0x30] sm:$0xff]  }
 0x1a4   :  { %9812 = vmatprep.subr.bf16.mxu1 %v10847_v11  ;;  %9832 = vmatprep.subr.bf16.mxu0 %v10848_v12  ;;  %v10902_v10 = vld [vmem:[%s14112_s6 + $0x70] sm:$0xff]  }
 0x1a7   :  { %9813 = vmatpush3.bf16.msra.mxu1 %v10847_v11  ;;  %9833 = vmatpush3.bf16.msra.mxu0 %v10848_v12  ;;  %v10903_v11 = vld [vmem:[%s14112_s6 + $0x38] sm:$0xff]  }
 0x1a8   :  { %9814 = vmatprep.subr.bf16.mxu1 %v10849_v13  ;;  %9834 = vmatprep.subr.bf16.mxu0 %v10850_v15  ;;  %v10904_v12 = vld [vmem:[%s14112_s6 + $0x78] sm:$0xff]  }
 0x1ab   :  { %9815 = vmatpush3.bf16.msra.mxu1 %v10849_v13  ;;  %9835 = vmatpush3.bf16.msra.mxu0 %v10850_v15  ;;  %v10905_v13 = vld [vmem:[%s14112_s6 + $0x80] sm:$0xff]  }
 0x1ac   :  { %9816 = vmatprep.subr.bf16.mxu1 %v10851_v16  ;;  %9836 = vmatprep.subr.bf16.mxu0 %v10852_v18  ;;  %v10906_v15 = vld [vmem:[%s14112_s6 + $0xc0] sm:$0xff]  }
 0x1af   :  { %9817 = vmatpush3.bf16.msra.mxu1 %v10851_v16  ;;  %9837 = vmatpush3.bf16.msra.mxu0 %v10852_v18  ;;  %v10907_v16 = vld [vmem:[%s14112_s6 + $0x88] sm:$0xff]  }
 0x1b0   :  { %9818 = vmatprep.subr.bf16.mxu1 %v10853_v20  ;;  %9838 = vmatprep.subr.bf16.mxu0 %v10854_v21  ;;  %v10908_v18 = vld [vmem:[%s14112_s6 + $0xc8] sm:$0xff]  }
 0x1b3   :  { %9819 = vmatpush3.bf16.msra.mxu1 %v10853_v20  ;;  %9839 = vmatpush3.bf16.msra.mxu0 %v10854_v21  ;;  %v10909_v20 = vld [vmem:[%s14112_s6 + $0x90] sm:$0xff]  }
 0x1b4   :  { %9820 = vmatprep.subr.bf16.mxu1 %v10855_v23  ;;  %9840 = vmatprep.subr.bf16.mxu0 %v10856_v24  ;;  %v10910_v21 = vld [vmem:[%s14112_s6 + $0xd0] sm:$0xff]  }
 0x1b7   :  { %9821 = vmatpush3.bf16.msra.mxu1 %v10855_v23  ;;  %9841 = vmatpush3.bf16.msra.mxu0 %v10856_v24  ;;  %v10911_v23 = vld [vmem:[%s14112_s6 + $0x98] sm:$0xff]  }
 0x1b8   :  { %9846 = vmatprep.subr.bf16.mxu1 %v10857_v25  ;;  %9866 = vmatprep.subr.bf16.mxu0 %v10858_v26  ;;  %v10912_v24 = vld [vmem:[%s14112_s6 + $0xd8] sm:$0xff]  }
 0x1ba   :  { %9823 = vmatmul.mubr.bf16.vlgmr.msra.gmra.mrb[8].mxu1 %v11754_v8  ;;  %9843 = vmatmul.mubr.bf16.vlgmr.msra.gmra.mrb[4].mxu0 %v11754_v8 }
 0x1bb   :  { %9847 = vmatpush3.bf16.msra.mxu1 %v10857_v25  ;;  %9862 = vmatprep.mubr.bf16.mxu1 %v11746_v5  ;;  %v10913_v25 = vld [vmem:[%s14112_s6 + $0xa0] sm:$0xff]  }
 0x1bc   :  { %9867 = vmatpush3.bf16.msra.mxu0 %v10858_v26  ;;  %9882 = vmatprep.mubr.bf16.mxu0 %v11746_v5  ;;  %v10914_v26 = vld [vmem:[%s14112_s6 + $0xe0] sm:$0xff]  }
 0x1bd   :  { %9848 = vmatprep.subr.bf16.mxu1 %v10859_v27  ;;  %9868 = vmatprep.subr.bf16.mxu0 %v10860_v28 }
 0x1bf   :  { %9849 = vmatpush3.bf16.msra.mxu1 %v10859_v27  ;;  %v10915_v27 = vld [vmem:[%s14112_s6 + $0xa8] sm:$0xff]  }
 0x1c0   :  { %9869 = vmatpush3.bf16.msra.mxu0 %v10860_v28  ;;  %9850 = vmatprep.subr.bf16.mxu1 %v10861_v29  ;;  %v10916_v28 = vld [vmem:[%s14112_s6 + $0xe8] sm:$0xff]  }
 0x1c1   :  { %9870 = vmatprep.subr.bf16.mxu0 %v10862_v30 }
 0x1c3   :  { %9851 = vmatpush3.bf16.msra.mxu1 %v10861_v29  ;;  %v10917_v29 = vld [vmem:[%s14112_s6 + $0xb0] sm:$0xff]  }
 0x1c4   :  { %9871 = vmatpush3.bf16.msra.mxu0 %v10862_v30  ;;  %9852 = vmatprep.subr.bf16.mxu1 %v10863_v31  ;;  %v10918_v30 = vld [vmem:[%s14112_s6 + $0xf0] sm:$0xff]  }
 0x1c5   :  { %9872 = vmatprep.subr.bf16.mxu0 %v10864_v32 }
 0x1c7   :  { %9853 = vmatpush3.bf16.msra.mxu1 %v10863_v31  ;;  %v10919_v31 = vld [vmem:[%s14112_s6 + $0xb8] sm:$0xff]  }
 0x1c8   :  { %9873 = vmatpush3.bf16.msra.mxu0 %v10864_v32  ;;  %9854 = vmatprep.subr.bf16.mxu1 %v10865_v33  ;;  %v10920_v32 = vld [vmem:[%s14112_s6 + $0xf8] sm:$0xff]  }
 0x1c9   :  { %9874 = vmatprep.subr.bf16.mxu0 %v10866_v34 }
 0x1cb   :  { %9855 = vmatpush3.bf16.msra.mxu1 %v10865_v33  ;;  %v10921_v33 = vld [vmem:[%s14114_s7] sm:$0xff]  }
 0x1cc   :  { %9875 = vmatpush3.bf16.msra.mxu0 %v10866_v34  ;;  %9856 = vmatprep.subr.bf16.mxu1 %v10867_v35  ;;  %v10922_v34 = vld [vmem:[%s14114_s7 + $0x40] sm:$0xff]  }
 0x1cd   :  { %9876 = vmatprep.subr.bf16.mxu0 %v10868_v36 }
 0x1cf   :  { %9857 = vmatpush3.bf16.msra.mxu1 %v10867_v35  ;;  %v10923_v35 = vld [vmem:[%s14114_s7 + $0x8] sm:$0xff]  }
 0x1d0   :  { %9877 = vmatpush3.bf16.msra.mxu0 %v10868_v36  ;;  %9858 = vmatprep.subr.bf16.mxu1 %v10869_v37  ;;  %v10924_v36 = vld [vmem:[%s14114_s7 + $0x48] sm:$0xff]  }
 0x1d1   :  { %9878 = vmatprep.subr.bf16.mxu0 %v10870_v38 }
 0x1d3   :  { %9859 = vmatpush3.bf16.msra.mxu1 %v10869_v37  ;;  %v10925_v37 = vld [vmem:[%s14114_s7 + $0x10] sm:$0xff]  }
 0x1d4   :  { %9879 = vmatpush3.bf16.msra.mxu0 %v10870_v38  ;;  %9860 = vmatprep.subr.bf16.mxu1 %v10871_v39  ;;  %v10926_v38 = vld [vmem:[%s14114_s7 + $0x50] sm:$0xff]  }
 0x1d5   :  { %9880 = vmatprep.subr.bf16.mxu0 %v10872_v40 }
 0x1d7   :  { %9861 = vmatpush3.bf16.msra.mxu1 %v10871_v39  ;;  %v10927_v39 = vld [vmem:[%s14114_s7 + $0x18] sm:$0xff]  }
 0x1d8   :  { %9881 = vmatpush3.bf16.msra.mxu0 %v10872_v40  ;;  %9886 = vmatprep.subr.bf16.mxu1 %v10873_v41  ;;  %v10928_v40 = vld [vmem:[%s14114_s7 + $0x58] sm:$0xff]  }
 0x1d9   :  { %9906 = vmatprep.subr.bf16.mxu0 %v10874_v42 }
 0x1da   :  { %9863 = vmatmul.mubr.bf16.vlgmr.msra.gmra.mrb[12].mxu1 %v11754_v8 }
 0x1db   :  { %9883 = vmatmul.mubr.bf16.vlgmr.msra.gmra.mrb[8].mxu0 %v11754_v8  ;;  %9887 = vmatpush3.bf16.msra.mxu1 %v10873_v41  ;;  %v10929_v41 = vld [vmem:[%s14114_s7 + $0x20] sm:$0xff]  }
 0x1dc   :  { %9902 = vmatprep.mubr.bf16.mxu1 %v11746_v5  ;;  %9907 = vmatpush3.bf16.msra.mxu0 %v10874_v42  ;;  %v10930_v42 = vld [vmem:[%s14114_s7 + $0x60] sm:$0xff]  }
 0x1dd   :  { %9922 = vmatprep.mubr.bf16.mxu0 %v11746_v5  ;;  %9888 = vmatprep.subr.bf16.mxu1 %v10875_v43 }
 0x1de   :  { %9908 = vmatprep.subr.bf16.mxu0 %v10876_v44 }
 0x1df   :  { %9889 = vmatpush3.bf16.msra.mxu1 %v10875_v43  ;;  %v10931_v43 = vld [vmem:[%s14114_s7 + $0x28] sm:$0xff]  }
 0x1e0   :  { %9909 = vmatpush3.bf16.msra.mxu0 %v10876_v44  ;;  %9890 = vmatprep.subr.bf16.mxu1 %v10877_v45  ;;  %v10932_v44 = vld [vmem:[%s14114_s7 + $0x68] sm:$0xff]  }
 0x1e1   :  { %9910 = vmatprep.subr.bf16.mxu0 %v10878_v46 }
 0x1e3   :  { %9891 = vmatpush3.bf16.msra.mxu1 %v10877_v45  ;;  %v10933_v45 = vld [vmem:[%s14114_s7 + $0x30] sm:$0xff]  }
 0x1e4   :  { %9911 = vmatpush3.bf16.msra.mxu0 %v10878_v46  ;;  %9892 = vmatprep.subr.bf16.mxu1 %v10879_v47  ;;  %v10934_v46 = vld [vmem:[%s14114_s7 + $0x70] sm:$0xff]  }
 0x1e5   :  { %9912 = vmatprep.subr.bf16.mxu0 %v10880_v48 }
 0x1e7   :  { %9893 = vmatpush3.bf16.msra.mxu1 %v10879_v47  ;;  %v10935_v47 = vld [vmem:[%s14114_s7 + $0x38] sm:$0xff]  }
 0x1e8   :  { %9913 = vmatpush3.bf16.msra.mxu0 %v10880_v48  ;;  %9894 = vmatprep.subr.bf16.mxu1 %v10881_v49  ;;  %v10936_v48 = vld [vmem:[%s14114_s7 + $0x78] sm:$0xff]  }
 0x1e9   :  { %9914 = vmatprep.subr.bf16.mxu0 %v10882_v50 }
 0x1eb   :  { %9895 = vmatpush3.bf16.msra.mxu1 %v10881_v49  ;;  %v10937_v49 = vld [vmem:[%s14114_s7 + $0x80] sm:$0xff]  }
 0x1ec   :  { %9915 = vmatpush3.bf16.msra.mxu0 %v10882_v50  ;;  %9896 = vmatprep.subr.bf16.mxu1 %v10883_v51  ;;  %v10938_v50 = vld [vmem:[%s14114_s7 + $0xc0] sm:$0xff]  }
 0x1ed   :  { %9916 = vmatprep.subr.bf16.mxu0 %v10884_v52 }
 0x1ef   :  { %9897 = vmatpush3.bf16.msra.mxu1 %v10883_v51  ;;  %v10939_v51 = vld [vmem:[%s14114_s7 + $0x88] sm:$0xff]  }
 0x1f0   :  { %9917 = vmatpush3.bf16.msra.mxu0 %v10884_v52  ;;  %9898 = vmatprep.subr.bf16.mxu1 %v10885_v54  ;;  %v10940_v52 = vld [vmem:[%s14114_s7 + $0xc8] sm:$0xff]  }
 0x1f1   :  { %9918 = vmatprep.subr.bf16.mxu0 %v10886_v56 }
 0x1f3   :  { %9899 = vmatpush3.bf16.msra.mxu1 %v10885_v54  ;;  %v10941_v54 = vld [vmem:[%s14114_s7 + $0x90] sm:$0xff]  }
 0x1f4   :  { %9919 = vmatpush3.bf16.msra.mxu0 %v10886_v56  ;;  %9900 = vmatprep.subr.bf16.mxu1 %v10887_v57  ;;  %v10942_v56 = vld [vmem:[%s14114_s7 + $0xd0] sm:$0xff]  }
 0x1f5   :  { %9920 = vmatprep.subr.bf16.mxu0 %v10888_v58 }
 0x1f7   :  { %9901 = vmatpush3.bf16.msra.mxu1 %v10887_v57  ;;  %v10943_v57 = vld [vmem:[%s14114_s7 + $0x98] sm:$0xff]  }
 0x1f8   :  { %9921 = vmatpush3.bf16.msra.mxu0 %v10888_v58  ;;  %9926 = vmatprep.subr.bf16.mxu1 %v10889_v59  ;;  %v10944_v58 = vld [vmem:[%s14114_s7 + $0xd8] sm:$0xff]  }
 0x1f9   :  { %9946 = vmatprep.subr.bf16.mxu0 %v10890_v60 }
 0x1fa   :  { %9903 = vmatmul.mubr.bf16.vlgmr.msra.gmra.mrb[16].mxu1 %v11754_v8 }
 0x1fb   :  { %9923 = vmatmul.mubr.bf16.vlgmr.msra.gmra.mrb[12].mxu0 %v11754_v8  ;;  %9927 = vmatpush3.bf16.msra.mxu1 %v10889_v59  ;;  %v10945_v59 = vld [vmem:[%s14114_s7 + $0xa0] sm:$0xff]  }
 0x1fc   :  { %9942 = vmatprep.mubr.bf16.mxu1 %v11746_v5  ;;  %9947 = vmatpush3.bf16.msra.mxu0 %v10890_v60  ;;  %v10946_v60 = vld [vmem:[%s14114_s7 + $0xe0] sm:$0xff]  }
 0x1fd   :  { %9962 = vmatprep.mubr.bf16.mxu0 %v11746_v5  ;;  %9928 = vmatprep.subr.bf16.mxu1 %v10891_v61 }
 0x1fe   :  { %9948 = vmatprep.subr.bf16.mxu0 %v10892_v62 }
 0x1ff   :  { %9929 = vmatpush3.bf16.msra.mxu1 %v10891_v61  ;;  %v10947_v61 = vld [vmem:[%s14114_s7 + $0xa8] sm:$0xff]  }
 0x200   :  { %9949 = vmatpush3.bf16.msra.mxu0 %v10892_v62  ;;  %9930 = vmatprep.subr.bf16.mxu1 %v10893_v63  ;;  %v10948_v62 = vld [vmem:[%s14114_s7 + $0xe8] sm:$0xff]  }
 0x201   :  { %9950 = vmatprep.subr.bf16.mxu0 %v10894_v0 }
 0x203   :  { %9931 = vmatpush3.bf16.msra.mxu1 %v10893_v63  ;;  %v10949_v63 = vld [vmem:[%s14114_s7 + $0xb0] sm:$0xff]  }
 0x204   :  { %9951 = vmatpush3.bf16.msra.mxu0 %v10894_v0  ;;  %9932 = vmatprep.subr.bf16.mxu1 %v10895_v1 }
 0x205   :  { %9952 = vmatprep.subr.bf16.mxu0 %v10896_v2 }
 0x207   :  { %9933 = vmatpush3.bf16.msra.mxu1 %v10895_v1 }
 0x208   :  { %9953 = vmatpush3.bf16.msra.mxu0 %v10896_v2  ;;  %9934 = vmatprep.subr.bf16.mxu1 %v10897_v3  ;;  %v10950_v2 = vld [vmem:[%s14114_s7 + $0xf0] sm:$0xff]  }
 0x209   :  { %9954 = vmatprep.subr.bf16.mxu0 %v10898_v4 }
 0x20b   :  { %9935 = vmatpush3.bf16.msra.mxu1 %v10897_v3 }
 0x20c   :  { %9955 = vmatpush3.bf16.msra.mxu0 %v10898_v4  ;;  %9936 = vmatprep.subr.bf16.mxu1 %v10899_v6 }
 0x20d   :  { %9956 = vmatprep.subr.bf16.mxu0 %v10900_v7 }
 0x20f   :  { %9937 = vmatpush3.bf16.msra.mxu1 %v10899_v6 }
 0x210   :  { %9957 = vmatpush3.bf16.msra.mxu0 %v10900_v7  ;;  %9938 = vmatprep.subr.bf16.mxu1 %v10901_v9 }
 0x211   :  { %9958 = vmatprep.subr.bf16.mxu0 %v10902_v10 }
 0x213   :  { %9939 = vmatpush3.bf16.msra.mxu1 %v10901_v9 }
 0x214   :  { %9959 = vmatpush3.bf16.msra.mxu0 %v10902_v10  ;;  %9940 = vmatprep.subr.bf16.mxu1 %v10903_v11 }
 0x215   :  { %9960 = vmatprep.subr.bf16.mxu0 %v10904_v12 }
 0x217   :  { %9941 = vmatpush3.bf16.msra.mxu1 %v10903_v11  ;;  %v10951_v11 = vld [vmem:[%s14114_s7 + $0xb8] sm:$0xff]  }
 0x218   :  { %9961 = vmatpush3.bf16.msra.mxu0 %v10904_v12  ;;  %9966 = vmatprep.subr.bf16.mxu1 %v10905_v13  ;;  %v10952_v12 = vld [vmem:[%s14114_s7 + $0xf8] sm:$0xff]  }
 0x219   :  { %9986 = vmatprep.subr.bf16.mxu0 %v10906_v15 }
 0x21a   :  { %9943 = vmatmul.mubr.bf16.vlgmr.msra.gmra.mrb[20].mxu1 %v11754_v8 }
 0x21b   :  { %9963 = vmatmul.mubr.bf16.vlgmr.msra.gmra.mrb[16].mxu0 %v11754_v8  ;;  %9967 = vmatpush3.bf16.msra.mxu1 %v10905_v13  ;;  %v10953_v13 = vld [vmem:[%s14115_s8] sm:$0xff]  }
 0x21c   :  { %9982 = vmatprep.mubr.bf16.mxu1 %v11746_v5  ;;  %9987 = vmatpush3.bf16.msra.mxu0 %v10906_v15  ;;  %v10954_v15 = vld [vmem:[%s14115_s8 + $0x40] sm:$0xff]  }
 0x21d   :  { %10002 = vmatprep.mubr.bf16.mxu0 %v11746_v5  ;;  %9968 = vmatprep.subr.bf16.mxu1 %v10907_v16 }
 0x21e   :  { %9988 = vmatprep.subr.bf16.mxu0 %v10908_v18 }
 0x21f   :  { %9969 = vmatpush3.bf16.msra.mxu1 %v10907_v16  ;;  %v10955_v16 = vld [vmem:[%s14115_s8 + $0x8] sm:$0xff]  }
 0x220   :  { %9989 = vmatpush3.bf16.msra.mxu0 %v10908_v18  ;;  %9970 = vmatprep.subr.bf16.mxu1 %v10909_v20  ;;  %v10956_v18 = vld [vmem:[%s14115_s8 + $0x48] sm:$0xff]  }
 0x221   :  { %9990 = vmatprep.subr.bf16.mxu0 %v10910_v21 }
 0x223   :  { %9971 = vmatpush3.bf16.msra.mxu1 %v10909_v20  ;;  %v10957_v20 = vld [vmem:[%s14115_s8 + $0x10] sm:$0xff]  }
 0x224   :  { %9991 = vmatpush3.bf16.msra.mxu0 %v10910_v21  ;;  %9972 = vmatprep.subr.bf16.mxu1 %v10911_v23  ;;  %v10958_v21 = vld [vmem:[%s14115_s8 + $0x50] sm:$0xff]  }
 0x225   :  { %9992 = vmatprep.subr.bf16.mxu0 %v10912_v24 }
 0x227   :  { %9973 = vmatpush3.bf16.msra.mxu1 %v10911_v23  ;;  %v10959_v23 = vld [vmem:[%s14115_s8 + $0x18] sm:$0xff]  }
 0x228   :  { %9993 = vmatpush3.bf16.msra.mxu0 %v10912_v24  ;;  %9974 = vmatprep.subr.bf16.mxu1 %v10913_v25  ;;  %v10960_v24 = vld [vmem:[%s14115_s8 + $0x58] sm:$0xff]  }
 0x229   :  { %9994 = vmatprep.subr.bf16.mxu0 %v10914_v26 }
 0x22b   :  { %9975 = vmatpush3.bf16.msra.mxu1 %v10913_v25  ;;  %v10961_v25 = vld [vmem:[%s14115_s8 + $0x20] sm:$0xff]  }
 0x22c   :  { %9995 = vmatpush3.bf16.msra.mxu0 %v10914_v26  ;;  %9976 = vmatprep.subr.bf16.mxu1 %v10915_v27  ;;  %v10962_v26 = vld [vmem:[%s14115_s8 + $0x60] sm:$0xff]  }
 0x22d   :  { %9996 = vmatprep.subr.bf16.mxu0 %v10916_v28 }
 0x22f   :  { %9977 = vmatpush3.bf16.msra.mxu1 %v10915_v27  ;;  %v10963_v27 = vld [vmem:[%s14115_s8 + $0x28] sm:$0xff]  }
 0x230   :  { %9997 = vmatpush3.bf16.msra.mxu0 %v10916_v28  ;;  %9978 = vmatprep.subr.bf16.mxu1 %v10917_v29  ;;  %v10964_v28 = vld [vmem:[%s14115_s8 + $0x68] sm:$0xff]  }
 0x231   :  { %9998 = vmatprep.subr.bf16.mxu0 %v10918_v30 }
 0x233   :  { %9979 = vmatpush3.bf16.msra.mxu1 %v10917_v29  ;;  %v10965_v29 = vld [vmem:[%s14115_s8 + $0x30] sm:$0xff]  }
 0x234   :  { %9999 = vmatpush3.bf16.msra.mxu0 %v10918_v30  ;;  %9980 = vmatprep.subr.bf16.mxu1 %v10919_v31 }
 0x235   :  { %10000 = vmatprep.subr.bf16.mxu0 %v10920_v32 }
 0x237   :  { %9981 = vmatpush3.bf16.msra.mxu1 %v10919_v31 }
 0x238   :  { %10001 = vmatpush3.bf16.msra.mxu0 %v10920_v32  ;;  %10006 = vmatprep.subr.bf16.mxu1 %v10921_v33  ;;  %v10966_v32 = vld [vmem:[%s14115_s8 + $0x70] sm:$0xff]  }
 0x239   :  { %10026 = vmatprep.subr.bf16.mxu0 %v10922_v34 }
 0x23a   :  { %9983 = vmatmul.mubr.bf16.vlgmr.msra.gmra.mrb[24].mxu1 %v11754_v8 }
 0x23b   :  { %10003 = vmatmul.mubr.bf16.vlgmr.msra.gmra.mrb[20].mxu0 %v11754_v8  ;;  %10007 = vmatpush3.bf16.msra.mxu1 %v10921_v33 }
 0x23c   :  { %10022 = vmatprep.mubr.bf16.mxu1 %v11746_v5  ;;  %10027 = vmatpush3.bf16.msra.mxu0 %v10922_v34 }
 0x23d   :  { %10042 = vmatprep.mubr.bf16.mxu0 %v11746_v5  ;;  %10008 = vmatprep.subr.bf16.mxu1 %v10923_v35 }
 0x23e   :  { %10028 = vmatprep.subr.bf16.mxu0 %v10924_v36 }
 0x23f   :  { %10009 = vmatpush3.bf16.msra.mxu1 %v10923_v35 }
 0x240   :  { %10029 = vmatpush3.bf16.msra.mxu0 %v10924_v36  ;;  %10010 = vmatprep.subr.bf16.mxu1 %v10925_v37 }
 0x241   :  { %10030 = vmatprep.subr.bf16.mxu0 %v10926_v38 }
 0x243   :  { %10011 = vmatpush3.bf16.msra.mxu1 %v10925_v37 }
 0x244   :  { %10031 = vmatpush3.bf16.msra.mxu0 %v10926_v38  ;;  %10012 = vmatprep.subr.bf16.mxu1 %v10927_v39 }
 0x245   :  { %10032 = vmatprep.subr.bf16.mxu0 %v10928_v40 }
 0x247   :  { %10013 = vmatpush3.bf16.msra.mxu1 %v10927_v39  ;;  %v10967_v39 = vld [vmem:[%s14115_s8 + $0x38] sm:$0xff]  }
 0x248   :  { %10033 = vmatpush3.bf16.msra.mxu0 %v10928_v40  ;;  %10014 = vmatprep.subr.bf16.mxu1 %v10929_v41  ;;  %v10968_v40 = vld [vmem:[%s14115_s8 + $0x78] sm:$0xff]  }
 0x249   :  { %10034 = vmatprep.subr.bf16.mxu0 %v10930_v42 }
 0x24b   :  { %10015 = vmatpush3.bf16.msra.mxu1 %v10929_v41  ;;  %v10969_v41 = vld [vmem:[%s14115_s8 + $0x80] sm:$0xff]  }
 0x24c   :  { %10035 = vmatpush3.bf16.msra.mxu0 %v10930_v42  ;;  %10016 = vmatprep.subr.bf16.mxu1 %v10931_v43  ;;  %v10970_v42 = vld [vmem:[%s14115_s8 + $0xc0] sm:$0xff]  }
 0x24d   :  { %10036 = vmatprep.subr.bf16.mxu0 %v10932_v44 }
 0x24f   :  { %10017 = vmatpush3.bf16.msra.mxu1 %v10931_v43  ;;  %v10971_v43 = vld [vmem:[%s14115_s8 + $0x88] sm:$0xff]  }
 0x250   :  { %10037 = vmatpush3.bf16.msra.mxu0 %v10932_v44  ;;  %10018 = vmatprep.subr.bf16.mxu1 %v10933_v45  ;;  %v10972_v44 = vld [vmem:[%s14115_s8 + $0xc8] sm:$0xff]  }
 0x251   :  { %10038 = vmatprep.subr.bf16.mxu0 %v10934_v46 }
 0x253   :  { %10019 = vmatpush3.bf16.msra.mxu1 %v10933_v45  ;;  %v10973_v45 = vld [vmem:[%s14115_s8 + $0x90] sm:$0xff]  }
 0x254   :  { %10039 = vmatpush3.bf16.msra.mxu0 %v10934_v46  ;;  %10020 = vmatprep.subr.bf16.mxu1 %v10935_v47  ;;  %v10974_v46 = vld [vmem:[%s14115_s8 + $0xd0] sm:$0xff]  }
 0x255   :  { %10040 = vmatprep.subr.bf16.mxu0 %v10936_v48 }
 0x257   :  { %10021 = vmatpush3.bf16.msra.mxu1 %v10935_v47  ;;  %v10975_v47 = vld [vmem:[%s14115_s8 + $0x98] sm:$0xff]  }
 0x258   :  { %10041 = vmatpush3.bf16.msra.mxu0 %v10936_v48  ;;  %10046 = vmatprep.subr.bf16.mxu1 %v10937_v49  ;;  %v10976_v48 = vld [vmem:[%s14115_s8 + $0xd8] sm:$0xff]  }
 0x259   :  { %10066 = vmatprep.subr.bf16.mxu0 %v10938_v50 }
 0x25a   :  { %10023 = vmatmul.mubr.bf16.vlgmr.msra.gmra.mrb[28].mxu1 %v11754_v8 }
 0x25b   :  { %10043 = vmatmul.mubr.bf16.vlgmr.msra.gmra.mrb[24].mxu0 %v11754_v8  ;;  %10047 = vmatpush3.bf16.msra.mxu1 %v10937_v49  ;;  %v10978_v49 = vld [vmem:[%s14115_s8 + $0xe0] sm:$0xff]  }
 0x25c   :  { %10062 = vmatprep.mubr.bf16.mxu1 %v11746_v5  ;;  %10067 = vmatpush3.bf16.msra.mxu0 %v10938_v50  ;;  %v10979_v50 = vld [vmem:[%s14115_s8 + $0xa8] sm:$0xff]  }
 0x25d   :  { %10082 = vmatprep.mubr.bf16.mxu0 %v11746_v5  ;;  %10048 = vmatprep.subr.bf16.mxu1 %v10939_v51 }
 0x25e   :  { %10068 = vmatprep.subr.bf16.mxu0 %v10940_v52 }
 0x25f   :  { %10049 = vmatpush3.bf16.msra.mxu1 %v10939_v51  ;;  %v10980_v51 = vld [vmem:[%s14115_s8 + $0xe8] sm:$0xff]  }
 0x260   :  { %10069 = vmatpush3.bf16.msra.mxu0 %v10940_v52  ;;  %10050 = vmatprep.subr.bf16.mxu1 %v10941_v54  ;;  %v12237_v52 = vld [vmem:[%s14116_s14 + $0x10] sm:$0xff] }
 0x261   :  { %10070 = vmatprep.subr.bf16.mxu0 %v10942_v56 }
 0x263   :  { %10051 = vmatpush3.bf16.msra.mxu1 %v10941_v54  ;;  %v12242_v54 = vld [vmem:[%s14116_s14] sm:$0xff] }
 0x264   :  { %10071 = vmatpush3.bf16.msra.mxu0 %v10942_v56  ;;  %10052 = vmatprep.subr.bf16.mxu1 %v10943_v57  ;;  %v12247_v56 = vld [vmem:[%s14116_s14 + $0x18] sm:$0xff] }
 0x265   :  { %10072 = vmatprep.subr.bf16.mxu0 %v10944_v58 }
 0x267   :  { %10053 = vmatpush3.bf16.msra.mxu1 %v10943_v57  ;;  %v12252_v57 = vld [vmem:[%s14117_s15 + $0x10] sm:$0xff] }
 0x268   :  { %10073 = vmatpush3.bf16.msra.mxu0 %v10944_v58  ;;  %10054 = vmatprep.subr.bf16.mxu1 %v10945_v59  ;;  %v12257_v58 = vld [vmem:[%s14116_s14 + $0x8] sm:$0xff] }
 0x269   :  { %10074 = vmatprep.subr.bf16.mxu0 %v10946_v60 }
 0x26b   :  { %10055 = vmatpush3.bf16.msra.mxu1 %v10945_v59  ;;  %v12262_v59 = vld [vmem:[%s14117_s15] sm:$0xff] }
 0x26c   :  { %10075 = vmatpush3.bf16.msra.mxu0 %v10946_v60  ;;  %10056 = vmatprep.subr.bf16.mxu1 %v10947_v61  ;;  %v10981_v60 = vld [vmem:[%s14115_s8 + $0xb0] sm:$0xff]  }
 0x26d   :  { %v12101_v0 = vpop.f32.mrb[4].mxu1  ;;  %v12103_v1 = vpop.f32.mrb[0].mxu0  ;;  %10076 = vmatprep.subr.bf16.mxu0 %v10948_v62 }
 0x26e   :  { %v12108_v3 = vpop.f32.mrb[5].mxu1  ;;  %v12110_v4 = vpop.f32.mrb[1].mxu0 }
 0x26f   :  { %10057 = vmatpush3.bf16.msra.mxu1 %v10947_v61  ;;  %v12112_v6 = vpop.f32.mrb[6].mxu1  ;;  %v12114_v7 = vpop.f32.mrb[2].mxu0  ;;  %v673_v61 = vmul.f32 %v12101_v0, %v12237_v52  ;;  %v675_v0 = vmul.f32 %v12110_v4, %v12242_v54 }
 0x270   :  { %10077 = vmatpush3.bf16.msra.mxu0 %v10948_v62  ;;  %v12116_v9 = vpop.f32.mrb[7].mxu1  ;;  %v12118_v10 = vpop.f32.mrb[3].mxu0  ;;  %10058 = vmatprep.subr.bf16.mxu1 %v10949_v63  ;;  %v677_v62 = vmul.f32 %v12103_v1, %v12237_v52  ;;  %v674_v1 = vmul.f32 %v12112_v6, %v12247_v56 }
 0x271   :  { %10078 = vmatprep.subr.bf16.mxu0 %v10950_v2 }
 0x273   :  { %10059 = vmatpush3.bf16.msra.mxu1 %v10949_v63 }
 0x274   :  { %10079 = vmatpush3.bf16.msra.mxu0 %v10950_v2  ;;  %10060 = vmatprep.subr.bf16.mxu1 %v10951_v11  ;;  %v12274_v2 = vld [vmem:[%s14117_s15 + $0x18] sm:$0xff] }
 0x275   :  { %10080 = vmatprep.subr.bf16.mxu0 %v10952_v12 }
 0x277   :  { %10061 = vmatpush3.bf16.msra.mxu1 %v10951_v11  ;;  %v10982_v11 = vld [vmem:[%s14115_s8 + $0xf0] sm:$0xff]  }
 0x278   :  { %10081 = vmatpush3.bf16.msra.mxu0 %v10952_v12  ;;  %10086 = vmatprep.subr.bf16.mxu1 %v10953_v13  ;;  %v671_v12 = vmul.f32 %v12108_v3, %v12242_v54  ;;  %v672_v3 = vmul.f32 %v12116_v9, %v12257_v58 }
 0x279   :  { %10106 = vmatprep.subr.bf16.mxu0 %v10954_v15 }
 0x27a   :  { %10063 = vmatmul.mubr.bf16.vlgmr.msra.gmra.mrb[32].mxu1 %v11754_v8 }
 0x27b   :  { %10083 = vmatmul.mubr.bf16.vlgmr.msra.gmra.mrb[28].mxu0 %v11754_v8  ;;  %10087 = vmatpush3.bf16.msra.mxu1 %v10953_v13 }
 0x27c   :  { %10102 = vmatprep.mubr.bf16.mxu1 %v11746_v5  ;;  %10107 = vmatpush3.bf16.msra.mxu0 %v10954_v15 }
 0x27d   :  { %10122 = vmatprep.mubr.bf16.mxu0 %v11746_v5  ;;  %10088 = vmatprep.subr.bf16.mxu1 %v10955_v16 }
 0x27e   :  { %10108 = vmatprep.subr.bf16.mxu0 %v10956_v18 }
 0x27f   :  { %10089 = vmatpush3.bf16.msra.mxu1 %v10955_v16 }
 0x280   :  { %10109 = vmatpush3.bf16.msra.mxu0 %v10956_v18  ;;  %10090 = vmatprep.subr.bf16.mxu1 %v10957_v20  ;;  %v12289_v18 = vld [vmem:[%s14117_s15 + $0x8] sm:$0xff] }
 0x281   :  { %10110 = vmatprep.subr.bf16.mxu0 %v10958_v21 }
 0x283   :  { %10091 = vmatpush3.bf16.msra.mxu1 %v10957_v20  ;;  %v678_v20 = vmul.f32 %v12114_v7, %v12247_v56  ;;  %v10983_v7 = vld [vmem:[%s14115_s8 + $0xb8] sm:$0xff]  }
 0x284   :  { %10111 = vmatpush3.bf16.msra.mxu0 %v10958_v21  ;;  %10092 = vmatprep.subr.bf16.mxu1 %v10959_v23 }
 0x285   :  { %10112 = vmatprep.subr.bf16.mxu0 %v10960_v24 }
 0x287   :  { %10093 = vmatpush3.bf16.msra.mxu1 %v10959_v23 }
 0x288   :  { %10113 = vmatpush3.bf16.msra.mxu0 %v10960_v24  ;;  %10094 = vmatprep.subr.bf16.mxu1 %v10961_v25 }
 0x289   :  { %10114 = vmatprep.subr.bf16.mxu0 %v10962_v26 }
 0x28b   :  { %10095 = vmatpush3.bf16.msra.mxu1 %v10961_v25 }
 0x28c   :  { %10115 = vmatpush3.bf16.msra.mxu0 %v10962_v26  ;;  %10096 = vmatprep.subr.bf16.mxu1 %v10963_v27 }
 0x28d   :  { %v12169_v30 = vpop.f32.mrb[8].mxu1  ;;  %v12171_v31 = vpop.f32.mrb[4].mxu0  ;;  %10116 = vmatprep.subr.bf16.mxu0 %v10964_v28 }
 0x28e   :  { %v12176_v33 = vpop.f32.mrb[9].mxu1  ;;  %v12178_v34 = vpop.f32.mrb[5].mxu0 }
 0x28f   :  { %v12180_v35 = vpop.f32.mrb[10].mxu1  ;;  %v12182_v36 = vpop.f32.mrb[6].mxu0  ;;  %10097 = vmatpush3.bf16.msra.mxu1 %v10963_v27 }
 0x290   :  { %10117 = vmatpush3.bf16.msra.mxu0 %v10964_v28  ;;  %v12184_v37 = vpop.f32.mrb[11].mxu1  ;;  %v12186_v38 = vpop.f32.mrb[7].mxu0  ;;  %10098 = vmatprep.subr.bf16.mxu1 %v10965_v29 }
 0x291   :  { %10118 = vmatprep.subr.bf16.mxu0 %v10966_v32 }
 0x293   :  { %10099 = vmatpush3.bf16.msra.mxu1 %v10965_v29 }
 0x294   :  { %10119 = vmatpush3.bf16.msra.mxu0 %v10966_v32  ;;  %10100 = vmatprep.subr.bf16.mxu1 %v10967_v39 }
 0x295   :  { %10120 = vmatprep.subr.bf16.mxu0 %v10968_v40 }
 0x297   :  { %10101 = vmatpush3.bf16.msra.mxu1 %v10967_v39 }
 0x298   :  { %10121 = vmatpush3.bf16.msra.mxu0 %v10968_v40  ;;  %10126 = vmatprep.subr.bf16.mxu1 %v10969_v41 }
 0x299   :  { %10146 = vmatprep.subr.bf16.mxu0 %v10970_v42 }
 0x29a   :  { %10103 = vmatmul.mubr.bf16.vlgmr.msra.gmra.mrb[36].mxu1 %v11754_v8 }
 0x29b   :  { %10123 = vmatmul.mubr.bf16.vlgmr.msra.gmra.mrb[32].mxu0 %v11754_v8  ;;  %10127 = vmatpush3.bf16.msra.mxu1 %v10969_v41  ;;  %v10984_v41 = vld [vmem:[%s14115_s8 + $0xf8] sm:$0xff]  }
 0x29c   :  { %10142 = vmatprep.mubr.bf16.mxu1 %v11746_v5  ;;  %10147 = vmatpush3.bf16.msra.mxu0 %v10970_v42  ;;  %v676_v42 = vmul.f32 %v12118_v10, %v12257_v58 }
 0x29d   :  { %10162 = vmatprep.mubr.bf16.mxu0 %v11746_v5  ;;  %10128 = vmatprep.subr.bf16.mxu1 %v10971_v43  ;;  %v10977_v5 = vld [vmem:[%s14115_s8 + $0xa0] sm:$0xff]  }
 0x29e   :  { %10148 = vmatprep.subr.bf16.mxu0 %v10972_v44 }
 0x29f   :  { %10129 = vmatpush3.bf16.msra.mxu1 %v10971_v43 }
 0x2a0   :  { %10149 = vmatpush3.bf16.msra.mxu0 %v10972_v44  ;;  %10130 = vmatprep.subr.bf16.mxu1 %v10973_v45 }
 0x2a1   :  { %10150 = vmatprep.subr.bf16.mxu0 %v10974_v46 }
 0x2a3   :  { %10131 = vmatpush3.bf16.msra.mxu1 %v10973_v45 }
 0x2a4   :  { %10151 = vmatpush3.bf16.msra.mxu0 %v10974_v46  ;;  %10132 = vmatprep.subr.bf16.mxu1 %v10975_v47 }
 0x2a5   :  { %10152 = vmatprep.subr.bf16.mxu0 %v10976_v48 }
 0x2a7   :  { %10133 = vmatpush3.bf16.msra.mxu1 %v10975_v47 }
 0x2a8   :  { %10153 = vmatpush3.bf16.msra.mxu0 %v10976_v48  ;;  %10134 = vmatprep.subr.bf16.mxu1 %v10977_v5 }
 0x2a9   :  { %10154 = vmatprep.subr.bf16.mxu0 %v10978_v49 }
 0x2ab   :  { %10135 = vmatpush3.bf16.msra.mxu1 %v10977_v5 }
 0x2ac   :  { %10155 = vmatpush3.bf16.msra.mxu0 %v10978_v49  ;;  %10136 = vmatprep.subr.bf16.mxu1 %v10979_v50 }
 0x2ad   :  { %v9864_v63 = vpop.f32.mrb[12].mxu1  ;;  %10156 = vmatprep.subr.bf16.mxu0 %v10980_v51 }
 0x2ae   :  { %v1141_v13 = vmul.f32 %v9864_v63, %v12252_v57  ;;  %v9884_v15 = vpop.f32.mrb[8].mxu0  ;;  %v833_v16 = vpop.f32.mrb[13].mxu1  ;;  %v683_v63 = vmul.f32 %v12178_v34, %v12242_v54 }
 0x2af   :  { %v1145_v4 = vmul.f32 %v9884_v15, %v12252_v57  ;;  %v1139_v21 = vmul.f32 %v833_v16, %v12262_v59  ;;  %v930_v6 = vpop.f32.mrb[9].mxu0  ;;  %v9865_v23 = vpop.f32.mrb[14].mxu1  ;;  %10137 = vmatpush3.bf16.msra.mxu1 %v10979_v50 }
 0x2b0   :  { %v12297_v24 = vadd.f32 %v1141_v13, %v673_v61  ;;  %v1143_v25 = vmul.f32 %v930_v6, %v12262_v59  ;;  %v1142_v26 = vmul.f32 %v9865_v23, %v12274_v2  ;;  %v9885_v27 = vpop.f32.mrb[10].mxu0  ;;  %10157 = vmatpush3.bf16.msra.mxu0 %v10980_v51  ;;  %v836_v28 = vpop.f32.mrb[15].mxu1  ;;  %10138 = vmatprep.subr.bf16.mxu1 %v10981_v60 }
 0x2b1   :  { %v12304_v9 = vadd.f32 %v1145_v4, %v677_v62  ;;  %v1155_v29 = vadd.f32 %v1139_v21, %v671_v12  ;;  %v1146_v32 = vmul.f32 %v9885_v27, %v12274_v2  ;;  %v1140_v39 = vmul.f32 %v836_v28, %v12289_v18  ;;  %v933_v40 = vpop.f32.mrb[11].mxu0  ;;  %10158 = vmatprep.subr.bf16.mxu0 %v10982_v11 }
 0x2b2   :  { %v1159_v43 = vadd.f32 %v1143_v25, %v675_v0  ;;  %v12313_v44 = vadd.f32 %v1142_v26, %v674_v1  ;;  %v1144_v45 = vmul.f32 %v933_v40, %v12289_v18  ;;  %v681_v51 = vmul.f32 %v12169_v30, %v12237_v52 }
 0x2b3   :  { %v12316_v46 = vadd.f32 %v1146_v32, %v678_v20  ;;  %v1156_v47 = vadd.f32 %v1140_v39, %v672_v3  ;;  %10139 = vmatpush3.bf16.msra.mxu1 %v10981_v60  ;;  %v685_v61 = vmul.f32 %v12171_v31, %v12237_v52  ;;  %v679_v62 = vmul.f32 %v12176_v33, %v12242_v54 }
 0x2b4   :  { %v2576_v48 = vpack.c.bf16 %v12313_v44, %v12297_v24  ;;  %v1160_v5 = vadd.f32 %v1144_v45, %v676_v42  ;;  %10159 = vmatpush3.bf16.msra.mxu0 %v10982_v11  ;;  %10140 = vmatprep.subr.bf16.mxu1 %v10983_v7  ;;  %v682_v0 = vmul.f32 %v12180_v35, %v12247_v56 }
 0x2b5   :  { %v2575_v50 = vpack.c.bf16 %v1156_v47, %v1155_v29  ;;  %10160 = vmatprep.subr.bf16.mxu0 %v10984_v41  ;;  %v686_v30 = vmul.f32 %v12182_v36, %v12247_v56  ;;  %v680_v33 = vmul.f32 %v12184_v37, %v12257_v58  ;;  %v684_v37 = vmul.f32 %v12186_v38, %v12257_v58 }
 0x2b6   :  { %v2577_v10 = vpack.c.bf16 %v1160_v5, %v1159_v43 }
 0x2b7   :  { %10141 = vmatpush3.bf16.msra.mxu1 %v10983_v7 }
 0x2b8   :  { %10161 = vmatpush3.bf16.msra.mxu0 %v10984_v41 }
 0x2ba   :  { %10143 = vmatmul.mubr.bf16.vlgmr.msra.gmra.mrb[40].mxu1 %v11754_v8 }
 0x2bb   :  { %10163 = vmatmul.mubr.bf16.vlgmr.msra.gmra.mrb[36].mxu0 %v11754_v8  ;;  %10170 = vmatprep.mubr.msk.bf16.mxu1 %vm2591_vm1, %v2575_v50 }
 0x2bc   :  { %10178 = vmatprep.mubr.msk.bf16.mxu0 %vm2591_vm1, %v2577_v10 }
 0x2cd   :  { %v9904_v60 = vpop.f32.mrb[16].mxu1 }
 0x2ce   :  { %v1149_v11 = vmul.f32 %v9904_v60, %v12252_v57  ;;  %v9924_v8 = vpop.f32.mrb[12].mxu0  ;;  %v1027_v12 = vpop.f32.mrb[17].mxu1 }
 0x2cf   :  { %v1153_v1 = vmul.f32 %v9924_v8, %v12252_v57  ;;  %v1147_v31 = vmul.f32 %v1027_v12, %v12262_v59  ;;  %v1124_v13 = vpop.f32.mrb[13].mxu0  ;;  %v9905_v15 = vpop.f32.mrb[18].mxu1 }
 0x2d0   :  { %v12343_v34 = vadd.f32 %v1149_v11, %v681_v51  ;;  %v1151_v16 = vmul.f32 %v1124_v13, %v12262_v59  ;;  %v1150_v20 = vmul.f32 %v9905_v15, %v12274_v2  ;;  %v9925_v3 = vpop.f32.mrb[14].mxu0  ;;  %v1030_v35 = vpop.f32.mrb[19].mxu1 }
 0x2d1   :  { %v12347_v4 = vadd.f32 %v1153_v1, %v685_v61  ;;  %v12349_v36 = vadd.f32 %v1147_v31, %v679_v62  ;;  %v1154_v21 = vmul.f32 %v9925_v3, %v12274_v2  ;;  %v1148_v6 = vmul.f32 %v1030_v35, %v12289_v18  ;;  %v1127_v23 = vpop.f32.mrb[15].mxu0 }
 0x2d2   :  { %v12355_v25 = vadd.f32 %v1151_v16, %v683_v63  ;;  %v12357_v26 = vadd.f32 %v1150_v20, %v682_v0  ;;  %v1152_v27 = vmul.f32 %v1127_v23, %v12289_v18 }
 0x2d3   :  { %v12360_v28 = vadd.f32 %v1154_v21, %v686_v30  ;;  %v12362_v7 = vadd.f32 %v1148_v6, %v680_v33 }
 0x2d4   :  { %v12366_v32 = vadd.f32 %v1152_v27, %v684_v37 }
 0x2ed   :  { %v9944_v41 = vpop.f32.mrb[20].mxu1 }
 0x2ee   :  { %v9964_v42 = vpop.f32.mrb[16].mxu0  ;;  %v1317_v43 = vpop.f32.mrb[21].mxu1  ;;  %v1625_v0 = vmul.f32 %v9944_v41, %v12237_v52 }
 0x2ef   :  { %v1414_v45 = vpop.f32.mrb[17].mxu0  ;;  %v9945_v47 = vpop.f32.mrb[22].mxu1  ;;  %v1629_v1 = vmul.f32 %v9964_v42, %v12237_v52  ;;  %v1623_v31 = vmul.f32 %v1317_v43, %v12242_v54 }
 0x2f0   :  { %v9965_v5 = vpop.f32.mrb[18].mxu0  ;;  %v1320_v50 = vpop.f32.mrb[23].mxu1  ;;  %v1627_v13 = vmul.f32 %v1414_v45, %v12242_v54  ;;  %v1626_v20 = vmul.f32 %v9945_v47, %v12247_v56 }
 0x2f1   :  { %v1417_v10 = vpop.f32.mrb[19].mxu0  ;;  %v1630_v3 = vmul.f32 %v9965_v5, %v12247_v56  ;;  %v1624_v37 = vmul.f32 %v1320_v50, %v12257_v58 }
 0x30d   :  { %v9984_v51 = vpop.f32.mrb[24].mxu1 }
 0x30e   :  { %v10004_v60 = vpop.f32.mrb[20].mxu0  ;;  %v1511_v61 = vpop.f32.mrb[25].mxu1 }
 0x30f   :  { %v1608_v62 = vpop.f32.mrb[21].mxu0  ;;  %v12374_v63 = vpop.f32.mrb[26].mxu1  ;;  %v1637_v44 = vmul.f32 %v10004_v60, %v12237_v52 }
 0x310   :  { %v12376_v11 = vpop.f32.mrb[22].mxu0  ;;  %v12378_v8 = vpop.f32.mrb[27].mxu1 }
 0x311   :  { %v12380_v12 = vpop.f32.mrb[23].mxu0  ;;  %v1632_v60 = vmul.f32 %v12378_v8, %v12257_v58 }
 0x32d   :  { %v10024_v30 = vpop.f32.mrb[28].mxu1 }
 0x32e   :  { %v2093_v15 = vmul.f32 %v10024_v30, %v12252_v57  ;;  %v10044_v33 = vpop.f32.mrb[24].mxu0  ;;  %v1785_v16 = vpop.f32.mrb[29].mxu1 }
 0x32f   :  { %v2097_v35 = vmul.f32 %v10044_v33, %v12252_v57  ;;  %v2091_v21 = vmul.f32 %v1785_v16, %v12262_v59  ;;  %v1882_v6 = vpop.f32.mrb[25].mxu0  ;;  %v10025_v23 = vpop.f32.mrb[30].mxu1  ;;  %v1628_v16 = vmul.f32 %v1417_v10, %v12257_v58 }
 0x330   :  { %v2109_v27 = vadd.f32 %v2093_v15, %v1625_v0  ;;  %v2095_v41 = vmul.f32 %v1882_v6, %v12262_v59  ;;  %v2094_v42 = vmul.f32 %v10025_v23, %v12274_v2  ;;  %v10045_v43 = vpop.f32.mrb[26].mxu0  ;;  %v1788_v45 = vpop.f32.mrb[31].mxu1 }
 0x331   :  { %v2113_v30 = vadd.f32 %v2097_v35, %v1629_v1  ;;  %v2107_v55 = vadd.f32 %v2091_v21, %v1623_v31  ;;  %v2098_v47 = vmul.f32 %v10045_v43, %v12274_v2  ;;  %v2092_v5 = vmul.f32 %v1788_v45, %v12289_v18  ;;  %v1885_v33 = vpop.f32.mrb[27].mxu0 }
 0x332   :  { %v2111_v39 = vadd.f32 %v2095_v41, %v1627_v13  ;;  %v2110_v29 = vadd.f32 %v2094_v42, %v1626_v20  ;;  %v2096_v50 = vmul.f32 %v1885_v33, %v12289_v18  ;;  %v1636_v21 = vmul.f32 %v12380_v12, %v12257_v58 }
 0x333   :  { %v2114_v0 = vadd.f32 %v2098_v47, %v1630_v3  ;;  %v2108_v15 = vadd.f32 %v2092_v5, %v1624_v37  ;;  %v14138_v5 = vpack.c.bf16 %v12357_v26, %v12343_v34  ;;  %v14139_v33 = vpack.c.bf16 %v12360_v28, %v12347_v4 }
 0x334   :  { %v2584_v6 = vpack.c.bf16 %v2110_v29, %v2109_v27  ;;  %v2112_v40 = vadd.f32 %v2096_v50, %v1628_v16 }
 0x335   :  { %v2586_v23 = vpack.c.bf16 %v2114_v0, %v2113_v30  ;;  %v2583_v38 = vpack.c.bf16 %v2108_v15, %v2107_v55 }
 0x336   :  { %v2585_v49 = vpack.c.bf16 %v2112_v40, %v2111_v39  ;;  %v2602_v29 = vsel %vm2591_vm1, %v2584_v6, 0  ;;  %v14135_v39 = vpack.c.bf16 %v12316_v46, %v12304_v9  ;;  %v1633_v40 = vmul.f32 %v9984_v51, %v12237_v52 }
 0x337   :  { %10802 = vmatprep.subr.msk.bf16.mxu1 %vm2591_vm1, %v2583_v38  ;;  %v2599_v1 = vsel %vm2591_vm1, %v2583_v38, 0  ;;  %v2663_v55 = vsel %vm2591_vm1, %v2586_v23, 0  ;;  %v14137_v38 = vpack.c.bf16 %v12366_v32, %v12355_v25  ;;  %v1635_v9 = vmul.f32 %v1608_v62, %v12242_v54 }
 0x338   :  { %10804 = vmatprep.subr.msk.bf16.mxu0 %vm2591_vm1, %v2585_v49  ;;  %10167 = vmatpush3.bf16.xpose.msra.mxu1 %v2599_v1  ;;  %v2660_v10 = vsel %vm2591_vm1, %v2585_v49, 0  ;;  %v14136_v49 = vpack.c.bf16 %v12362_v7, %v12349_v36  ;;  %v1634_v7 = vmul.f32 %v12374_v63, %v12247_v56  ;;  %v1638_v25 = vmul.f32 %v12376_v11, %v12247_v56 }
 0x339   :  { %10175 = vmatpush3.bf16.xpose.msra.mxu0 %v2660_v10  ;;  %10803 = vmatprep.subr.msk.bf16.mxu1 %vm2591_vm1, %v2584_v6 }
 0x33a   :  { %10805 = vmatprep.subr.msk.bf16.mxu0 %vm2591_vm1, %v2586_v23 }
 0x340   :  { %10169 = vmatpush3.bf16.xpose.msra.mxu1 %v2602_v29 }
 0x341   :  { %10177 = vmatpush3.bf16.xpose.msra.mxu0 %v2663_v55 }
 0x347   :  { %10171 = vmatmul.mubr.msk.bf16.vlgmr.msra.gmra.mrb[44].mxu1 %vm2591_vm1, %v2576_v48  ;;  %v1631_v48 = vmul.f32 %v1511_v61, %v12242_v54 }
 0x348   :  { %10179 = vmatmul.mubr.msk.bf16.vlgmr.msra.gmra.mrb[40].mxu0 %vm2591_vm1, %v14135_v39  ;;  %10186 = vmatprep.mubr.msk.bf16.mxu1 %vm2591_vm1, %v14136_v49 }
 0x349   :  { %10194 = vmatprep.mubr.msk.bf16.mxu0 %vm2591_vm1, %v14137_v38 }
 0x34d   :  { %v10064_v24 = vpop.f32.mrb[32].mxu1 }
 0x34e   :  { %v2101_v46 = vmul.f32 %v10064_v24, %v12252_v57  ;;  %v10084_v31 = vpop.f32.mrb[28].mxu0  ;;  %v1979_v36 = vpop.f32.mrb[33].mxu1 }
 0x34f   :  { %v2105_v32 = vmul.f32 %v10084_v31, %v12252_v57  ;;  %v2099_v51 = vmul.f32 %v1979_v36, %v12262_v59  ;;  %v2076_v13 = vpop.f32.mrb[29].mxu0  ;;  %v10065_v52 = vpop.f32.mrb[34].mxu1  ;;  %v167_v36 = vld [vmem:[%s14118_s1] sm:$0xff] }
 0x350   :  { %v2117_v54 = vadd.f32 %v2101_v46, %v1633_v40  ;;  %v2103_v61 = vmul.f32 %v2076_v13, %v12262_v59  ;;  %v2102_v62 = vmul.f32 %v10065_v52, %v12274_v2  ;;  %v10085_v20 = vpop.f32.mrb[30].mxu0  ;;  %v1982_v3 = vpop.f32.mrb[35].mxu1  ;;  %v168_v13 = vld [vmem:[%s14118_s1 + $0x8] sm:$0xff] }
 0x351   :  { %v2121_v63 = vadd.f32 %v2105_v32, %v1637_v44  ;;  %v2115_v35 = vadd.f32 %v2099_v51, %v1631_v48  ;;  %v2106_v56 = vmul.f32 %v10085_v20, %v12274_v2  ;;  %v2100_v57 = vmul.f32 %v1982_v3, %v12289_v18  ;;  %v2079_v11 = vpop.f32.mrb[31].mxu0 }
 0x352   :  { %v2119_v37 = vadd.f32 %v2103_v61, %v1635_v9  ;;  %v2118_v27 = vadd.f32 %v2102_v62, %v1634_v7  ;;  %v2104_v8 = vmul.f32 %v2079_v11, %v12289_v18  ;;  %v170_v61 = vld [vmem:[%s14118_s1 + $0x18] sm:$0xff] }
 0x353   :  { %v2122_v41 = vadd.f32 %v2106_v56, %v1638_v25  ;;  %v2116_v59 = vadd.f32 %v2100_v57, %v1632_v60  ;;  %v169_v25 = vld [vmem:[%s14118_s1 + $0x10] sm:$0xff] }
 0x354   :  { %v2588_v42 = vpack.c.bf16 %v2118_v27, %v2117_v54  ;;  %v2120_v43 = vadd.f32 %v2104_v8, %v1636_v21 }
 0x355   :  { %v2590_v45 = vpack.c.bf16 %v2122_v41, %v2121_v63  ;;  %v2587_v30 = vpack.c.bf16 %v2116_v59, %v2115_v35 }
 0x356   :  { %v2589_v47 = vpack.c.bf16 %v2120_v43, %v2119_v37  ;;  %v2724_v18 = vsel %vm2591_vm1, %v2588_v42, 0 }
 0x357   :  { %10806 = vmatprep.subr.msk.bf16.mxu1 %vm2591_vm1, %v2587_v30  ;;  %v2721_v2 = vsel %vm2591_vm1, %v2587_v30, 0  ;;  %v2785_v12 = vsel %vm2591_vm1, %v2590_v45, 0 }
 0x358   :  { %10808 = vmatprep.subr.msk.bf16.mxu0 %vm2591_vm1, %v2589_v47  ;;  %10183 = vmatpush3.bf16.xpose.msra.mxu1 %v2721_v2  ;;  %v2782_v58 = vsel %vm2591_vm1, %v2589_v47, 0 }
 0x359   :  { %10191 = vmatpush3.bf16.xpose.msra.mxu0 %v2782_v58  ;;  %10807 = vmatprep.subr.msk.bf16.mxu1 %vm2591_vm1, %v2588_v42 }
 0x35a   :  { %10809 = vmatprep.subr.msk.bf16.mxu0 %vm2591_vm1, %v2590_v45 }
 0x360   :  { %10185 = vmatpush3.bf16.xpose.msra.mxu1 %v2724_v18 }
 0x361   :  { %10193 = vmatpush3.bf16.xpose.msra.mxu0 %v2785_v12 }
 0x367   :  { %10187 = vmatmul.mubr.msk.bf16.vlgmr.msra.gmra.mrb[48].mxu1 %vm2591_vm1, %v14138_v5 }
 0x368   :  { %10195 = vmatmul.mubr.msk.bf16.vlgmr.msra.gmra.mrb[44].mxu0 %vm2591_vm1, %v14139_v33 }
 0x36d   :  { %v10104_v16 = vpop.f32.mrb[36].mxu1 }
 0x36e   :  { %v10124_v50 = vpop.f32.mrb[32].mxu0  ;;  %v2269_v0 = vpop.f32.mrb[37].mxu1 }
 0x36f   :  { %v2366_v15 = vpop.f32.mrb[33].mxu0  ;;  %v10105_v6 = vpop.f32.mrb[38].mxu1 }
 0x370   :  { %v3021_v23 = vpack.c.bf16 %v10105_v6, %v10104_v16  ;;  %v10125_v1 = vpop.f32.mrb[34].mxu0  ;;  %v2272_v10 = vpop.f32.mrb[39].mxu1 }
 0x371   :  { %v12458_v29 = vpack.c.bf16 %v10125_v1, %v10124_v50  ;;  %v3020_v55 = vpack.c.bf16 %v2272_v10, %v2269_v0  ;;  %v2369_v39 = vpop.f32.mrb[35].mxu0 }
 0x372   :  { %v12460_v34 = vpack.c.bf16 %v2369_v39, %v2366_v15 }
 0x373   :  { %10198 = vmatprep.subr.bf16.mxu1 %v3020_v55 }
 0x374   :  { %10199 = vmatpush3.bf16.msra.mxu1 %v3020_v55 }
 0x375   :  { %10200 = vmatprep.subr.bf16.mxu1 %v3021_v23 }
 0x378   :  { %10201 = vmatpush3.bf16.msra.mxu1 %v3021_v23 }
 0x379   :  { %10206 = vmatprep.subr.bf16.mxu1 %v12460_v34 }
 0x38d   :  { %v10144_v4 = vpop.f32.mrb[40].mxu1 }
 0x38e   :  { %v10164_v26 = vpop.f32.mrb[36].mxu0  ;;  %v2463_v28 = vpop.f32.mrb[41].mxu1 }
 0x38f   :  { %v2560_v49 = vpop.f32.mrb[37].mxu0  ;;  %v10145_v38 = vpop.f32.mrb[42].mxu1 }
 0x390   :  { %v3025_v40 = vpack.c.bf16 %v10145_v38, %v10144_v4  ;;  %v10165_v24 = vpop.f32.mrb[38].mxu0  ;;  %v2466_v44 = vpop.f32.mrb[43].mxu1 }
 0x391   :  { %v12463_v48 = vpack.c.bf16 %v10165_v24, %v10164_v26  ;;  %v3024_v9 = vpack.c.bf16 %v2466_v44, %v2463_v28  ;;  %v2563_v46 = vpop.f32.mrb[39].mxu0 }
 0x392   :  { %v12465_v31 = vpack.c.bf16 %v2563_v46, %v2560_v49 }
 0x393   :  { %10214 = vmatprep.subr.bf16.mxu0 %v3024_v9 }
 0x394   :  { %10215 = vmatpush3.bf16.msra.mxu0 %v3024_v9 }
 0x395   :  { %10216 = vmatprep.subr.bf16.mxu0 %v3025_v40 }
 0x398   :  { %10217 = vmatpush3.bf16.msra.mxu0 %v3025_v40 }
 0x41a   :  { %v10172_v7 = vpop.f32.mrb[44].mxu1 }
 0x41b   :  { %v10180_v32 = vpop.f32.mrb[40].mxu0  ;;  %v2638_v51 = vpop.f32.mrb[45].mxu1  ;;  %v12481_v3 = vadd.f32 %v10172_v7, %v169_v25 }
 0x41c   :  { %v12476_v52 = vadd.f32 %v2638_v51, %v167_v36  ;;  %v2699_v60 = vpop.f32.mrb[41].mxu0  ;;  %v10173_v54 = vpop.f32.mrb[46].mxu1  ;;  %v12496_v41 = vadd.f32 %v10180_v32, %v169_v25 }
 0x41d   :  { %v10181_v62 = vpop.f32.mrb[42].mxu0  ;;  %v2641_v20 = vpop.f32.mrb[47].mxu1  ;;  %v12485_v57 = vadd.f32 %v10173_v54, %v170_v61  ;;  %v12488_v21 = vadd.f32 %v2699_v60, %v167_v36  ;;  %v2842_v37 = vsel %vm2591_vm1, %v12481_v3, -inf }
 0x41e   :  { %v2642_v63 = vadd.f32 %v2641_v20, %v168_v13  ;;  %v2702_v35 = vpop.f32.mrb[43].mxu0  ;;  %v2836_v56 = vsel %vm2591_vm1, %v12476_v52, -inf  ;;  %v12500_v42 = vadd.f32 %v10181_v62, %v170_v61  ;;  %v2854_v45 = vsel %vm2591_vm1, %v12496_v41, -inf }
 0x41f   :  { %2837 = vmax.xlane.f32.xlu0 %v2836_v56  ;;  %v12492_v27 = vadd.f32 %v2702_v35, %v168_v13  ;;  %v2845_v8 = vsel %vm2591_vm1, %v12485_v57, -inf  ;;  %v2848_v59 = vsel %vm2591_vm1, %v12488_v21, -inf }
 0x420   :  { %v2839_v11 = vsel %vm2591_vm1, %v2642_v63, -inf  ;;  %v2857_v30 = vsel %vm2591_vm1, %v12500_v42, -inf }
 0x421   :  { %2840 = vmax.xlane.f32.xlu1 %v2839_v11  ;;  %v2851_v43 = vsel %vm2591_vm1, %v12492_v27, -inf }
 0x423   :  { %2843 = vmax.xlane.f32.xlu0 %v2842_v37 }
 0x425   :  { %2846 = vmax.xlane.f32.xlu1 %v2845_v8 }
 0x427   :  { %2849 = vmax.xlane.f32.xlu0 %v2848_v59 }
 0x429   :  { %2852 = vmax.xlane.f32.xlu1 %v2851_v43 }
 0x42b   :  { %2855 = vmax.xlane.f32.xlu0 %v2854_v45 }
 0x42d   :  { %2858 = vmax.xlane.f32.xlu1 %v2857_v30 }
 0x43a   :  { %v10188_v47 = vpop.f32.mrb[48].mxu1 }
 0x43b   :  { %v10196_v2 = vpop.f32.mrb[44].mxu0  ;;  %v2760_v58 = vpop.f32.mrb[49].mxu1  ;;  %v12510_v50 = vadd.f32 %v10188_v47, %v169_v25 }
 0x43c   :  { %v12508_v18 = vadd.f32 %v2760_v58, %v167_v36  ;;  %v2821_v12 = vpop.f32.mrb[45].mxu0  ;;  %v10189_v5 = vpop.f32.mrb[50].mxu1  ;;  %v12528_v26 = vadd.f32 %v10196_v2, %v169_v25 }
 0x43d   :  { %v10197_v33 = vpop.f32.mrb[46].mxu0  ;;  %v2763_v16 = vpop.f32.mrb[51].mxu1  ;;  %v12516_v23 = vadd.f32 %v10189_v5, %v170_v61  ;;  %v12520_v10 = vadd.f32 %v2821_v12, %v167_v36  ;;  %v2866_v55 = vsel %vm2591_vm1, %v12510_v50, -inf }
 0x43e   :  { %v12512_v0 = vadd.f32 %v2763_v16, %v168_v13  ;;  %v2824_v15 = vpop.f32.mrb[47].mxu0  ;;  %v2860_v6 = vsel %vm2591_vm1, %v12508_v18, -inf  ;;  %v12532_v49 = vadd.f32 %v10197_v33, %v170_v61  ;;  %v2878_v40 = vsel %vm2591_vm1, %v12528_v26, -inf }
 0x43f   :  { %2861 = vmax.xlane.f32.xlu0 %v2860_v6  ;;  %v12524_v39 = vadd.f32 %v2824_v15, %v168_v13  ;;  %v2869_v4 = vsel %vm2591_vm1, %v12516_v23, -inf  ;;  %v2872_v28 = vsel %vm2591_vm1, %v12520_v10, -inf }
 0x440   :  { %v2863_v1 = vsel %vm2591_vm1, %v12512_v0, -inf  ;;  %v2881_v24 = vsel %vm2591_vm1, %v12532_v49, -inf }
 0x441   :  { %2864 = vmax.xlane.f32.xlu1 %v2863_v1  ;;  %v2875_v38 = vsel %vm2591_vm1, %v12524_v39, -inf }
 0x443   :  { %2867 = vmax.xlane.f32.xlu0 %v2866_v55 }
 0x445   :  { %2870 = vmax.xlane.f32.xlu1 %v2869_v4 }
 0x447   :  { %2873 = vmax.xlane.f32.xlu0 %v2872_v28 }
 0x449   :  { %2876 = vmax.xlane.f32.xlu1 %v2875_v38 }
 0x44b   :  { %2879 = vmax.xlane.f32.xlu0 %v2878_v40 }
 0x44d   :  { %2882 = vmax.xlane.f32.xlu1 %v2881_v24 }
 0x4ac   :  { %v2838_v44 = vpop.xlane.xlu0 %2837 }
 0x4ad   :  { %v2884_v9 = vsub.f32 %v12476_v52, %v2838_v44 }
 0x4ae   :  { %v2841_v46 = vpop.xlane.xlu1 %2840 }
 0x4af   :  { %v2900_v36 = vmul.f32 1.442695, %v2884_v9  ;;  %v2885_v7 = vsub.f32 %v2642_v63, %v2841_v46 }
 0x4b0   :  { %v2844_v25 = vpop.xlane.xlu0 %2843 }
 0x4b1   :  { %11305 = vpow2.f32 %v2900_v36  ;;  %v2902_v32 = vmul.f32 1.442695, %v2885_v7  ;;  %v2886_v51 = vsub.f32 %v12481_v3, %v2844_v25 }
 0x4b2   :  { %v2847_v13 = vpop.xlane.xlu1 %2846 }
 0x4b3   :  { %11307 = vpow2.f32 %v2902_v32  ;;  %v2904_v60 = vmul.f32 1.442695, %v2886_v51  ;;  %v2887_v54 = vsub.f32 %v12485_v57, %v2847_v13 }
 0x4b4   :  { %v2850_v61 = vpop.xlane.xlu0 %2849 }
 0x4b5   :  { %11309 = vpow2.f32 %v2904_v60  ;;  %v2906_v62 = vmul.f32 1.442695, %v2887_v54  ;;  %v2888_v20 = vsub.f32 %v12488_v21, %v2850_v61 }
 0x4b6   :  { %v2853_v35 = vpop.xlane.xlu1 %2852 }
 0x4b7   :  { %11311 = vpow2.f32 %v2906_v62  ;;  %v2908_v52 = vmul.f32 1.442695, %v2888_v20  ;;  %v2889_v63 = vsub.f32 %v12492_v27, %v2853_v35 }
 0x4b8   :  { %v2856_v56 = vpop.xlane.xlu0 %2855 }
 0x4b9   :  { %11313 = vpow2.f32 %v2908_v52  ;;  %v2910_v11 = vmul.f32 1.442695, %v2889_v63  ;;  %v2890_v3 = vsub.f32 %v12496_v41, %v2856_v56 }
 0x4ba   :  { %v2859_v37 = vpop.xlane.xlu1 %2858 }
 0x4bb   :  { %v12546_v8 = vpop.eup %11305  ;;  %11315 = vpow2.f32 %v2910_v11  ;;  %v2912_v57 = vmul.f32 1.442695, %v2890_v3  ;;  %v2891_v59 = vsub.f32 %v12500_v42, %v2859_v37 }
 0x4bc   :  { %v2932_v21 = vsel %vm2591_vm1, %v12546_v8, 0.0 }
 0x4bd   :  { %v12551_v43 = vpop.eup %11307  ;;  %11317 = vpow2.f32 %v2912_v57  ;;  %v2914_v45 = vmul.f32 1.442695, %v2891_v59  ;;  %2933 = vadd.xlane.f32.xlu0 %v2932_v21 }
 0x4be   :  { %v2935_v27 = vsel %vm2591_vm1, %v12551_v43, 0.0 }
 0x4bf   :  { %v12555_v30 = vpop.eup %11309  ;;  %11319 = vpow2.f32 %v2914_v45  ;;  %2936 = vadd.xlane.f32.xlu1 %v2935_v27  ;;  %v12622_v27 = vld [vmem:[%s14119_s9] sm:$0xff]  }
 0x4c0   :  { %v2938_v41 = vsel %vm2591_vm1, %v12555_v30, 0.0  ;;  %10230 = vmatprep.subr.bf16.mxu0 %v12622_v27 }
 0x4c1   :  { %v12559_v47 = vpop.eup %11311  ;;  %2939 = vadd.xlane.f32.xlu0 %v2938_v41 }
 0x4c2   :  { %v2941_v42 = vsel %vm2591_vm1, %v12559_v47, 0.0 }
 0x4c3   :  { %v12563_v2 = vpop.eup %11313  ;;  %2942 = vadd.xlane.f32.xlu1 %v2941_v42 }
 0x4c4   :  { %v2944_v58 = vsel %vm2591_vm1, %v12563_v2, 0.0 }
 0x4c5   :  { %v12567_v12 = vpop.eup %11315  ;;  %2945 = vadd.xlane.f32.xlu0 %v2944_v58 }
 0x4c6   :  { %v2947_v5 = vsel %vm2591_vm1, %v12567_v12, 0.0 }
 0x4c7   :  { %v12571_v33 = vpop.eup %11317  ;;  %2948 = vadd.xlane.f32.xlu1 %v2947_v5 }
 0x4c8   :  { %v2950_v16 = vsel %vm2591_vm1, %v12571_v33, 0.0 }
 0x4c9   :  { %v12575_v15 = vpop.eup %11319  ;;  %2951 = vadd.xlane.f32.xlu0 %v2950_v16 }
 0x4ca   :  { %v2953_v6 = vsel %vm2591_vm1, %v12575_v15, 0.0 }
 0x4cb   :  { %2954 = vadd.xlane.f32.xlu1 %v2953_v6 }
 0x4cc   :  { %v2862_v1 = vpop.xlane.xlu0 %2861 }
 0x4cd   :  { %v2892_v55 = vsub.f32 %v12508_v18, %v2862_v1 }
 0x4ce   :  { %v2865_v4 = vpop.xlane.xlu1 %2864 }
 0x4cf   :  { %v2916_v28 = vmul.f32 1.442695, %v2892_v55  ;;  %v2893_v38 = vsub.f32 %v12512_v0, %v2865_v4 }
 0x4d0   :  { %v2868_v40 = vpop.xlane.xlu0 %2867 }
 0x4d1   :  { %11321 = vpow2.f32 %v2916_v28  ;;  %v2918_v24 = vmul.f32 1.442695, %v2893_v38  ;;  %v2894_v44 = vsub.f32 %v12510_v50, %v2868_v40 }
 0x4d2   :  { %v2871_v9 = vpop.xlane.xlu1 %2870 }
 0x4d3   :  { %11323 = vpow2.f32 %v2918_v24  ;;  %v2920_v46 = vmul.f32 1.442695, %v2894_v44  ;;  %v2895_v36 = vsub.f32 %v12516_v23, %v2871_v9 }
 0x4d4   :  { %v2874_v7 = vpop.xlane.xlu0 %2873 }
 0x4d5   :  { %11325 = vpow2.f32 %v2920_v46  ;;  %v2922_v25 = vmul.f32 1.442695, %v2895_v36  ;;  %v2896_v32 = vsub.f32 %v12520_v10, %v2874_v7 }
 0x4d6   :  { %v2877_v18 = vpop.xlane.xlu1 %2876 }
 0x4d7   :  { %11327 = vpow2.f32 %v2922_v25  ;;  %v2924_v51 = vmul.f32 1.442695, %v2896_v32  ;;  %v2897_v0 = vsub.f32 %v12524_v39, %v2877_v18 }
 0x4d8   :  { %v2880_v13 = vpop.xlane.xlu0 %2879 }
 0x4d9   :  { %11329 = vpow2.f32 %v2924_v51  ;;  %v2926_v60 = vmul.f32 1.442695, %v2897_v0  ;;  %v2898_v50 = vsub.f32 %v12528_v26, %v2880_v13 }
 0x4da   :  { %v2883_v54 = vpop.xlane.xlu1 %2882 }
 0x4db   :  { %v12586_v61 = vpop.eup %11321  ;;  %11331 = vpow2.f32 %v2926_v60  ;;  %v2928_v23 = vmul.f32 1.442695, %v2898_v50  ;;  %v2899_v62 = vsub.f32 %v12532_v49, %v2883_v54 }
 0x4dc   :  { %v2956_v10 = vsel %vm2591_vm1, %v12586_v61, 0.0 }
 0x4dd   :  { %v12591_v20 = vpop.eup %11323  ;;  %11333 = vpow2.f32 %v2928_v23  ;;  %v2930_v35 = vmul.f32 1.442695, %v2899_v62  ;;  %2957 = vadd.xlane.f32.xlu0 %v2956_v10 }
 0x4de   :  { %v2959_v39 = vsel %vm2591_vm1, %v12591_v20, 0.0 }
 0x4df   :  { %v12595_v52 = vpop.eup %11325  ;;  %11335 = vpow2.f32 %v2930_v35  ;;  %2960 = vadd.xlane.f32.xlu1 %v2959_v39 }
 0x4e0   :  { %v2962_v26 = vsel %vm2591_vm1, %v12595_v52, 0.0 }
 0x4e1   :  { %v12599_v63 = vpop.eup %11327  ;;  %2963 = vadd.xlane.f32.xlu0 %v2962_v26 }
 0x4e2   :  { %v2965_v49 = vsel %vm2591_vm1, %v12599_v63, 0.0 }
 0x4e3   :  { %v12603_v56 = vpop.eup %11329  ;;  %2966 = vadd.xlane.f32.xlu1 %v2965_v49 }
 0x4e4   :  { %v2968_v11 = vsel %vm2591_vm1, %v12603_v56, 0.0 }
 0x4e5   :  { %v12607_v3 = vpop.eup %11331  ;;  %2969 = vadd.xlane.f32.xlu0 %v2968_v11 }
 0x4e6   :  { %v2971_v37 = vsel %vm2591_vm1, %v12607_v3, 0.0 }
 0x4e7   :  { %v12611_v57 = vpop.eup %11333  ;;  %2972 = vadd.xlane.f32.xlu1 %v2971_v37 }
 0x4e8   :  { %v2974_v59 = vsel %vm2591_vm1, %v12611_v57, 0.0 }
 0x4e9   :  { %v12615_v21 = vpop.eup %11335  ;;  %2975 = vadd.xlane.f32.xlu0 %v2974_v59 }
 0x4ea   :  { %v2977_v45 = vsel %vm2591_vm1, %v12615_v21, 0.0 }
 0x4eb   :  { %2978 = vadd.xlane.f32.xlu1 %v2977_v45 }
 0x54a   :  { %v2934_v41 = vpop.xlane.xlu0 %2933 }
 0x54b   :  { %11337 = vrcp.f32 %v2934_v41 }
 0x54c   :  { %v2937_v42 = vpop.xlane.xlu1 %2936 }
 0x54d   :  { %11339 = vrcp.f32 %v2937_v42 }
 0x54e   :  { %v2940_v58 = vpop.xlane.xlu0 %2939 }
 0x54f   :  { %11341 = vrcp.f32 %v2940_v58 }
 0x550   :  { %v2943_v5 = vpop.xlane.xlu1 %2942 }
 0x551   :  { %11343 = vrcp.f32 %v2943_v5 }
 0x552   :  { %v2946_v16 = vpop.xlane.xlu0 %2945 }
 0x553   :  { %11345 = vrcp.f32 %v2946_v16 }
 0x554   :  { %v2949_v6 = vpop.xlane.xlu1 %2948 }
 0x555   :  { %v11338_v1 = vpop.eup %11337  ;;  %11347 = vrcp.f32 %v2949_v6  ;;  %v10988_v6 = vld [vmem:[%s14119_s9 + $0x18] sm:$0xff]  }
 0x556   :  { %v2952_v55 = vpop.xlane.xlu0 %2951  ;;  %v2996_v38 = vmul.f32 %v11338_v1, %v12546_v8 }
 0x557   :  { %v11340_v4 = vpop.eup %11339  ;;  %11349 = vrcp.f32 %v2952_v55 }
 0x558   :  { %v2955_v28 = vpop.xlane.xlu1 %2954  ;;  %v2997_v40 = vmul.f32 %v11340_v4, %v12551_v43  ;;  %v10989_v4 = vld [vmem:[%s14119_s9 + $0x20] sm:$0xff]  }
 0x559   :  { %v11342_v24 = vpop.eup %11341  ;;  %11351 = vrcp.f32 %v2955_v28 }
 0x55a   :  { %v3012_v44 = vpack.c.bf16 %v2997_v40, %v2996_v38  ;;  %v2998_v46 = vmul.f32 %v11342_v24, %v12555_v30 }
 0x55b   :  { %v11344_v9 = vpop.eup %11343 }
 0x55c   :  { %v2999_v36 = vmul.f32 %v11344_v9, %v12559_v47  ;;  %10202 = vmatprep.mubr.msk.bf16.mxu1 %vm2591_vm1, %v3012_v44  ;;  %v10990_v44 = vld [vmem:[%s14119_s9 + $0x28] sm:$0xff]   ;;  %v10991_v9 = vld [vmem:[%s14119_s9 + $0x30] sm:$0xff]  }
 0x55d   :  { %v11346_v7 = vpop.eup %11345 }
 0x55e   :  { %v3013_v25 = vpack.c.bf16 %v2999_v36, %v2998_v46  ;;  %v3000_v18 = vmul.f32 %v11346_v7, %v12563_v2 }
 0x55f   :  { %v11348_v32 = vpop.eup %11347 }
 0x560   :  { %10203 = vmatmul.mubr.msk.bf16.vlgmr.msra.gmra.mrb[52].mxu1 %vm2591_vm1, %v3013_v25  ;;  %v3001_v8 = vmul.f32 %v11348_v32, %v12567_v12 }
 0x561   :  { %v11350_v43 = vpop.eup %11349  ;;  %10207 = vmatpush3.bf16.msra.mxu1 %v12460_v34 }
 0x562   :  { %10208 = vmatprep.subr.bf16.mxu1 %v12458_v29  ;;  %v3014_v51 = vpack.c.bf16 %v3001_v8, %v3000_v18  ;;  %v3002_v47 = vmul.f32 %v11350_v43, %v12571_v33  ;;  %v10992_v8 = vld [vmem:[%s14119_s9 + $0x38] sm:$0xff]  }
 0x563   :  { %v11352_v30 = vpop.eup %11351 }
 0x564   :  { %v3003_v0 = vmul.f32 %v11352_v30, %v12575_v15  ;;  %10210 = vmatprep.mubr.msk.bf16.mxu1 %vm2591_vm1, %v3014_v51 }
 0x565   :  { %10209 = vmatpush3.bf16.msra.mxu1 %v12458_v29 }
 0x566   :  { %10222 = vmatprep.subr.bf16.mxu1 %v12465_v31  ;;  %v3015_v2 = vpack.c.bf16 %v3003_v0, %v3002_v47 }
 0x568   :  { %10211 = vmatmul.mubr.msk.bf16.vlgmr.msra.gmra.mrb[56].mxu1 %vm2591_vm1, %v3015_v2 }
 0x569   :  { %10223 = vmatpush3.bf16.msra.mxu1 %v12465_v31 }
 0x56a   :  { %10224 = vmatprep.subr.bf16.mxu1 %v12463_v48  ;;  %v2958_v34 = vpop.xlane.xlu0 %2957 }
 0x56b   :  { %11353 = vrcp.f32 %v2958_v34  ;;  %v10993_v34 = vld [vmem:[%s14120_s10] ss:$16 sps:$4 sm:$0xff]  }
 0x56c   :  { %v2961_v12 = vpop.xlane.xlu1 %2960 }
 0x56d   :  { %11355 = vrcp.f32 %v2961_v12  ;;  %10225 = vmatpush3.bf16.msra.mxu1 %v12463_v48  ;;  %v10995_v12 = vld [vmem:[%s14120_s10 + $0x4] ss:$16 sps:$4 sm:$0xff]  }
 0x56e   :  { %v2964_v33 = vpop.xlane.xlu0 %2963  ;;  %3786 = vmatprep.subr.bf16.mxu1 %v10995_v12 }
 0x56f   :  { %11357 = vrcp.f32 %v2964_v33  ;;  %v10996_v33 = vld [vmem:[%s14120_s10 + $0x8] ss:$16 sps:$4 sm:$0xff]  }
 0x570   :  { %v2967_v15 = vpop.xlane.xlu1 %2966 }
 0x571   :  { %11359 = vrcp.f32 %v2967_v15  ;;  %v10998_v15 = vld [vmem:[%s14120_s10 + $0xc] ss:$16 sps:$4 sm:$0xff]  }
 0x572   :  { %v2970_v29 = vpop.xlane.xlu0 %2969 }
 0x573   :  { %11361 = vrcp.f32 %v2970_v29  ;;  %v10999_v29 = vld [vmem:[%s14120_s10 + $0x20] ss:$16 sps:$4 sm:$0xff]  }
 0x574   :  { %v2973_v13 = vpop.xlane.xlu1 %2972 }
 0x575   :  { %v11354_v60 = vpop.eup %11353  ;;  %11363 = vrcp.f32 %v2973_v13  ;;  %v11001_v13 = vld [vmem:[%s14120_s10 + $0x24] ss:$16 sps:$4 sm:$0xff]  }
 0x576   :  { %v2976_v50 = vpop.xlane.xlu0 %2975  ;;  %v3004_v23 = vmul.f32 %v11354_v60, %v12586_v61  ;;  %v11002_v60 = vld [vmem:[%s14120_s10 + $0x28] ss:$16 sps:$4 sm:$0xff]  }
 0x577   :  { %v11356_v54 = vpop.eup %11355  ;;  %11365 = vrcp.f32 %v2976_v50  ;;  %v11004_v50 = vld [vmem:[%s14120_s10 + $0x2c] ss:$16 sps:$4 sm:$0xff]  }
 0x578   :  { %v2979_v31 = vpop.xlane.xlu1 %2978  ;;  %v3005_v62 = vmul.f32 %v11356_v54, %v12591_v20  ;;  %v11005_v54 = vld [vmem:[%s14120_s10 + $0x40] ss:$16 sps:$4 sm:$0xff]  }
 0x579   :  { %v11358_v10 = vpop.eup %11357  ;;  %11367 = vrcp.f32 %v2979_v31  ;;  %v11007_v31 = vld [vmem:[%s14120_s10 + $0x44] ss:$16 sps:$4 sm:$0xff]  }
 0x57a   :  { %v3016_v48 = vpack.c.bf16 %v3005_v62, %v3004_v23  ;;  %v3006_v39 = vmul.f32 %v11358_v10, %v12595_v52  ;;  %v11008_v23 = vld [vmem:[%s14120_s10 + $0x48] ss:$16 sps:$4 sm:$0xff]   ;;  %v11010_v62 = vld [vmem:[%s14120_s10 + $0x4c] ss:$16 sps:$4 sm:$0xff]  }
 0x57b   :  { %v11360_v35 = vpop.eup %11359 }
 0x57c   :  { %v3007_v26 = vmul.f32 %v11360_v35, %v12599_v63  ;;  %10218 = vmatprep.mubr.msk.bf16.mxu0 %vm2591_vm1, %v3016_v48 }
 0x57d   :  { %v11362_v49 = vpop.eup %11361 }
 0x57e   :  { %v3017_v11 = vpack.c.bf16 %v3007_v26, %v3006_v39  ;;  %v3008_v59 = vmul.f32 %v11362_v49, %v12603_v56  ;;  %v10986_v56 = vld [vmem:[%s14119_s9 + $0x8] sm:$0xff]  }
 0x57f   :  { %v11364_v37 = vpop.eup %11363 }
 0x580   :  { %10219 = vmatmul.mubr.msk.bf16.vlgmr.msra.gmra.mrb[48].mxu0 %vm2591_vm1, %v3017_v11  ;;  %v3009_v61 = vmul.f32 %v11364_v37, %v12607_v3  ;;  %v10987_v3 = vld [vmem:[%s14119_s9 + $0x10] sm:$0xff]  }
 0x581   :  { %v11366_v20 = vpop.eup %11365  ;;  %10231 = vmatpush3.bf16.msra.mxu0 %v12622_v27 }
 0x582   :  { %v3018_v45 = vpack.c.bf16 %v3009_v61, %v3008_v59  ;;  %v3010_v52 = vmul.f32 %v11366_v20, %v12611_v57  ;;  %10232 = vmatprep.subr.bf16.mxu0 %v10986_v56  ;;  %v11011_v20 = vld [vmem:[%s14120_s10 + $0x60] ss:$16 sps:$4 sm:$0xff]  }
 0x583   :  { %v11368_v41 = vpop.eup %11367 }
 0x584   :  { %v3011_v63 = vmul.f32 %v11368_v41, %v12615_v21  ;;  %10226 = vmatprep.mubr.msk.bf16.mxu1 %vm2591_vm1, %v3018_v45  ;;  %v11014_v45 = vld [vmem:[%s14120_s10 + $0x68] ss:$16 sps:$4 sm:$0xff]   ;;  %v11019_v41 = vld [vmem:[%s14120_s10 + $0x84] ss:$16 sps:$4 sm:$0xff]  }
 0x585   :  { %10233 = vmatpush3.bf16.msra.mxu0 %v10986_v56  ;;  %v11023_v56 = vld [vmem:[%s14120_s10 + $0xa0] ss:$16 sps:$4 sm:$0xff]  }
 0x586   :  { %v3019_v42 = vpack.c.bf16 %v3011_v63, %v3010_v52  ;;  %10238 = vmatprep.subr.bf16.mxu0 %v10987_v3  ;;  %v11022_v52 = vld [vmem:[%s14120_s10 + $0x8c] ss:$16 sps:$4 sm:$0xff]   ;;  %v11017_v63 = vld [vmem:[%s14120_s10 + $0x80] ss:$16 sps:$4 sm:$0xff]  }
 0x588   :  { %10227 = vmatmul.mubr.msk.bf16.vlgmr.msra.gmra.mrb[60].mxu1 %vm2591_vm1, %v3019_v42  ;;  %v11020_v42 = vld [vmem:[%s14120_s10 + $0x88] ss:$16 sps:$4 sm:$0xff]  }
 0x589   :  { %3787 = vmatpush1.bf16.msra.mxu1 %v10993_v34 }
 0x58a   :  { %3788 = vmatprep.subr.bf16.mxu1 %v11001_v13 }
 0x58d   :  { %3789 = vmatpush1.bf16.msra.mxu1 %v10999_v29 }
 0x58e   :  { %3790 = vmatprep.subr.bf16.mxu1 %v11007_v31 }
 0x591   :  { %3791 = vmatpush1.bf16.msra.mxu1 %v11005_v54 }
 0x633   :  { %v10204_v27 = vpop.f32.mrb[52].mxu1 }
 0x634   :  { %v3068_v57 = vpop.f32.mrb[53].mxu1 }
 0x635   :  { %v10205_v58 = vpop.f32.mrb[54].mxu1 }
 0x636   :  { %v3249_v21 = vpack.c.bf16 %v10205_v58, %v10204_v27  ;;  %v3071_v5 = vpop.f32.mrb[55].mxu1  ;;  %v11026_v27 = vld [vmem:[%s14120_s10 + $0xa8] ss:$16 sps:$4 sm:$0xff]   ;;  %v11031_v58 = vld [vmem:[%s14120_s10 + $0xc4] ss:$16 sps:$4 sm:$0xff]  }
 0x637   :  { %v3248_v16 = vpack.c.bf16 %v3071_v5, %v3068_v57  ;;  %v11028_v57 = vld [vmem:[%s14120_s10 + $0xac] ss:$16 sps:$4 sm:$0xff]   ;;  %v11029_v5 = vld [vmem:[%s14120_s10 + $0xc0] ss:$16 sps:$4 sm:$0xff]  }
 0x639   :  { %10234 = vmatprep.mubr.msk.bf16.mxu0 %vm2591_vm1, %v3248_v16  ;;  %v11032_v16 = vld [vmem:[%s14120_s10 + $0xc8] ss:$16 sps:$4 sm:$0xff]  }
 0x63a   :  { %10235 = vmatmul.mubr.msk.bf16.vlgmr.msra.gmra.mrb[52].mxu0 %vm2591_vm1, %v3249_v21  ;;  %v11034_v21 = vld [vmem:[%s14120_s10 + $0xcc] ss:$16 sps:$4 sm:$0xff]  }
 0x63b   :  { %v10212_v1 = vpop.f32.mrb[56].mxu1  ;;  %10239 = vmatpush3.bf16.msra.mxu0 %v10987_v3  ;;  %v11025_v3 = vld [vmem:[%s14120_s10 + $0xa4] ss:$16 sps:$4 sm:$0xff]  }
 0x63c   :  { %v3123_v55 = vpop.f32.mrb[57].mxu1  ;;  %10240 = vmatprep.subr.bf16.mxu0 %v10988_v6 }
 0x63d   :  { %v10213_v28 = vpop.f32.mrb[58].mxu1 }
 0x63e   :  { %v3251_v38 = vpack.c.bf16 %v10213_v28, %v10212_v1  ;;  %v3126_v40 = vpop.f32.mrb[59].mxu1  ;;  %v11040_v1 = vld [vmem:[%s14120_s10 + $0xec] ss:$16 sps:$4 sm:$0xff]   ;;  %v11038_v28 = vld [vmem:[%s14120_s10 + $0xe8] ss:$16 sps:$4 sm:$0xff]  }
 0x63f   :  { %v3250_v24 = vpack.c.bf16 %v3126_v40, %v3123_v55  ;;  %10241 = vmatpush3.bf16.msra.mxu0 %v10988_v6  ;;  %v11037_v6 = vld [vmem:[%s14120_s10 + $0xe4] ss:$16 sps:$4 sm:$0xff]   ;;  %v14129_v55 = vmov 0  }
 0x640   :  { %10246 = vmatprep.subr.bf16.mxu0 %v10989_v4  ;;  %3818 = vmatprep.mubr.bf16.mxu1 %v14129_v55 }
 0x641   :  { %10242 = vmatprep.mubr.msk.bf16.mxu0 %vm2591_vm1, %v3250_v24 }
 0x646   :  { %10243 = vmatmul.mubr.msk.bf16.vlgmr.msra.gmra.mrb[52].mxu0 %vm2591_vm1, %v3251_v38 }
 0x647   :  { %10247 = vmatpush3.bf16.msra.mxu0 %v10989_v4  ;;  %v11035_v4 = vld [vmem:[%s14120_s10 + $0xe0] ss:$16 sps:$4 sm:$0xff]  }
 0x648   :  { %10248 = vmatprep.subr.bf16.mxu0 %v10990_v44 }
 0x64b   :  { %10249 = vmatpush3.bf16.msra.mxu0 %v10990_v44 }
 0x64c   :  { %10254 = vmatprep.subr.bf16.mxu0 %v10991_v9 }
 0x653   :  { %v10220_v46 = vpop.f32.mrb[48].mxu0 }
 0x654   :  { %v3178_v36 = vpop.f32.mrb[49].mxu0 }
 0x655   :  { %v10221_v7 = vpop.f32.mrb[50].mxu0 }
 0x656   :  { %v3253_v25 = vpack.c.bf16 %v10221_v7, %v10220_v46  ;;  %v3181_v32 = vpop.f32.mrb[51].mxu0 }
 0x657   :  { %v3252_v18 = vpack.c.bf16 %v3181_v32, %v3178_v36 }
 0x659   :  { %10250 = vmatprep.mubr.msk.bf16.mxu0 %vm2591_vm1, %v3252_v18 }
 0x65a   :  { %10251 = vmatmul.mubr.msk.bf16.vlgmr.msra.gmra.mrb[52].mxu0 %vm2591_vm1, %v3253_v25 }
 0x65b   :  { %10255 = vmatpush3.bf16.msra.mxu0 %v10991_v9  ;;  %v10228_v43 = vpop.f32.mrb[60].mxu1 }
 0x65c   :  { %v3233_v51 = vpop.f32.mrb[61].mxu1  ;;  %10256 = vmatprep.subr.bf16.mxu0 %v10992_v8 }
 0x65d   :  { %v10229_v30 = vpop.f32.mrb[62].mxu1 }
 0x65e   :  { %v3255_v47 = vpack.c.bf16 %v10229_v30, %v10228_v43  ;;  %v3236_v0 = vpop.f32.mrb[63].mxu1  ;;  %v14128_v43 = vsub.s32 1, %v11734_v53 }
 0x65f   :  { %v3254_v2 = vpack.c.bf16 %v3236_v0, %v3233_v51  ;;  %10257 = vmatpush3.bf16.msra.mxu0 %v10992_v8 }
 0x660   :  { %3839 = vmatprep.subr.bf16.mxu0 %v10998_v15 }
 0x661   :  { %10258 = vmatprep.mubr.msk.bf16.mxu0 %vm2591_vm1, %v3254_v2 }
 0x666   :  { %10259 = vmatmul.mubr.msk.bf16.vlgmr.msra.gmra.mrb[52].mxu0 %vm2591_vm1, %v3255_v47  ;;  %v11529_v47 = vld [vmem:[%s14113_s12] sm:$0x3] }
 0x667   :  { %3840 = vmatpush1.bf16.msra.mxu0 %v10996_v33  ;;  %3871 = vmatprep.mubr.bf16.mxu0 %v14129_v55  ;;  %v3587_v0 = vrot.slane %v11529_v47, %v14128_v43 }
 0x668   :  { %3841 = vmatprep.subr.bf16.mxu0 %v11004_v50 }
 0x66b   :  { %3842 = vmatpush1.bf16.msra.mxu0 %v11002_v60 }
 0x66c   :  { %3843 = vmatprep.subr.bf16.mxu0 %v11010_v62  ;;  %v11041_v62 = vld [vmem:[%s14121_s11 + $0x40] sm:$0xff]  }
 0x66f   :  { %3844 = vmatpush1.bf16.msra.mxu0 %v11008_v23 }
 0x739   :  { %v10260_v10 = vpop.f32.mrb[52].mxu0 }
 0x73a   :  { %v3525_v48 = vpop.f32.mrb[53].mxu0  ;;  %v12726_v49 = vadd.f32 %v10260_v10, %v11673_v14  ;;  %v11042_v10 = vld [vmem:[%s14121_s11] sm:$0xff]  }
 0x73b   :  { %v12723_v35 = vadd.f32 %v3525_v48, %v11678_v17  ;;  %v10261_v39 = vpop.f32.mrb[54].mxu0  ;;  %v11043_v48 = vld [vmem:[%s14121_s11 + $0x48] sm:$0xff]  }
 0x73c   :  { %v3528_v26 = vpop.f32.mrb[55].mxu0  ;;  %v12734_v59 = vadd.f32 %v10261_v39, %v11680_v19  ;;  %v3558_v17 = vmul.f32 %v12726_v49, %v12726_v49  ;;  %v11016_v19 = vld [vmem:[%s14120_s10 + $0x6c] ss:$16 sps:$4 sm:$0xff]  }
 0x73d   :  { %v12729_v11 = vadd.f32 %v3528_v26, %v11684_v22  ;;  %v3556_v37 = vmul.f32 %v12723_v35, %v12723_v35  ;;  %v11013_v22 = vld [vmem:[%s14120_s10 + $0x64] ss:$16 sps:$4 sm:$0xff]   ;;  %3845 = vmatprep.subr.bf16.mxu0 %v11016_v19  ;;  %v11044_v39 = vld [vmem:[%s14121_s11 + $0x8] sm:$0xff]  }
 0x73e   :  { %v3559_v14 = vmul.f32 %v12734_v59, %v12734_v59  ;;  %3792 = vmatprep.subr.bf16.mxu1 %v11013_v22  ;;  %3846 = vmatpush1.bf16.msra.mxu0 %v11014_v45  ;;  %v11045_v26 = vld [vmem:[%s14121_s11 + $0x50] sm:$0xff]   ;;  %v11050_v22 = vld [vmem:[%s14121_s11 + $0x20] sm:$0xff]   ;;  %v11051_v19 = vld [vmem:[%s14121_s11 + $0x68] sm:$0xff]  }
 0x73f   :  { %3560 = vadd.xlane.f32.xlu0 %v3556_v37  ;;  %v3557_v61 = vmul.f32 %v12729_v11, %v12729_v11  ;;  %3793 = vmatpush1.bf16.msra.mxu1 %v11011_v20  ;;  %v11046_v37 = vld [vmem:[%s14121_s11 + $0x10] sm:$0xff]   ;;  %v11052_v20 = vld [vmem:[%s14121_s11 + $0x28] sm:$0xff]  }
 0x740   :  { %3794 = vmatprep.subr.bf16.mxu1 %v11019_v41  ;;  %3847 = vmatprep.subr.bf16.mxu0 %v11022_v52  ;;  %v11053_v45 = vld [vmem:[%s14121_s11 + $0x70] sm:$0xff]   ;;  %v11055_v52 = vld [vmem:[%s14121_s11 + $0x78] sm:$0xff]  }
 0x741   :  { %3562 = vadd.xlane.f32.xlu1 %v3557_v61  ;;  %v11047_v61 = vld [vmem:[%s14121_s11 + $0x58] sm:$0xff]   ;;  %v11054_v41 = vld [vmem:[%s14121_s11 + $0x30] sm:$0xff]  }
 0x742   :  { %3848 = vmatpush1.bf16.msra.mxu0 %v11020_v42 }
 0x743   :  { %3564 = vadd.xlane.f32.xlu0 %v3558_v17  ;;  %3795 = vmatpush1.bf16.msra.mxu1 %v11017_v63  ;;  %v11048_v17 = vld [vmem:[%s14121_s11 + $0x18] sm:$0xff]  }
 0x744   :  { %3796 = vmatprep.subr.bf16.mxu1 %v11025_v3  ;;  %3849 = vmatprep.subr.bf16.mxu0 %v11028_v57  ;;  %v11056_v63 = vld [vmem:[%s14121_s11 + $0x38] sm:$0xff]  }
 0x745   :  { %3566 = vadd.xlane.f32.xlu1 %v3559_v14  ;;  %v11049_v14 = vld [vmem:[%s14121_s11 + $0x60] sm:$0xff]  }
 0x746   :  { %3850 = vmatpush1.bf16.msra.mxu0 %v11026_v27 }
 0x747   :  { %3797 = vmatpush1.bf16.msra.mxu1 %v11023_v56  ;;  %3851 = vmatprep.subr.bf16.mxu0 %v11034_v21 }
 0x748   :  { %3798 = vmatprep.subr.bf16.mxu1 %v11031_v58 }
 0x74a   :  { %3852 = vmatpush1.bf16.msra.mxu0 %v11032_v16 }
 0x74b   :  { %3799 = vmatpush1.bf16.msra.mxu1 %v11029_v5  ;;  %3853 = vmatprep.subr.bf16.mxu0 %v11040_v1 }
 0x74c   :  { %3800 = vmatprep.subr.bf16.mxu1 %v11037_v6 }
 0x74e   :  { %3854 = vmatpush1.bf16.msra.mxu0 %v11038_v28 }
 0x74f   :  { %3801 = vmatpush1.bf16.msra.mxu1 %v11035_v4 }
 0x750   :  { %9440 = vmatprep.subr.bf16.mxu1 %v11041_v62 }
 0x7cc   :  { %v3561_v38 = vpop.xlane.xlu0 %3560 }
 0x7cd   :  { %v3568_v40 = vmul.f32 0.0078125, %v3561_v38 }
 0x7ce   :  { %v3563_v24 = vpop.xlane.xlu1 %3562 }
 0x7cf   :  { %v3572_v44 = vadd.f32 1e-06, %v3568_v40  ;;  %v3569_v9 = vmul.f32 0.0078125, %v3563_v24 }
 0x7d0   :  { %v3565_v46 = vpop.xlane.xlu0 %3564 }
 0x7d1   :  { %11369 = vrsqrt.f32 %v3572_v44  ;;  %v3573_v36 = vadd.f32 1e-06, %v3569_v9  ;;  %v3570_v7 = vmul.f32 0.0078125, %v3565_v46 }
 0x7d2   :  { %v3567_v25 = vpop.xlane.xlu1 %3566 }
 0x7d3   :  { %11371 = vrsqrt.f32 %v3573_v36  ;;  %v3574_v32 = vadd.f32 1e-06, %v3570_v7  ;;  %v3571_v18 = vmul.f32 0.0078125, %v3567_v25 }
 0x7d5   :  { %v3575_v8 = vadd.f32 1e-06, %v3571_v18  ;;  %11373 = vrsqrt.f32 %v3574_v32 }
 0x7d7   :  { %11375 = vrsqrt.f32 %v3575_v8 }
 0x7db   :  { %v11370_v51 = vpop.eup %11369 }
 0x7dc   :  { %v3580_v30 = vmul.f32 %v11370_v51, %v12723_v35 }
 0x7dd   :  { %v11372_v2 = vpop.eup %11371 }
 0x7de   :  { %v3581_v34 = vmul.f32 %v11372_v2, %v12729_v11  ;;  %v3588_v33 = vmul.f32 %v3587_v0, %v3580_v30 }
 0x7df   :  { %v11374_v12 = vpop.eup %11373 }
 0x7e0   :  { %v3589_v15 = vmul.f32 %v3587_v0, %v3581_v34  ;;  %v3582_v50 = vmul.f32 %v11374_v12, %v12726_v49 }
 0x7e1   :  { %v11376_v29 = vpop.eup %11375 }
 0x7e2   :  { %v3592_v13 = vpack.c.bf16 %v3589_v15, %v3588_v33  ;;  %v3583_v60 = vmul.f32 %v11376_v29, %v12734_v59  ;;  %v3590_v31 = vmul.f32 %v3587_v0, %v3582_v50 }
 0x7e4   :  { %3819 = vmatmul.mubr.bf16.vlgmr.msra.gmra.mrb[64].mxu1 %v3592_v13  ;;  %3872 = vmatmul.mubr.bf16.vlgmr.msra.gmra.mrb[56].mxu0 %v3592_v13  ;;  %v3591_v54 = vmul.f32 %v3587_v0, %v3583_v60 }
 0x7e5   :  { %3828 = vmatprep.mubr.bf16.mxu1 %v14129_v55  ;;  %3881 = vmatprep.mubr.bf16.mxu0 %v14129_v55 }
 0x7e6   :  { %v3593_v23 = vpack.c.bf16 %v3591_v54, %v3590_v31  ;;  %9441 = vmatpush3.bf16.msra.mxu1 %v11042_v10 }
 0x7e7   :  { %9442 = vmatprep.subr.bf16.mxu1 %v11043_v48 }
 0x7ea   :  { %9443 = vmatpush3.bf16.msra.mxu1 %v11044_v39 }
 0x7eb   :  { %9444 = vmatprep.subr.bf16.mxu1 %v11045_v26 }
 0x7ec   :  { %3829 = vmatmul.mubr.bf16.gmra.mrb[68].mxu1 %v3593_v23  ;;  %3882 = vmatmul.mubr.bf16.gmra.mrb[60].mxu0 %v3593_v23 }
 0x7ee   :  { %9445 = vmatpush3.bf16.msra.mxu1 %v11046_v37 }
 0x7ef   :  { %9446 = vmatprep.subr.bf16.mxu1 %v11047_v61 }
 0x7f2   :  { %9447 = vmatpush3.bf16.msra.mxu1 %v11048_v17 }
 0x7f3   :  { %9448 = vmatprep.subr.bf16.mxu1 %v11049_v14 }
 0x7f6   :  { %9449 = vmatpush3.bf16.msra.mxu1 %v11050_v22 }
 0x7f7   :  { %9450 = vmatprep.subr.bf16.mxu1 %v11051_v19 }
 0x7fa   :  { %9451 = vmatpush3.bf16.msra.mxu1 %v11052_v20 }
 0x7fb   :  { %9452 = vmatprep.subr.bf16.mxu1 %v11053_v45 }
 0x7fe   :  { %9453 = vmatpush3.bf16.msra.mxu1 %v11054_v41 }
 0x7ff   :  { %9454 = vmatprep.subr.bf16.mxu1 %v11055_v52 }
 0x802   :  { %9455 = vmatpush3.bf16.msra.mxu1 %v11056_v63 }
 0x8b7   :  { %v3820_v42 = vpop.f32.mrb[64].mxu1  ;;  %v3873_v56 = vpop.f32.mrb[56].mxu0 }
 0x8b8   :  { %v8504_v3 = vmul.f32 -1.442695, %v3820_v42  ;;  %v3822_v27 = vpop.f32.mrb[65].mxu1  ;;  %v3875_v57 = vpop.f32.mrb[57].mxu0 }
 0x8b9   :  { %v8505_v58 = vmul.f32 -1.442695, %v3822_v27  ;;  %v3824_v21 = vpop.f32.mrb[66].mxu1  ;;  %v3877_v5 = vpop.f32.mrb[58].mxu0 }
 0x8ba   :  { %11377 = vpow2.f32 %v8504_v3  ;;  %v8506_v16 = vmul.f32 -1.442695, %v3824_v21  ;;  %v3826_v6 = vpop.f32.mrb[67].mxu1  ;;  %v3879_v1 = vpop.f32.mrb[59].mxu0 }
 0x8bb   :  { %11379 = vpow2.f32 %v8505_v58  ;;  %v8507_v4 = vmul.f32 -1.442695, %v3826_v6 }
 0x8bc   :  { %11381 = vpow2.f32 %v8506_v16 }
 0x8bd   :  { %11383 = vpow2.f32 %v8507_v4 }
 0x8bf   :  { %v3830_v28 = vpop.f32.mrb[68].mxu1  ;;  %v3883_v38 = vpop.f32.mrb[60].mxu0 }
 0x8c0   :  { %v8508_v40 = vmul.f32 -1.442695, %v3830_v28  ;;  %v3832_v24 = vpop.f32.mrb[69].mxu1  ;;  %v3885_v44 = vpop.f32.mrb[61].mxu0 }
 0x8c1   :  { %v8509_v9 = vmul.f32 -1.442695, %v3832_v24  ;;  %v3834_v46 = vpop.f32.mrb[70].mxu1  ;;  %v3887_v36 = vpop.f32.mrb[62].mxu0 }
 0x8c2   :  { %11385 = vpow2.f32 %v8508_v40  ;;  %v8510_v7 = vmul.f32 -1.442695, %v3834_v46  ;;  %v3836_v25 = vpop.f32.mrb[71].mxu1  ;;  %v3889_v32 = vpop.f32.mrb[63].mxu0 }
 0x8c3   :  { %11387 = vpow2.f32 %v8509_v9  ;;  %v8511_v18 = vmul.f32 -1.442695, %v3836_v25 }
 0x8c4   :  { %v11378_v8 = vpop.eup %11377  ;;  %11389 = vpow2.f32 %v8510_v7 }
 0x8c5   :  { %v11380_v51 = vpop.eup %11379  ;;  %v3916_v30 = vadd.f32 1.0, %v11378_v8  ;;  %11391 = vpow2.f32 %v8511_v18 }
 0x8c6   :  { %v11382_v47 = vpop.eup %11381  ;;  %v3917_v0 = vadd.f32 1.0, %v11380_v51 }
 0x8c7   :  { %v11384_v2 = vpop.eup %11383  ;;  %11393 = vrcp.f32 %v3916_v30  ;;  %v3918_v34 = vadd.f32 1.0, %v11382_v47 }
 0x8c8   :  { %11395 = vrcp.f32 %v3917_v0  ;;  %v3919_v12 = vadd.f32 1.0, %v11384_v2 }
 0x8c9   :  { %11397 = vrcp.f32 %v3918_v34 }
 0x8ca   :  { %11399 = vrcp.f32 %v3919_v12  ;;  %v11059_v12 = vld [vmem:[%s14109_s4 + $0x108] sm:$0xff]  }
 0x8cc   :  { %v11386_v33 = vpop.eup %11385 }
 0x8cd   :  { %v11388_v15 = vpop.eup %11387  ;;  %v3920_v29 = vadd.f32 1.0, %v11386_v33  ;;  %v11062_v33 = vld [vmem:[%s14109_s4 + $0x150] sm:$0xff]  }
 0x8ce   :  { %v11390_v13 = vpop.eup %11389  ;;  %v3921_v60 = vadd.f32 1.0, %v11388_v15  ;;  %v11063_v15 = vld [vmem:[%s14109_s4 + $0x118] sm:$0xff]  }
 0x8cf   :  { %v11392_v50 = vpop.eup %11391  ;;  %11401 = vrcp.f32 %v3920_v29  ;;  %v3922_v54 = vadd.f32 1.0, %v11390_v13  ;;  %v11064_v29 = vld [vmem:[%s14109_s4 + $0x158] sm:$0xff]   ;;  %v11065_v13 = vld [vmem:[%s14109_s4 + $0x120] sm:$0xff]  }
 0x8d0   :  { %11403 = vrcp.f32 %v3921_v60  ;;  %v3923_v31 = vadd.f32 1.0, %v11392_v50  ;;  %v11066_v60 = vld [vmem:[%s14109_s4 + $0x160] sm:$0xff]   ;;  %v11067_v50 = vld [vmem:[%s14109_s4 + $0x128] sm:$0xff]  }
 0x8d1   :  { %v11394_v23 = vpop.eup %11393  ;;  %11405 = vrcp.f32 %v3922_v54  ;;  %v11068_v54 = vld [vmem:[%s14109_s4 + $0x168] sm:$0xff]  }
 0x8d2   :  { %v11396_v62 = vpop.eup %11395  ;;  %v3940_v10 = vmul.f32 %v11394_v23, %v3820_v42  ;;  %11407 = vrcp.f32 %v3923_v31  ;;  %v11069_v31 = vld [vmem:[%s14109_s4 + $0x130] sm:$0xff]  }
 0x8d3   :  { %v11398_v48 = vpop.eup %11397  ;;  %v3941_v39 = vmul.f32 %v11396_v62, %v3822_v27  ;;  %v11070_v23 = vld [vmem:[%s14109_s4 + $0x170] sm:$0xff]   ;;  %v11071_v62 = vld [vmem:[%s14109_s4 + $0x138] sm:$0xff]  }
 0x8d4   :  { %v11400_v26 = vpop.eup %11399  ;;  %v3948_v37 = vmul.f32 %v3940_v10, %v3873_v56  ;;  %v3942_v61 = vmul.f32 %v11398_v48, %v3824_v21  ;;  %v11072_v10 = vld [vmem:[%s14109_s4 + $0x178] sm:$0xff]   ;;  %v11073_v48 = vld [vmem:[%s14109_s4 + $0x180] sm:$0xff]  }
 0x8d5   :  { %v3949_v17 = vmul.f32 %v3941_v39, %v3875_v57  ;;  %v3943_v14 = vmul.f32 %v11400_v26, %v3826_v6  ;;  %v11074_v39 = vld [vmem:[%s14109_s4 + $0x1c0] sm:$0xff]  }
 0x8d6   :  { %v3950_v22 = vmul.f32 %v3942_v61, %v3877_v5  ;;  %v11057_v5 = vld [vmem:[%s14109_s4 + $0x100] sm:$0xff]  }
 0x8d7   :  { %v3951_v19 = vmul.f32 %v3943_v14, %v3879_v1  ;;  %v11058_v1 = vld [vmem:[%s14109_s4 + $0x140] sm:$0xff]   ;;  %10262 = vmatprep.subr.bf16.mxu0 %v11057_v5 }
 0x8d8   :  { %v3956_v20 = vpack.c.bf16 %v3950_v22, %v3948_v37  ;;  %10282 = vmatprep.subr.bf16.mxu1 %v11058_v1  ;;  %10263 = vmatpush3.bf16.msra.mxu0 %v11057_v5 }
 0x8d9   :  { %v11402_v45 = vpop.eup %11401  ;;  %v3957_v41 = vpack.c.bf16 %v3951_v19, %v3949_v17  ;;  %10264 = vmatprep.subr.bf16.mxu0 %v11059_v12 }
 0x8da   :  { %v11404_v52 = vpop.eup %11403  ;;  %v3944_v63 = vmul.f32 %v11402_v45, %v3830_v28 }
 0x8db   :  { %v11406_v3 = vpop.eup %11405  ;;  %v3945_v58 = vmul.f32 %v11404_v52, %v3832_v24  ;;  %4120 = vmatprep.mubr.bf16.mxu1 %v3957_v41 }
 0x8dc   :  { %v11408_v16 = vpop.eup %11407  ;;  %v3952_v42 = vmul.f32 %v3944_v63, %v3883_v38  ;;  %v3946_v4 = vmul.f32 %v11406_v3, %v3834_v46  ;;  %4121 = vmatmul.mubr.bf16.vlgmr.msra.gmra.mrb[72].mxu1 %v3956_v20  ;;  %10265 = vmatpush3.bf16.msra.mxu0 %v11059_v12  ;;  %v8528_v63 = vld [vmem:[%s14113_s12 + $0x2] sm:$0x3]  ;;  %v11087_v12 = vld [vmem:[%s14109_s4 + $0x1b8] sm:$0xff]  }
 0x8dd   :  { %v3953_v27 = vmul.f32 %v3945_v58, %v3885_v44  ;;  %v3947_v40 = vmul.f32 %v11408_v16, %v3836_v25  ;;  %10283 = vmatpush3.bf16.msra.mxu1 %v11058_v1  ;;  %v14140_v16 = vsub.s32 0, %v11734_v53 }
 0x8de   :  { %v3954_v56 = vmul.f32 %v3946_v4, %v3887_v36 }
 0x8df   :  { %v3955_v21 = vmul.f32 %v3947_v40, %v3889_v32 }
 0x8e0   :  { %v3958_v57 = vpack.c.bf16 %v3954_v56, %v3952_v42  ;;  %v4174_v42 = vrot.slane %v8528_v63, %v14140_v16  ;;  %v11114_v63 = vld [vmem:[%s14111_s5 + $0x1e0] sm:$0xff]   ;;  %v11117_v16 = vld [vmem:[%s14111_s5 + $0x1b0] sm:$0xff]  }
 0x8e1   :  { %v3959_v6 = vpack.c.bf16 %v3955_v21, %v3953_v27 }
 0x8e3   :  { %4128 = vmatprep.mubr.bf16.mxu1 %v3959_v6 }
 0x8e4   :  { %4129 = vmatmul.mubr.bf16.gmra.mrb[76].mxu1 %v3958_v57 }
 0x9af   :  { %v9456_v28 = vpop.f32.mrb[72].mxu1 }
 0x9b0   :  { %v9457_v38 = vpop.f32.mrb[73].mxu1 }
 0x9b1   :  { %v9458_v24 = vadd.f32 %v9457_v38, %v9456_v28  ;;  %v9459_v44 = vpop.f32.mrb[74].mxu1 }
 0x9b2   :  { %v9460_v9 = vpop.f32.mrb[75].mxu1 }
 0x9b3   :  { %v12871_v46 = vadd.f32 %v9458_v24, %v12723_v35  ;;  %v9461_v36 = vadd.f32 %v9460_v9, %v9459_v44  ;;  %v11075_v9 = vld [vmem:[%s14109_s4 + $0x188] sm:$0xff]  }
 0x9b5   :  { %v12874_v7 = vadd.f32 %v9461_v36, %v12729_v11  ;;  %v4143_v25 = vmul.f32 %v12871_v46, %v12871_v46  ;;  %v11076_v36 = vld [vmem:[%s14109_s4 + $0x1c8] sm:$0xff]  }
 0x9b7   :  { %4147 = vadd.xlane.f32.xlu0 %v4143_v25  ;;  %v9462_v32 = vpop.f32.mrb[76].mxu1  ;;  %v4144_v18 = vmul.f32 %v12874_v7, %v12874_v7  ;;  %v11077_v25 = vld [vmem:[%s14109_s4 + $0x190] sm:$0xff]  }
 0x9b8   :  { %v9463_v8 = vpop.f32.mrb[77].mxu1 }
 0x9b9   :  { %v9464_v51 = vadd.f32 %v9463_v8, %v9462_v32  ;;  %4149 = vadd.xlane.f32.xlu1 %v4144_v18  ;;  %v9465_v30 = vpop.f32.mrb[78].mxu1  ;;  %v11078_v32 = vld [vmem:[%s14109_s4 + $0x1d0] sm:$0xff]   ;;  %v11079_v18 = vld [vmem:[%s14109_s4 + $0x198] sm:$0xff]  }
 0x9ba   :  { %v9466_v47 = vpop.f32.mrb[79].mxu1  ;;  %v11080_v8 = vld [vmem:[%s14109_s4 + $0x1d8] sm:$0xff]  }
 0x9bb   :  { %v12881_v35 = vadd.f32 %v9464_v51, %v12726_v49  ;;  %v9467_v0 = vadd.f32 %v9466_v47, %v9465_v30  ;;  %v11060_v49 = vld [vmem:[%s14109_s4 + $0x148] sm:$0xff]   ;;  %v11081_v51 = vld [vmem:[%s14109_s4 + $0x1a0] sm:$0xff]  }
 0x9bc   :  { %10284 = vmatprep.subr.bf16.mxu1 %v11060_v49  ;;  %v11082_v30 = vld [vmem:[%s14109_s4 + $0x1e0] sm:$0xff]   ;;  %v11083_v47 = vld [vmem:[%s14109_s4 + $0x1a8] sm:$0xff]  }
 0x9bd   :  { %v12884_v11 = vadd.f32 %v9467_v0, %v12734_v59  ;;  %v4145_v2 = vmul.f32 %v12881_v35, %v12881_v35  ;;  %10285 = vmatpush3.bf16.msra.mxu1 %v11060_v49  ;;  %v11061_v59 = vld [vmem:[%s14109_s4 + $0x110] sm:$0xff]   ;;  %v11084_v0 = vld [vmem:[%s14109_s4 + $0x1e8] sm:$0xff]   ;;  %v11088_v49 = vld [vmem:[%s14109_s4 + $0x1f8] sm:$0xff]  }
 0x9be   :  { %10266 = vmatprep.subr.bf16.mxu0 %v11061_v59  ;;  %10286 = vmatprep.subr.bf16.mxu1 %v11062_v33 }
 0x9bf   :  { %4151 = vadd.xlane.f32.xlu0 %v4145_v2  ;;  %v4146_v34 = vmul.f32 %v12884_v11, %v12884_v11  ;;  %10267 = vmatpush3.bf16.msra.mxu0 %v11061_v59  ;;  %v11085_v2 = vld [vmem:[%s14109_s4 + $0x1b0] sm:$0xff]   ;;  %v11089_v59 = vld [vmem:[%s14111_s5 + $0x100] sm:$0xff]  }
 0x9c0   :  { %10268 = vmatprep.subr.bf16.mxu0 %v11063_v15 }
 0x9c1   :  { %4153 = vadd.xlane.f32.xlu1 %v4146_v34  ;;  %10287 = vmatpush3.bf16.msra.mxu1 %v11062_v33  ;;  %v11086_v34 = vld [vmem:[%s14109_s4 + $0x1f0] sm:$0xff]   ;;  %v11090_v33 = vld [vmem:[%s14111_s5 + $0x140] sm:$0xff]  }
 0x9c2   :  { %10288 = vmatprep.subr.bf16.mxu1 %v11064_v29 }
 0x9c3   :  { %10269 = vmatpush3.bf16.msra.mxu0 %v11063_v15  ;;  %v11091_v15 = vld [vmem:[%s14111_s5 + $0x108] sm:$0xff]  }
 0x9c4   :  { %10270 = vmatprep.subr.bf16.mxu0 %v11065_v13 }
 0x9c5   :  { %10289 = vmatpush3.bf16.msra.mxu1 %v11064_v29  ;;  %v11092_v29 = vld [vmem:[%s14111_s5 + $0x148] sm:$0xff]  }
 0x9c6   :  { %10290 = vmatprep.subr.bf16.mxu1 %v11066_v60 }
 0x9c7   :  { %10271 = vmatpush3.bf16.msra.mxu0 %v11065_v13  ;;  %v11093_v13 = vld [vmem:[%s14111_s5 + $0x110] sm:$0xff]  }
 0x9c8   :  { %10272 = vmatprep.subr.bf16.mxu0 %v11067_v50 }
 0x9c9   :  { %10291 = vmatpush3.bf16.msra.mxu1 %v11066_v60  ;;  %v11094_v60 = vld [vmem:[%s14111_s5 + $0x150] sm:$0xff]  }
 0x9ca   :  { %10292 = vmatprep.subr.bf16.mxu1 %v11068_v54 }
 0x9cb   :  { %10273 = vmatpush3.bf16.msra.mxu0 %v11067_v50  ;;  %v11095_v50 = vld [vmem:[%s14111_s5 + $0x118] sm:$0xff]  }
 0x9cc   :  { %10274 = vmatprep.subr.bf16.mxu0 %v11069_v31 }
 0x9cd   :  { %10293 = vmatpush3.bf16.msra.mxu1 %v11068_v54  ;;  %v11096_v54 = vld [vmem:[%s14111_s5 + $0x158] sm:$0xff]  }
 0x9ce   :  { %10294 = vmatprep.subr.bf16.mxu1 %v11070_v23 }
 0x9cf   :  { %10275 = vmatpush3.bf16.msra.mxu0 %v11069_v31  ;;  %v11097_v31 = vld [vmem:[%s14111_s5 + $0x120] sm:$0xff]  }
 0x9d0   :  { %10276 = vmatprep.subr.bf16.mxu0 %v11071_v62 }
 0x9d1   :  { %10295 = vmatpush3.bf16.msra.mxu1 %v11070_v23  ;;  %v11098_v23 = vld [vmem:[%s14111_s5 + $0x160] sm:$0xff]  }
 0x9d2   :  { %10296 = vmatprep.subr.bf16.mxu1 %v11072_v10 }
 0x9d3   :  { %10277 = vmatpush3.bf16.msra.mxu0 %v11071_v62  ;;  %v11099_v62 = vld [vmem:[%s14111_s5 + $0x128] sm:$0xff]  }
 0x9d4   :  { %10302 = vmatprep.subr.bf16.mxu0 %v11073_v48 }
 0x9d5   :  { %10297 = vmatpush3.bf16.msra.mxu1 %v11072_v10  ;;  %v11100_v10 = vld [vmem:[%s14111_s5 + $0x168] sm:$0xff]  }
 0x9d6   :  { %10322 = vmatprep.subr.bf16.mxu1 %v11074_v39 }
 0xa44   :  { %v4148_v26 = vpop.xlane.xlu0 %4147 }
 0xa45   :  { %v4155_v37 = vmul.f32 0.0078125, %v4148_v26  ;;  %v11103_v26 = vld [vmem:[%s14111_s5 + $0x138] sm:$0xff]  }
 0xa46   :  { %v4150_v61 = vpop.xlane.xlu1 %4149 }
 0xa47   :  { %v4159_v17 = vadd.f32 1e-06, %v4155_v37  ;;  %v4156_v14 = vmul.f32 0.0078125, %v4150_v61  ;;  %v11104_v37 = vld [vmem:[%s14111_s5 + $0x178] sm:$0xff]   ;;  %v11105_v61 = vld [vmem:[%s14111_s5 + $0x180] sm:$0xff]  }
 0xa49   :  { %11409 = vrsqrt.f32 %v4159_v17  ;;  %v4160_v22 = vadd.f32 1e-06, %v4156_v14  ;;  %v11106_v17 = vld [vmem:[%s14111_s5 + $0x1c0] sm:$0xff]   ;;  %v11107_v14 = vld [vmem:[%s14111_s5 + $0x188] sm:$0xff]  }
 0xa4b   :  { %11411 = vrsqrt.f32 %v4160_v22  ;;  %v11108_v22 = vld [vmem:[%s14111_s5 + $0x1c8] sm:$0xff]  }
 0xa4c   :  { %v4152_v19 = vpop.xlane.xlu0 %4151 }
 0xa4d   :  { %v4157_v20 = vmul.f32 0.0078125, %v4152_v19  ;;  %v11109_v19 = vld [vmem:[%s14111_s5 + $0x190] sm:$0xff]  }
 0xa4e   :  { %v4154_v45 = vpop.xlane.xlu1 %4153 }
 0xa4f   :  { %v4161_v41 = vadd.f32 1e-06, %v4157_v20  ;;  %v4158_v52 = vmul.f32 0.0078125, %v4154_v45  ;;  %v11110_v20 = vld [vmem:[%s14111_s5 + $0x1d0] sm:$0xff]   ;;  %v11111_v45 = vld [vmem:[%s14111_s5 + $0x198] sm:$0xff]  }
 0xa51   :  { %11413 = vrsqrt.f32 %v4161_v41  ;;  %v4162_v3 = vadd.f32 1e-06, %v4158_v52  ;;  %v11112_v41 = vld [vmem:[%s14111_s5 + $0x1d8] sm:$0xff]   ;;  %v11113_v52 = vld [vmem:[%s14111_s5 + $0x1a0] sm:$0xff]  }
 0xa53   :  { %v11410_v58 = vpop.eup %11409  ;;  %11415 = vrsqrt.f32 %v4162_v3  ;;  %v11115_v3 = vld [vmem:[%s14111_s5 + $0x1a8] sm:$0xff]  }
 0xa54   :  { %v4167_v4 = vmul.f32 %v11410_v58, %v12871_v46  ;;  %v11116_v58 = vld [vmem:[%s14111_s5 + $0x1e8] sm:$0xff]  }
 0xa55   :  { %v11412_v27 = vpop.eup %11411 }
 0xa56   :  { %v4168_v40 = vmul.f32 %v11412_v27, %v12874_v7  ;;  %v4175_v56 = vmul.f32 %v4174_v42, %v4167_v4  ;;  %v11119_v4 = vld [vmem:[%s14111_s5 + $0x1b8] sm:$0xff]  }
 0xa57   :  { %v11120_v27 = vld [vmem:[%s14111_s5 + $0x1f8] sm:$0xff]  }
 0xa58   :  { %v4176_v21 = vmul.f32 %v4174_v42, %v4168_v40  ;;  %v11121_v40 = vld [vmem:[%s14112_s6 + $0x100] sm:$0xff]  }
 0xa5a   :  { %v12945_v57 = vpack.c.bf16 %v4176_v21, %v4175_v56  ;;  %v11122_v56 = vld [vmem:[%s14112_s6 + $0x140] sm:$0xff]   ;;  %v11123_v21 = vld [vmem:[%s14112_s6 + $0x108] sm:$0xff]  }
 0xa5b   :  { %v11414_v6 = vpop.eup %11413 }
 0xa5c   :  { %v4169_v5 = vmul.f32 %v11414_v6, %v12881_v35  ;;  %10278 = vmatprep.mubr.bf16.mxu0 %v12945_v57  ;;  %10298 = vmatprep.mubr.bf16.mxu1 %v12945_v57  ;;  %v11124_v6 = vld [vmem:[%s14112_s6 + $0x148] sm:$0xff]  }
 0xa5d   :  { %v11416_v1 = vpop.eup %11415 }
 0xa5e   :  { %v4170_v28 = vmul.f32 %v11416_v1, %v12884_v11  ;;  %v4177_v38 = vmul.f32 %v4174_v42, %v4169_v5  ;;  %v11125_v5 = vld [vmem:[%s14112_s6 + $0x110] sm:$0xff]  }
 0xa5f   :  { %v11126_v1 = vld [vmem:[%s14112_s6 + $0x150] sm:$0xff]  }
 0xa60   :  { %v4178_v24 = vmul.f32 %v4174_v42, %v4170_v28  ;;  %v11118_v42 = vld [vmem:[%s14111_s5 + $0x1f0] sm:$0xff]   ;;  %v11127_v28 = vld [vmem:[%s14112_s6 + $0x118] sm:$0xff]  }
 0xa62   :  { %v12951_v44 = vpack.c.bf16 %v4178_v24, %v4177_v38  ;;  %v11128_v38 = vld [vmem:[%s14112_s6 + $0x158] sm:$0xff]   ;;  %v11129_v24 = vld [vmem:[%s14112_s6 + $0x120] sm:$0xff]  }
 0xa64   :  { %10279 = vmatmul.mubr.bf16.vlgmr.msra.gmra.mrb[64].mxu0 %v12951_v44  ;;  %10299 = vmatmul.mubr.bf16.vlgmr.msra.gmra.mrb[80].mxu1 %v12951_v44 }
 0xa65   :  { %10303 = vmatpush3.bf16.msra.mxu0 %v11073_v48  ;;  %10323 = vmatpush3.bf16.msra.mxu1 %v11074_v39  ;;  %v11101_v48 = vld [vmem:[%s14111_s5 + $0x130] sm:$0xff]  }
 0xa66   :  { %10318 = vmatprep.mubr.bf16.mxu0 %v12945_v57  ;;  %10338 = vmatprep.mubr.bf16.mxu1 %v12945_v57  ;;  %v11102_v39 = vld [vmem:[%s14111_s5 + $0x170] sm:$0xff]  }
 0xa67   :  { %10304 = vmatprep.subr.bf16.mxu0 %v11075_v9  ;;  %10324 = vmatprep.subr.bf16.mxu1 %v11076_v36 }
 0xa69   :  { %10305 = vmatpush3.bf16.msra.mxu0 %v11075_v9  ;;  %10325 = vmatpush3.bf16.msra.mxu1 %v11076_v36  ;;  %v11130_v9 = vld [vmem:[%s14112_s6 + $0x160] sm:$0xff]   ;;  %v11131_v36 = vld [vmem:[%s14112_s6 + $0x128] sm:$0xff]  }
 0xa6a   :  { %10306 = vmatprep.subr.bf16.mxu0 %v11077_v25  ;;  %10326 = vmatprep.subr.bf16.mxu1 %v11078_v32 }
 0xa6d   :  { %10307 = vmatpush3.bf16.msra.mxu0 %v11077_v25  ;;  %10327 = vmatpush3.bf16.msra.mxu1 %v11078_v32  ;;  %v11132_v25 = vld [vmem:[%s14112_s6 + $0x168] sm:$0xff]   ;;  %v11133_v32 = vld [vmem:[%s14112_s6 + $0x130] sm:$0xff]  }
 0xa6e   :  { %10308 = vmatprep.subr.bf16.mxu0 %v11079_v18  ;;  %10328 = vmatprep.subr.bf16.mxu1 %v11080_v8 }
 0xa71   :  { %10309 = vmatpush3.bf16.msra.mxu0 %v11079_v18  ;;  %10329 = vmatpush3.bf16.msra.mxu1 %v11080_v8  ;;  %v11134_v18 = vld [vmem:[%s14112_s6 + $0x170] sm:$0xff]   ;;  %v11135_v8 = vld [vmem:[%s14112_s6 + $0x138] sm:$0xff]  }
 0xa72   :  { %10310 = vmatprep.subr.bf16.mxu0 %v11081_v51  ;;  %10330 = vmatprep.subr.bf16.mxu1 %v11082_v30 }
 0xa75   :  { %10311 = vmatpush3.bf16.msra.mxu0 %v11081_v51  ;;  %10331 = vmatpush3.bf16.msra.mxu1 %v11082_v30  ;;  %v11136_v51 = vld [vmem:[%s14112_s6 + $0x178] sm:$0xff]   ;;  %v11137_v30 = vld [vmem:[%s14112_s6 + $0x180] sm:$0xff]  }
 0xa76   :  { %10312 = vmatprep.subr.bf16.mxu0 %v11083_v47  ;;  %10332 = vmatprep.subr.bf16.mxu1 %v11084_v0 }
 0xa79   :  { %10313 = vmatpush3.bf16.msra.mxu0 %v11083_v47  ;;  %10333 = vmatpush3.bf16.msra.mxu1 %v11084_v0  ;;  %v11138_v47 = vld [vmem:[%s14112_s6 + $0x1c0] sm:$0xff]   ;;  %v11139_v0 = vld [vmem:[%s14112_s6 + $0x188] sm:$0xff]  }
 0xa7a   :  { %10314 = vmatprep.subr.bf16.mxu0 %v11085_v2  ;;  %10334 = vmatprep.subr.bf16.mxu1 %v11086_v34 }
 0xa7d   :  { %10315 = vmatpush3.bf16.msra.mxu0 %v11085_v2  ;;  %10335 = vmatpush3.bf16.msra.mxu1 %v11086_v34  ;;  %v11140_v2 = vld [vmem:[%s14112_s6 + $0x1c8] sm:$0xff]   ;;  %v11141_v34 = vld [vmem:[%s14112_s6 + $0x190] sm:$0xff]  }
 0xa7e   :  { %10316 = vmatprep.subr.bf16.mxu0 %v11087_v12  ;;  %10336 = vmatprep.subr.bf16.mxu1 %v11088_v49 }
 0xa81   :  { %10317 = vmatpush3.bf16.msra.mxu0 %v11087_v12  ;;  %10337 = vmatpush3.bf16.msra.mxu1 %v11088_v49  ;;  %v11142_v12 = vld [vmem:[%s14112_s6 + $0x1d0] sm:$0xff]   ;;  %v11143_v49 = vld [vmem:[%s14112_s6 + $0x198] sm:$0xff]  }
 0xa82   :  { %10342 = vmatprep.subr.bf16.mxu0 %v11089_v59  ;;  %10362 = vmatprep.subr.bf16.mxu1 %v11090_v33 }
 0xa84   :  { %10319 = vmatmul.mubr.bf16.vlgmr.msra.gmra.mrb[68].mxu0 %v12951_v44  ;;  %10339 = vmatmul.mubr.bf16.vlgmr.msra.gmra.mrb[84].mxu1 %v12951_v44 }
 0xa85   :  { %10343 = vmatpush3.bf16.msra.mxu0 %v11089_v59  ;;  %10358 = vmatprep.mubr.bf16.mxu0 %v12945_v57  ;;  %v11144_v59 = vld [vmem:[%s14112_s6 + $0x1d8] sm:$0xff]  }
 0xa86   :  { %10363 = vmatpush3.bf16.msra.mxu1 %v11090_v33  ;;  %10378 = vmatprep.mubr.bf16.mxu1 %v12945_v57  ;;  %v11145_v33 = vld [vmem:[%s14112_s6 + $0x1a0] sm:$0xff]  }
 0xa87   :  { %10344 = vmatprep.subr.bf16.mxu0 %v11091_v15  ;;  %10364 = vmatprep.subr.bf16.mxu1 %v11092_v29 }
 0xa89   :  { %10345 = vmatpush3.bf16.msra.mxu0 %v11091_v15  ;;  %v11146_v15 = vld [vmem:[%s14112_s6 + $0x1e0] sm:$0xff]  }
 0xa8a   :  { %10365 = vmatpush3.bf16.msra.mxu1 %v11092_v29  ;;  %10346 = vmatprep.subr.bf16.mxu0 %v11093_v13  ;;  %v11147_v29 = vld [vmem:[%s14112_s6 + $0x1a8] sm:$0xff]  }
 0xa8b   :  { %10366 = vmatprep.subr.bf16.mxu1 %v11094_v60 }
 0xa8d   :  { %10347 = vmatpush3.bf16.msra.mxu0 %v11093_v13  ;;  %v11148_v13 = vld [vmem:[%s14112_s6 + $0x1e8] sm:$0xff]  }
 0xa8e   :  { %10367 = vmatpush3.bf16.msra.mxu1 %v11094_v60  ;;  %10348 = vmatprep.subr.bf16.mxu0 %v11095_v50  ;;  %v11149_v60 = vld [vmem:[%s14112_s6 + $0x1b0] sm:$0xff]  }
 0xa8f   :  { %10368 = vmatprep.subr.bf16.mxu1 %v11096_v54 }
 0xa91   :  { %10349 = vmatpush3.bf16.msra.mxu0 %v11095_v50  ;;  %v11150_v50 = vld [vmem:[%s14112_s6 + $0x1f0] sm:$0xff]  }
 0xa92   :  { %10369 = vmatpush3.bf16.msra.mxu1 %v11096_v54  ;;  %10350 = vmatprep.subr.bf16.mxu0 %v11097_v31  ;;  %v11151_v54 = vld [vmem:[%s14112_s6 + $0x1b8] sm:$0xff]  }
 0xa93   :  { %10370 = vmatprep.subr.bf16.mxu1 %v11098_v23 }
 0xa95   :  { %10351 = vmatpush3.bf16.msra.mxu0 %v11097_v31  ;;  %v11152_v31 = vld [vmem:[%s14112_s6 + $0x1f8] sm:$0xff]  }
 0xa96   :  { %10371 = vmatpush3.bf16.msra.mxu1 %v11098_v23  ;;  %10352 = vmatprep.subr.bf16.mxu0 %v11099_v62  ;;  %v11153_v23 = vld [vmem:[%s14114_s7 + $0x100] sm:$0xff]  }
 0xa97   :  { %10372 = vmatprep.subr.bf16.mxu1 %v11100_v10 }
 0xa99   :  { %10353 = vmatpush3.bf16.msra.mxu0 %v11099_v62  ;;  %v11154_v62 = vld [vmem:[%s14114_s7 + $0x140] sm:$0xff]  }
 0xa9a   :  { %10373 = vmatpush3.bf16.msra.mxu1 %v11100_v10  ;;  %10354 = vmatprep.subr.bf16.mxu0 %v11101_v48  ;;  %v11155_v10 = vld [vmem:[%s14114_s7 + $0x108] sm:$0xff]  }
 0xa9b   :  { %10374 = vmatprep.subr.bf16.mxu1 %v11102_v39 }
 0xa9d   :  { %10355 = vmatpush3.bf16.msra.mxu0 %v11101_v48  ;;  %v11156_v48 = vld [vmem:[%s14114_s7 + $0x148] sm:$0xff]  }
 0xa9e   :  { %10375 = vmatpush3.bf16.msra.mxu1 %v11102_v39  ;;  %10356 = vmatprep.subr.bf16.mxu0 %v11103_v26  ;;  %v11157_v39 = vld [vmem:[%s14114_s7 + $0x110] sm:$0xff]  }
 0xa9f   :  { %10376 = vmatprep.subr.bf16.mxu1 %v11104_v37 }
 0xaa1   :  { %10357 = vmatpush3.bf16.msra.mxu0 %v11103_v26  ;;  %v11158_v26 = vld [vmem:[%s14114_s7 + $0x150] sm:$0xff]  }
 0xaa2   :  { %10377 = vmatpush3.bf16.msra.mxu1 %v11104_v37  ;;  %10382 = vmatprep.subr.bf16.mxu0 %v11105_v61  ;;  %v11159_v37 = vld [vmem:[%s14114_s7 + $0x118] sm:$0xff]  }
 0xaa3   :  { %10402 = vmatprep.subr.bf16.mxu1 %v11106_v17 }
 0xaa4   :  { %10359 = vmatmul.mubr.bf16.vlgmr.msra.gmra.mrb[72].mxu0 %v12951_v44 }
 0xaa5   :  { %10379 = vmatmul.mubr.bf16.vlgmr.msra.gmra.mrb[88].mxu1 %v12951_v44  ;;  %10383 = vmatpush3.bf16.msra.mxu0 %v11105_v61  ;;  %v11160_v61 = vld [vmem:[%s14114_s7 + $0x158] sm:$0xff]  }
 0xaa6   :  { %10398 = vmatprep.mubr.bf16.mxu0 %v12945_v57  ;;  %10403 = vmatpush3.bf16.msra.mxu1 %v11106_v17  ;;  %v11161_v17 = vld [vmem:[%s14114_s7 + $0x120] sm:$0xff]  }
 0xaa7   :  { %10418 = vmatprep.mubr.bf16.mxu1 %v12945_v57  ;;  %10384 = vmatprep.subr.bf16.mxu0 %v11107_v14 }
 0xaa8   :  { %10404 = vmatprep.subr.bf16.mxu1 %v11108_v22 }
 0xaa9   :  { %10385 = vmatpush3.bf16.msra.mxu0 %v11107_v14  ;;  %v11162_v14 = vld [vmem:[%s14114_s7 + $0x160] sm:$0xff]  }
 0xaaa   :  { %10405 = vmatpush3.bf16.msra.mxu1 %v11108_v22  ;;  %10386 = vmatprep.subr.bf16.mxu0 %v11109_v19  ;;  %v11163_v22 = vld [vmem:[%s14114_s7 + $0x128] sm:$0xff]  }
 0xaab   :  { %10406 = vmatprep.subr.bf16.mxu1 %v11110_v20 }
 0xaad   :  { %10387 = vmatpush3.bf16.msra.mxu0 %v11109_v19  ;;  %v11164_v19 = vld [vmem:[%s14114_s7 + $0x168] sm:$0xff]  }
 0xaae   :  { %10407 = vmatpush3.bf16.msra.mxu1 %v11110_v20  ;;  %10388 = vmatprep.subr.bf16.mxu0 %v11111_v45  ;;  %v11165_v20 = vld [vmem:[%s14114_s7 + $0x130] sm:$0xff]  }
 0xaaf   :  { %10408 = vmatprep.subr.bf16.mxu1 %v11112_v41 }
 0xab1   :  { %10389 = vmatpush3.bf16.msra.mxu0 %v11111_v45  ;;  %v11166_v45 = vld [vmem:[%s14114_s7 + $0x170] sm:$0xff]  }
 0xab2   :  { %10409 = vmatpush3.bf16.msra.mxu1 %v11112_v41  ;;  %10390 = vmatprep.subr.bf16.mxu0 %v11113_v52  ;;  %v11167_v41 = vld [vmem:[%s14114_s7 + $0x138] sm:$0xff]  }
 0xab3   :  { %10410 = vmatprep.subr.bf16.mxu1 %v11114_v63 }
 0xab5   :  { %10391 = vmatpush3.bf16.msra.mxu0 %v11113_v52  ;;  %v11168_v52 = vld [vmem:[%s14114_s7 + $0x178] sm:$0xff]  }
 0xab6   :  { %10411 = vmatpush3.bf16.msra.mxu1 %v11114_v63  ;;  %10392 = vmatprep.subr.bf16.mxu0 %v11115_v3  ;;  %v11169_v63 = vld [vmem:[%s14114_s7 + $0x180] sm:$0xff]  }
 0xab7   :  { %10412 = vmatprep.subr.bf16.mxu1 %v11116_v58 }
 0xab9   :  { %10393 = vmatpush3.bf16.msra.mxu0 %v11115_v3  ;;  %v11170_v3 = vld [vmem:[%s14114_s7 + $0x1c0] sm:$0xff]  }
 0xaba   :  { %10413 = vmatpush3.bf16.msra.mxu1 %v11116_v58  ;;  %10394 = vmatprep.subr.bf16.mxu0 %v11117_v16  ;;  %v11171_v58 = vld [vmem:[%s14114_s7 + $0x188] sm:$0xff]  }
 0xabb   :  { %10414 = vmatprep.subr.bf16.mxu1 %v11118_v42 }
 0xabd   :  { %10395 = vmatpush3.bf16.msra.mxu0 %v11117_v16  ;;  %v11172_v16 = vld [vmem:[%s14114_s7 + $0x1c8] sm:$0xff]  }
 0xabe   :  { %10415 = vmatpush3.bf16.msra.mxu1 %v11118_v42  ;;  %10396 = vmatprep.subr.bf16.mxu0 %v11119_v4  ;;  %v11173_v42 = vld [vmem:[%s14114_s7 + $0x190] sm:$0xff]  }
 0xabf   :  { %10416 = vmatprep.subr.bf16.mxu1 %v11120_v27 }
 0xac1   :  { %10397 = vmatpush3.bf16.msra.mxu0 %v11119_v4  ;;  %v11174_v4 = vld [vmem:[%s14114_s7 + $0x1d0] sm:$0xff]  }
 0xac2   :  { %10417 = vmatpush3.bf16.msra.mxu1 %v11120_v27  ;;  %10422 = vmatprep.subr.bf16.mxu0 %v11121_v40  ;;  %v11175_v27 = vld [vmem:[%s14114_s7 + $0x198] sm:$0xff]  }
 0xac3   :  { %10442 = vmatprep.subr.bf16.mxu1 %v11122_v56 }
 0xac4   :  { %10399 = vmatmul.mubr.bf16.vlgmr.msra.gmra.mrb[76].mxu0 %v12951_v44 }
 0xac5   :  { %10419 = vmatmul.mubr.bf16.vlgmr.msra.gmra.mrb[92].mxu1 %v12951_v44  ;;  %10423 = vmatpush3.bf16.msra.mxu0 %v11121_v40  ;;  %v11176_v40 = vld [vmem:[%s14114_s7 + $0x1d8] sm:$0xff]  }
 0xac6   :  { %10438 = vmatprep.mubr.bf16.mxu0 %v12945_v57  ;;  %10443 = vmatpush3.bf16.msra.mxu1 %v11122_v56  ;;  %v11177_v56 = vld [vmem:[%s14114_s7 + $0x1a0] sm:$0xff]  }
 0xac7   :  { %10458 = vmatprep.mubr.bf16.mxu1 %v12945_v57  ;;  %10424 = vmatprep.subr.bf16.mxu0 %v11123_v21 }
 0xac8   :  { %10444 = vmatprep.subr.bf16.mxu1 %v11124_v6 }
 0xac9   :  { %10425 = vmatpush3.bf16.msra.mxu0 %v11123_v21  ;;  %v11178_v21 = vld [vmem:[%s14114_s7 + $0x1e0] sm:$0xff]  }
 0xaca   :  { %10445 = vmatpush3.bf16.msra.mxu1 %v11124_v6  ;;  %10426 = vmatprep.subr.bf16.mxu0 %v11125_v5  ;;  %v11179_v6 = vld [vmem:[%s14114_s7 + $0x1a8] sm:$0xff]  }
 0xacb   :  { %10446 = vmatprep.subr.bf16.mxu1 %v11126_v1 }
 0xacd   :  { %10427 = vmatpush3.bf16.msra.mxu0 %v11125_v5  ;;  %v11180_v5 = vld [vmem:[%s14114_s7 + $0x1e8] sm:$0xff]  }
 0xace   :  { %10447 = vmatpush3.bf16.msra.mxu1 %v11126_v1  ;;  %10428 = vmatprep.subr.bf16.mxu0 %v11127_v28  ;;  %v11181_v1 = vld [vmem:[%s14114_s7 + $0x1b0] sm:$0xff]  }
 0xacf   :  { %10448 = vmatprep.subr.bf16.mxu1 %v11128_v38 }
 0xad1   :  { %10429 = vmatpush3.bf16.msra.mxu0 %v11127_v28 }
 0xad2   :  { %10449 = vmatpush3.bf16.msra.mxu1 %v11128_v38  ;;  %10430 = vmatprep.subr.bf16.mxu0 %v11129_v24 }
 0xad3   :  { %10450 = vmatprep.subr.bf16.mxu1 %v11130_v9 }
 0xad5   :  { %10431 = vmatpush3.bf16.msra.mxu0 %v11129_v24  ;;  %v11182_v24 = vld [vmem:[%s14114_s7 + $0x1f0] sm:$0xff]  }
 0xad6   :  { %10451 = vmatpush3.bf16.msra.mxu1 %v11130_v9  ;;  %10432 = vmatprep.subr.bf16.mxu0 %v11131_v36 }
 0xad7   :  { %10452 = vmatprep.subr.bf16.mxu1 %v11132_v25 }
 0xad9   :  { %10433 = vmatpush3.bf16.msra.mxu0 %v11131_v36 }
 0xada   :  { %10453 = vmatpush3.bf16.msra.mxu1 %v11132_v25  ;;  %10434 = vmatprep.subr.bf16.mxu0 %v11133_v32 }
 0xadb   :  { %10454 = vmatprep.subr.bf16.mxu1 %v11134_v18 }
 0xadd   :  { %10435 = vmatpush3.bf16.msra.mxu0 %v11133_v32 }
 0xade   :  { %10455 = vmatpush3.bf16.msra.mxu1 %v11134_v18  ;;  %10436 = vmatprep.subr.bf16.mxu0 %v11135_v8 }
 0xadf   :  { %10456 = vmatprep.subr.bf16.mxu1 %v11136_v51 }
 0xae1   :  { %10437 = vmatpush3.bf16.msra.mxu0 %v11135_v8 }
 0xae2   :  { %10457 = vmatpush3.bf16.msra.mxu1 %v11136_v51  ;;  %10462 = vmatprep.subr.bf16.mxu0 %v11137_v30  ;;  %v11183_v51 = vld [vmem:[%s14114_s7 + $0x1b8] sm:$0xff]  }
 0xae3   :  { %10482 = vmatprep.subr.bf16.mxu1 %v11138_v47 }
 0xae4   :  { %10439 = vmatmul.mubr.bf16.vlgmr.msra.gmra.mrb[80].mxu0 %v12951_v44 }
 0xae5   :  { %10459 = vmatmul.mubr.bf16.vlgmr.msra.gmra.mrb[96].mxu1 %v12951_v44  ;;  %10463 = vmatpush3.bf16.msra.mxu0 %v11137_v30  ;;  %v11184_v30 = vld [vmem:[%s14114_s7 + $0x1f8] sm:$0xff]  }
 0xae6   :  { %10478 = vmatprep.mubr.bf16.mxu0 %v12945_v57  ;;  %10483 = vmatpush3.bf16.msra.mxu1 %v11138_v47  ;;  %v11185_v47 = vld [vmem:[%s14115_s8 + $0x100] sm:$0xff]  }
 0xae7   :  { %10498 = vmatprep.mubr.bf16.mxu1 %v12945_v57  ;;  %10464 = vmatprep.subr.bf16.mxu0 %v11139_v0 }
 0xae8   :  { %10484 = vmatprep.subr.bf16.mxu1 %v11140_v2 }
 0xae9   :  { %10465 = vmatpush3.bf16.msra.mxu0 %v11139_v0  ;;  %v11186_v0 = vld [vmem:[%s14115_s8 + $0x140] sm:$0xff]  }
 0xaea   :  { %10485 = vmatpush3.bf16.msra.mxu1 %v11140_v2  ;;  %10466 = vmatprep.subr.bf16.mxu0 %v11141_v34  ;;  %v11187_v2 = vld [vmem:[%s14115_s8 + $0x108] sm:$0xff]  }
 0xaeb   :  { %10486 = vmatprep.subr.bf16.mxu1 %v11142_v12 }
 0xaed   :  { %10467 = vmatpush3.bf16.msra.mxu0 %v11141_v34  ;;  %v11188_v34 = vld [vmem:[%s14115_s8 + $0x148] sm:$0xff]  }
 0xaee   :  { %10487 = vmatpush3.bf16.msra.mxu1 %v11142_v12  ;;  %10468 = vmatprep.subr.bf16.mxu0 %v11143_v49  ;;  %v11189_v12 = vld [vmem:[%s14115_s8 + $0x110] sm:$0xff]  }
 0xaef   :  { %10488 = vmatprep.subr.bf16.mxu1 %v11144_v59 }
 0xaf1   :  { %10469 = vmatpush3.bf16.msra.mxu0 %v11143_v49  ;;  %v11190_v49 = vld [vmem:[%s14115_s8 + $0x150] sm:$0xff]  }
 0xaf2   :  { %10489 = vmatpush3.bf16.msra.mxu1 %v11144_v59  ;;  %10470 = vmatprep.subr.bf16.mxu0 %v11145_v33  ;;  %v11191_v59 = vld [vmem:[%s14115_s8 + $0x118] sm:$0xff]  }
 0xaf3   :  { %10490 = vmatprep.subr.bf16.mxu1 %v11146_v15 }
 0xaf5   :  { %10471 = vmatpush3.bf16.msra.mxu0 %v11145_v33  ;;  %v11192_v33 = vld [vmem:[%s14115_s8 + $0x158] sm:$0xff]  }
 0xaf6   :  { %10491 = vmatpush3.bf16.msra.mxu1 %v11146_v15  ;;  %10472 = vmatprep.subr.bf16.mxu0 %v11147_v29  ;;  %v11193_v15 = vld [vmem:[%s14115_s8 + $0x120] sm:$0xff]  }
 0xaf7   :  { %10492 = vmatprep.subr.bf16.mxu1 %v11148_v13 }
 0xaf9   :  { %10473 = vmatpush3.bf16.msra.mxu0 %v11147_v29  ;;  %v11194_v29 = vld [vmem:[%s14115_s8 + $0x160] sm:$0xff]  }
 0xafa   :  { %10493 = vmatpush3.bf16.msra.mxu1 %v11148_v13  ;;  %10474 = vmatprep.subr.bf16.mxu0 %v11149_v60  ;;  %v11195_v13 = vld [vmem:[%s14115_s8 + $0x128] sm:$0xff]  }
 0xafb   :  { %10494 = vmatprep.subr.bf16.mxu1 %v11150_v50 }
 0xafd   :  { %10475 = vmatpush3.bf16.msra.mxu0 %v11149_v60  ;;  %v11196_v60 = vld [vmem:[%s14115_s8 + $0x168] sm:$0xff]  }
 0xafe   :  { %10495 = vmatpush3.bf16.msra.mxu1 %v11150_v50  ;;  %10476 = vmatprep.subr.bf16.mxu0 %v11151_v54  ;;  %v11197_v50 = vld [vmem:[%s14115_s8 + $0x130] sm:$0xff]  }
 0xaff   :  { %10496 = vmatprep.subr.bf16.mxu1 %v11152_v31 }
 0xb01   :  { %10477 = vmatpush3.bf16.msra.mxu0 %v11151_v54 }
 0xb02   :  { %10497 = vmatpush3.bf16.msra.mxu1 %v11152_v31  ;;  %10502 = vmatprep.subr.bf16.mxu0 %v11153_v23 }
 0xb03   :  { %10522 = vmatprep.subr.bf16.mxu1 %v11154_v62 }
 0xb04   :  { %10479 = vmatmul.mubr.bf16.vlgmr.msra.gmra.mrb[84].mxu0 %v12951_v44 }
 0xb05   :  { %10499 = vmatmul.mubr.bf16.vlgmr.msra.gmra.mrb[100].mxu1 %v12951_v44  ;;  %10503 = vmatpush3.bf16.msra.mxu0 %v11153_v23  ;;  %v11198_v23 = vld [vmem:[%s14115_s8 + $0x170] sm:$0xff]  }
 0xb06   :  { %10518 = vmatprep.mubr.bf16.mxu0 %v12945_v57  ;;  %10523 = vmatpush3.bf16.msra.mxu1 %v11154_v62 }
 0xb07   :  { %10538 = vmatprep.mubr.bf16.mxu1 %v12945_v57  ;;  %10504 = vmatprep.subr.bf16.mxu0 %v11155_v10 }
 0xb08   :  { %10524 = vmatprep.subr.bf16.mxu1 %v11156_v48 }
 0xb09   :  { %10505 = vmatpush3.bf16.msra.mxu0 %v11155_v10 }
 0xb0a   :  { %10525 = vmatpush3.bf16.msra.mxu1 %v11156_v48  ;;  %10506 = vmatprep.subr.bf16.mxu0 %v11157_v39 }
 0xb0b   :  { %10526 = vmatprep.subr.bf16.mxu1 %v11158_v26 }
 0xb0d   :  { %10507 = vmatpush3.bf16.msra.mxu0 %v11157_v39 }
 0xb0e   :  { %10527 = vmatpush3.bf16.msra.mxu1 %v11158_v26  ;;  %10508 = vmatprep.subr.bf16.mxu0 %v11159_v37 }
 0xb0f   :  { %10528 = vmatprep.subr.bf16.mxu1 %v11160_v61 }
 0xb11   :  { %10509 = vmatpush3.bf16.msra.mxu0 %v11159_v37 }
 0xb12   :  { %10529 = vmatpush3.bf16.msra.mxu1 %v11160_v61  ;;  %10510 = vmatprep.subr.bf16.mxu0 %v11161_v17  ;;  %v11199_v61 = vld [vmem:[%s14115_s8 + $0x138] sm:$0xff]  }
 0xb13   :  { %10530 = vmatprep.subr.bf16.mxu1 %v11162_v14 }
 0xb15   :  { %10511 = vmatpush3.bf16.msra.mxu0 %v11161_v17  ;;  %v11200_v17 = vld [vmem:[%s14115_s8 + $0x178] sm:$0xff]  }
 0xb16   :  { %10531 = vmatpush3.bf16.msra.mxu1 %v11162_v14  ;;  %10512 = vmatprep.subr.bf16.mxu0 %v11163_v22  ;;  %v11201_v14 = vld [vmem:[%s14115_s8 + $0x180] sm:$0xff]  }
 0xb17   :  { %10532 = vmatprep.subr.bf16.mxu1 %v11164_v19 }
 0xb19   :  { %10513 = vmatpush3.bf16.msra.mxu0 %v11163_v22  ;;  %v11202_v22 = vld [vmem:[%s14115_s8 + $0x1c0] sm:$0xff]  }
 0xb1a   :  { %10533 = vmatpush3.bf16.msra.mxu1 %v11164_v19  ;;  %10514 = vmatprep.subr.bf16.mxu0 %v11165_v20  ;;  %v11203_v19 = vld [vmem:[%s14115_s8 + $0x188] sm:$0xff]  }
 0xb1b   :  { %10534 = vmatprep.subr.bf16.mxu1 %v11166_v45 }
 0xb1d   :  { %10515 = vmatpush3.bf16.msra.mxu0 %v11165_v20  ;;  %v11204_v20 = vld [vmem:[%s14115_s8 + $0x1c8] sm:$0xff]  }
 0xb1e   :  { %10535 = vmatpush3.bf16.msra.mxu1 %v11166_v45  ;;  %10516 = vmatprep.subr.bf16.mxu0 %v11167_v41  ;;  %v11205_v45 = vld [vmem:[%s14115_s8 + $0x190] sm:$0xff]  }
 0xb1f   :  { %10536 = vmatprep.subr.bf16.mxu1 %v11168_v52 }
 0xb21   :  { %10517 = vmatpush3.bf16.msra.mxu0 %v11167_v41  ;;  %v11206_v41 = vld [vmem:[%s14115_s8 + $0x1d0] sm:$0xff]  }
 0xb22   :  { %10537 = vmatpush3.bf16.msra.mxu1 %v11168_v52  ;;  %10542 = vmatprep.subr.bf16.mxu0 %v11169_v63  ;;  %v11207_v52 = vld [vmem:[%s14115_s8 + $0x198] sm:$0xff]  }
 0xb23   :  { %10562 = vmatprep.subr.bf16.mxu1 %v11170_v3 }
 0xb24   :  { %10519 = vmatmul.mubr.bf16.vlgmr.msra.gmra.mrb[88].mxu0 %v12951_v44 }
 0xb25   :  { %10539 = vmatmul.mubr.bf16.vlgmr.msra.gmra.mrb[104].mxu1 %v12951_v44  ;;  %10543 = vmatpush3.bf16.msra.mxu0 %v11169_v63  ;;  %v11208_v63 = vld [vmem:[%s14115_s8 + $0x1d8] sm:$0xff]  }
 0xb26   :  { %10558 = vmatprep.mubr.bf16.mxu0 %v12945_v57  ;;  %10563 = vmatpush3.bf16.msra.mxu1 %v11170_v3  ;;  %v11210_v3 = vld [vmem:[%s14115_s8 + $0x1e0] sm:$0xff]  }
 0xb27   :  { %10578 = vmatprep.mubr.bf16.mxu1 %v12945_v57  ;;  %10544 = vmatprep.subr.bf16.mxu0 %v11171_v58 }
 0xb28   :  { %10564 = vmatprep.subr.bf16.mxu1 %v11172_v16 }
 0xb29   :  { %10545 = vmatpush3.bf16.msra.mxu0 %v11171_v58  ;;  %v11211_v58 = vld [vmem:[%s14115_s8 + $0x1a8] sm:$0xff]  }
 0xb2a   :  { %10565 = vmatpush3.bf16.msra.mxu1 %v11172_v16  ;;  %10546 = vmatprep.subr.bf16.mxu0 %v11173_v42  ;;  %v11212_v16 = vld [vmem:[%s14115_s8 + $0x1e8] sm:$0xff]  }
 0xb2b   :  { %10566 = vmatprep.subr.bf16.mxu1 %v11174_v4 }
 0xb2d   :  { %10547 = vmatpush3.bf16.msra.mxu0 %v11173_v42  ;;  %v11213_v42 = vld [vmem:[%s14115_s8 + $0x1b0] sm:$0xff]  }
 0xb2e   :  { %10567 = vmatpush3.bf16.msra.mxu1 %v11174_v4  ;;  %10548 = vmatprep.subr.bf16.mxu0 %v11175_v27  ;;  %v13441_v4 = vld [vmem:[%s14116_s14 + $0x10] sm:$0xff] }
 0xb2f   :  { %10568 = vmatprep.subr.bf16.mxu1 %v11176_v40 }
 0xb31   :  { %10549 = vmatpush3.bf16.msra.mxu0 %v11175_v27 }
 0xb32   :  { %10569 = vmatpush3.bf16.msra.mxu1 %v11176_v40  ;;  %10550 = vmatprep.subr.bf16.mxu0 %v11177_v56 }
 0xb33   :  { %10570 = vmatprep.subr.bf16.mxu1 %v11178_v21 }
 0xb35   :  { %10551 = vmatpush3.bf16.msra.mxu0 %v11177_v56 }
 0xb36   :  { %10571 = vmatpush3.bf16.msra.mxu1 %v11178_v21  ;;  %10552 = vmatprep.subr.bf16.mxu0 %v11179_v6  ;;  %v11214_v21 = vld [vmem:[%s14115_s8 + $0x1f0] sm:$0xff]  }
 0xb37   :  { %v13302_v28 = vpop.f32.mrb[64].mxu0  ;;  %v13304_v38 = vpop.f32.mrb[80].mxu1  ;;  %10572 = vmatprep.subr.bf16.mxu1 %v11180_v5 }
 0xb38   :  { %v13309_v9 = vpop.f32.mrb[65].mxu0  ;;  %v13311_v36 = vpop.f32.mrb[81].mxu1  ;;  %v4636_v27 = vmul.f32 %v13441_v4, %v13302_v28  ;;  %v4640_v40 = vmul.f32 %v13441_v4, %v13304_v38  ;;  %v13462_v28 = vld [vmem:[%s14116_s14 + $0x18] sm:$0xff] }
 0xb39   :  { %10553 = vmatpush3.bf16.msra.mxu0 %v11179_v6  ;;  %v13313_v25 = vpop.f32.mrb[66].mxu0  ;;  %v13315_v32 = vpop.f32.mrb[82].mxu1  ;;  %v13453_v6 = vld [vmem:[%s14116_s14] sm:$0xff] }
 0xb3a   :  { %10573 = vmatpush3.bf16.msra.mxu1 %v11180_v5  ;;  %v13317_v18 = vpop.f32.mrb[67].mxu0  ;;  %v13319_v8 = vpop.f32.mrb[83].mxu1  ;;  %10554 = vmatprep.subr.bf16.mxu0 %v11181_v1  ;;  %v4634_v5 = vmul.f32 %v13453_v6, %v13309_v9  ;;  %v4637_v38 = vmul.f32 %v13462_v28, %v13313_v25 }
 0xb3b   :  { %10574 = vmatprep.subr.bf16.mxu1 %v11182_v24 }
 0xb3d   :  { %10555 = vmatpush3.bf16.msra.mxu0 %v11181_v1  ;;  %v4638_v1 = vmul.f32 %v13453_v6, %v13311_v36  ;;  %v4641_v36 = vmul.f32 %v13462_v28, %v13315_v32 }
 0xb3e   :  { %10575 = vmatpush3.bf16.msra.mxu1 %v11182_v24  ;;  %10556 = vmatprep.subr.bf16.mxu0 %v11183_v51  ;;  %v13469_v24 = vld [vmem:[%s14117_s15 + $0x10] sm:$0xff] }
 0xb3f   :  { %10576 = vmatprep.subr.bf16.mxu1 %v11184_v30 }
 0xb41   :  { %10557 = vmatpush3.bf16.msra.mxu0 %v11183_v51 }
 0xb42   :  { %10577 = vmatpush3.bf16.msra.mxu1 %v11184_v30  ;;  %10582 = vmatprep.subr.bf16.mxu0 %v11185_v47 }
 0xb43   :  { %10602 = vmatprep.subr.bf16.mxu1 %v11186_v0 }
 0xb44   :  { %10559 = vmatmul.mubr.bf16.vlgmr.msra.gmra.mrb[92].mxu0 %v12951_v44 }
 0xb45   :  { %10579 = vmatmul.mubr.bf16.vlgmr.msra.gmra.mrb[108].mxu1 %v12951_v44  ;;  %10583 = vmatpush3.bf16.msra.mxu0 %v11185_v47  ;;  %v13477_v47 = vld [vmem:[%s14116_s14 + $0x8] sm:$0xff] }
 0xb46   :  { %10598 = vmatprep.mubr.bf16.mxu0 %v12945_v57  ;;  %10603 = vmatpush3.bf16.msra.mxu1 %v11186_v0  ;;  %v4635_v25 = vmul.f32 %v13477_v47, %v13317_v18  ;;  %v13494_v18 = vld [vmem:[%s14117_s15 + $0x18] sm:$0xff] }
 0xb47   :  { %10618 = vmatprep.mubr.bf16.mxu1 %v12945_v57  ;;  %10584 = vmatprep.subr.bf16.mxu0 %v11187_v2 }
 0xb48   :  { %10604 = vmatprep.subr.bf16.mxu1 %v11188_v34 }
 0xb49   :  { %10585 = vmatpush3.bf16.msra.mxu0 %v11187_v2  ;;  %v13485_v2 = vld [vmem:[%s14117_s15] sm:$0xff] }
 0xb4a   :  { %10605 = vmatpush3.bf16.msra.mxu1 %v11188_v34  ;;  %10586 = vmatprep.subr.bf16.mxu0 %v11189_v12 }
 0xb4b   :  { %10606 = vmatprep.subr.bf16.mxu1 %v11190_v49 }
 0xb4d   :  { %10587 = vmatpush3.bf16.msra.mxu0 %v11189_v12 }
 0xb4e   :  { %10607 = vmatpush3.bf16.msra.mxu1 %v11190_v49  ;;  %10588 = vmatprep.subr.bf16.mxu0 %v11191_v59 }
 0xb4f   :  { %10608 = vmatprep.subr.bf16.mxu1 %v11192_v33 }
 0xb51   :  { %10589 = vmatpush3.bf16.msra.mxu0 %v11191_v59 }
 0xb52   :  { %10609 = vmatpush3.bf16.msra.mxu1 %v11192_v33  ;;  %10590 = vmatprep.subr.bf16.mxu0 %v11193_v15 }
 0xb53   :  { %10610 = vmatprep.subr.bf16.mxu1 %v11194_v29 }
 0xb55   :  { %10591 = vmatpush3.bf16.msra.mxu0 %v11193_v15 }
 0xb56   :  { %10611 = vmatpush3.bf16.msra.mxu1 %v11194_v29  ;;  %10592 = vmatprep.subr.bf16.mxu0 %v11195_v13 }
 0xb57   :  { %v13370_v54 = vpop.f32.mrb[68].mxu0  ;;  %v13372_v31 = vpop.f32.mrb[84].mxu1  ;;  %10612 = vmatprep.subr.bf16.mxu1 %v11196_v60 }
 0xb58   :  { %v13377_v62 = vpop.f32.mrb[69].mxu0  ;;  %v13379_v10 = vpop.f32.mrb[85].mxu1 }
 0xb59   :  { %v13381_v48 = vpop.f32.mrb[70].mxu0  ;;  %v13383_v39 = vpop.f32.mrb[86].mxu1  ;;  %10593 = vmatpush3.bf16.msra.mxu0 %v11195_v13  ;;  %v11215_v13 = vld [vmem:[%s14115_s8 + $0x1b8] sm:$0xff]  }
 0xb5a   :  { %10613 = vmatpush3.bf16.msra.mxu1 %v11196_v60  ;;  %v13385_v26 = vpop.f32.mrb[71].mxu0  ;;  %v13387_v37 = vpop.f32.mrb[87].mxu1  ;;  %10594 = vmatprep.subr.bf16.mxu0 %v11197_v50 }
 0xb5b   :  { %10614 = vmatprep.subr.bf16.mxu1 %v11198_v23 }
 0xb5d   :  { %10595 = vmatpush3.bf16.msra.mxu0 %v11197_v50 }
 0xb5e   :  { %10615 = vmatpush3.bf16.msra.mxu1 %v11198_v23  ;;  %10596 = vmatprep.subr.bf16.mxu0 %v11199_v61 }
 0xb5f   :  { %10616 = vmatprep.subr.bf16.mxu1 %v11200_v17 }
 0xb61   :  { %10597 = vmatpush3.bf16.msra.mxu0 %v11199_v61  ;;  %v13506_v61 = vld [vmem:[%s14117_s15 + $0x8] sm:$0xff] }
 0xb62   :  { %10617 = vmatpush3.bf16.msra.mxu1 %v11200_v17  ;;  %10622 = vmatprep.subr.bf16.mxu0 %v11201_v14 }
 0xb63   :  { %10642 = vmatprep.subr.bf16.mxu1 %v11202_v22 }
 0xb64   :  { %10599 = vmatmul.mubr.bf16.vlgmr.msra.gmra.mrb[96].mxu0 %v12951_v44 }
 0xb65   :  { %10619 = vmatmul.mubr.bf16.vlgmr.msra.gmra.mrb[112].mxu1 %v12951_v44  ;;  %10623 = vmatpush3.bf16.msra.mxu0 %v11201_v14 }
 0xb66   :  { %10638 = vmatprep.mubr.bf16.mxu0 %v12945_v57  ;;  %10643 = vmatpush3.bf16.msra.mxu1 %v11202_v22  ;;  %v11216_v22 = vld [vmem:[%s14115_s8 + $0x1f8] sm:$0xff]  }
 0xb67   :  { %10658 = vmatprep.mubr.bf16.mxu1 %v12945_v57  ;;  %10624 = vmatprep.subr.bf16.mxu0 %v11203_v19  ;;  %v11209_v57 = vld [vmem:[%s14115_s8 + $0x1a0] sm:$0xff]  }
 0xb68   :  { %10644 = vmatprep.subr.bf16.mxu1 %v11204_v20 }
 0xb69   :  { %10625 = vmatpush3.bf16.msra.mxu0 %v11203_v19  ;;  %v4639_v19 = vmul.f32 %v13477_v47, %v13319_v8 }
 0xb6a   :  { %10645 = vmatpush3.bf16.msra.mxu1 %v11204_v20  ;;  %10626 = vmatprep.subr.bf16.mxu0 %v11205_v45 }
 0xb6b   :  { %10646 = vmatprep.subr.bf16.mxu1 %v11206_v41 }
 0xb6d   :  { %10627 = vmatpush3.bf16.msra.mxu0 %v11205_v45 }
 0xb6e   :  { %10647 = vmatpush3.bf16.msra.mxu1 %v11206_v41  ;;  %10628 = vmatprep.subr.bf16.mxu0 %v11207_v52 }
 0xb6f   :  { %10648 = vmatprep.subr.bf16.mxu1 %v11208_v63 }
 0xb71   :  { %10629 = vmatpush3.bf16.msra.mxu0 %v11207_v52 }
 0xb72   :  { %10649 = vmatpush3.bf16.msra.mxu1 %v11208_v63  ;;  %10630 = vmatprep.subr.bf16.mxu0 %v11209_v57 }
 0xb73   :  { %10650 = vmatprep.subr.bf16.mxu1 %v11210_v3 }
 0xb75   :  { %10631 = vmatpush3.bf16.msra.mxu0 %v11209_v57 }
 0xb76   :  { %10651 = vmatpush3.bf16.msra.mxu1 %v11210_v3  ;;  %10632 = vmatprep.subr.bf16.mxu0 %v11211_v58 }
 0xb77   :  { %v10360_v56 = vpop.f32.mrb[72].mxu0  ;;  %10652 = vmatprep.subr.bf16.mxu1 %v11212_v16 }
 0xb78   :  { %v5105_v51 = vmul.f32 %v13469_v24, %v10360_v56  ;;  %v10380_v30 = vpop.f32.mrb[88].mxu1  ;;  %v4797_v9 = vpop.f32.mrb[73].mxu0  ;;  %v4642_v56 = vmul.f32 %v13453_v6, %v13377_v62  ;;  %v4643_v62 = vmul.f32 %v13477_v47, %v13385_v26  ;;  %v4647_v26 = vmul.f32 %v13477_v47, %v13387_v37 }
 0xb79   :  { %v5109_v0 = vmul.f32 %v13469_v24, %v10380_v30  ;;  %v5103_v34 = vmul.f32 %v13485_v2, %v4797_v9  ;;  %v4894_v12 = vpop.f32.mrb[89].mxu1  ;;  %v10361_v49 = vpop.f32.mrb[74].mxu0  ;;  %10633 = vmatpush3.bf16.msra.mxu0 %v11211_v58 }
 0xb7a   :  { %v13488_v32 = vadd.f32 %v5105_v51, %v4636_v27  ;;  %v5107_v59 = vmul.f32 %v13485_v2, %v4894_v12  ;;  %v5106_v33 = vmul.f32 %v13494_v18, %v10361_v49  ;;  %v10381_v15 = vpop.f32.mrb[90].mxu1  ;;  %10653 = vmatpush3.bf16.msra.mxu1 %v11212_v16  ;;  %v4800_v29 = vpop.f32.mrb[75].mxu0  ;;  %10634 = vmatprep.subr.bf16.mxu0 %v11213_v42 }
 0xb7b   :  { %v13500_v60 = vadd.f32 %v5109_v0, %v4640_v40  ;;  %v5119_v50 = vadd.f32 %v5103_v34, %v4634_v5  ;;  %v5110_v23 = vmul.f32 %v13494_v18, %v10381_v15  ;;  %v5104_v17 = vmul.f32 %v13506_v61, %v4800_v29  ;;  %v4897_v14 = vpop.f32.mrb[91].mxu1  ;;  %10654 = vmatprep.subr.bf16.mxu1 %v11214_v21 }
 0xb7c   :  { %v5123_v20 = vadd.f32 %v5107_v59, %v4638_v1  ;;  %v13514_v45 = vadd.f32 %v5106_v33, %v4637_v38  ;;  %v5108_v41 = vmul.f32 %v13506_v61, %v4897_v14  ;;  %v4648_v40 = vmul.f32 %v13441_v4, %v13372_v31 }
 0xb7d   :  { %v13517_v52 = vadd.f32 %v5110_v23, %v4641_v36  ;;  %v5120_v63 = vadd.f32 %v5104_v17, %v4635_v25  ;;  %10635 = vmatpush3.bf16.msra.mxu0 %v11213_v42  ;;  %v4644_v42 = vmul.f32 %v13441_v4, %v13370_v54  ;;  %v4645_v38 = vmul.f32 %v13462_v28, %v13381_v48 }
 0xb7e   :  { %v6543_v57 = vpack.c.bf16 %v13514_v45, %v13488_v32  ;;  %v5124_v3 = vadd.f32 %v5108_v41, %v4639_v19  ;;  %10655 = vmatpush3.bf16.msra.mxu1 %v11214_v21  ;;  %10636 = vmatprep.subr.bf16.mxu0 %v11215_v13  ;;  %v4646_v21 = vmul.f32 %v13453_v6, %v13379_v10 }
 0xb7f   :  { %v6542_v16 = vpack.c.bf16 %v5120_v63, %v5119_v50  ;;  %10656 = vmatprep.subr.bf16.mxu1 %v11216_v22  ;;  %v4649_v54 = vmul.f32 %v13462_v28, %v13383_v39 }
 0xb80   :  { %v6544_v8 = vpack.c.bf16 %v5124_v3, %v5123_v20 }
 0xb81   :  { %10637 = vmatpush3.bf16.msra.mxu0 %v11215_v13 }
 0xb82   :  { %10657 = vmatpush3.bf16.msra.mxu1 %v11216_v22 }
 0xb84   :  { %10639 = vmatmul.mubr.bf16.vlgmr.msra.gmra.mrb[100].mxu0 %v12951_v44 }
 0xb85   :  { %10659 = vmatmul.mubr.bf16.vlgmr.msra.gmra.mrb[116].mxu1 %v12951_v44  ;;  %10666 = vmatprep.mubr.msk.bf16.mxu0 %vm2591_vm1, %v6542_v16 }
 0xb86   :  { %10674 = vmatprep.mubr.msk.bf16.mxu1 %vm2591_vm1, %v6544_v8 }
 0xb97   :  { %v10400_v27 = vpop.f32.mrb[76].mxu0 }
 0xb98   :  { %v5113_v5 = vmul.f32 %v13469_v24, %v10400_v27  ;;  %v10420_v44 = vpop.f32.mrb[92].mxu1  ;;  %v4991_v1 = vpop.f32.mrb[77].mxu0 }
 0xb99   :  { %v5117_v51 = vmul.f32 %v13469_v24, %v10420_v44  ;;  %v5111_v31 = vmul.f32 %v13485_v2, %v4991_v1  ;;  %v5088_v30 = vpop.f32.mrb[93].mxu1  ;;  %v10401_v9 = vpop.f32.mrb[78].mxu0 }
 0xb9a   :  { %v13544_v10 = vadd.f32 %v5113_v5, %v4644_v42  ;;  %v5115_v36 = vmul.f32 %v13485_v2, %v5088_v30  ;;  %v5114_v25 = vmul.f32 %v13494_v18, %v10401_v9  ;;  %v10421_v0 = vpop.f32.mrb[94].mxu1  ;;  %v4994_v48 = vpop.f32.mrb[79].mxu0 }
 0xb9b   :  { %v13548_v34 = vadd.f32 %v5117_v51, %v4648_v40  ;;  %v13550_v39 = vadd.f32 %v5111_v31, %v4642_v56  ;;  %v5118_v12 = vmul.f32 %v13494_v18, %v10421_v0  ;;  %v5112_v49 = vmul.f32 %v13506_v61, %v4994_v48  ;;  %v5091_v59 = vpop.f32.mrb[95].mxu1 }
 0xb9c   :  { %v13556_v33 = vadd.f32 %v5115_v36, %v4646_v21  ;;  %v13558_v15 = vadd.f32 %v5114_v25, %v4645_v38  ;;  %v5116_v29 = vmul.f32 %v13506_v61, %v5091_v59 }
 0xb9d   :  { %v13561_v13 = vadd.f32 %v5118_v12, %v4649_v54  ;;  %v13563_v50 = vadd.f32 %v5112_v49, %v4643_v62 }
 0xb9e   :  { %v13567_v17 = vadd.f32 %v5116_v29, %v4647_v26 }
 0xbb7   :  { %v10440_v19 = vpop.f32.mrb[80].mxu0 }
 0xbb8   :  { %v10460_v20 = vpop.f32.mrb[96].mxu1  ;;  %v5282_v41 = vpop.f32.mrb[81].mxu0  ;;  %v5590_v54 = vmul.f32 %v13441_v4, %v10440_v19 }
 0xbb9   :  { %v5379_v63 = vpop.f32.mrb[97].mxu1  ;;  %v10441_v3 = vpop.f32.mrb[82].mxu0  ;;  %v5594_v31 = vmul.f32 %v13441_v4, %v10460_v20  ;;  %v5588_v30 = vmul.f32 %v13453_v6, %v5282_v41 }
 0xbba   :  { %v10461_v16 = vpop.f32.mrb[98].mxu1  ;;  %v5285_v8 = vpop.f32.mrb[83].mxu0  ;;  %v5592_v9 = vmul.f32 %v13453_v6, %v5379_v63  ;;  %v5591_v0 = vmul.f32 %v13462_v28, %v10441_v3 }
 0xbbb   :  { %v5382_v42 = vpop.f32.mrb[99].mxu1  ;;  %v5595_v48 = vmul.f32 %v13462_v28, %v10461_v16  ;;  %v5589_v29 = vmul.f32 %v13477_v47, %v5285_v8 }
 0xbd7   :  { %v10480_v27 = vpop.f32.mrb[84].mxu0 }
 0xbd8   :  { %v10500_v40 = vpop.f32.mrb[100].mxu1  ;;  %v5476_v56 = vpop.f32.mrb[85].mxu0 }
 0xbd9   :  { %v5573_v21 = vpop.f32.mrb[101].mxu1  ;;  %v13575_v5 = vpop.f32.mrb[86].mxu0  ;;  %v5602_v45 = vmul.f32 %v13441_v4, %v10500_v40 }
 0xbda   :  { %v13577_v44 = vpop.f32.mrb[102].mxu1  ;;  %v13579_v1 = vpop.f32.mrb[87].mxu0 }
 0xbdb   :  { %v13581_v38 = vpop.f32.mrb[103].mxu1  ;;  %v5597_v40 = vmul.f32 %v13477_v47, %v13579_v1 }
 0xbf7   :  { %v10520_v51 = vpop.f32.mrb[88].mxu0 }
 0xbf8   :  { %v6059_v62 = vmul.f32 %v13469_v24, %v10520_v51  ;;  %v10540_v36 = vpop.f32.mrb[104].mxu1  ;;  %v5751_v25 = vpop.f32.mrb[89].mxu0 }
 0xbf9   :  { %v6063_v12 = vmul.f32 %v13469_v24, %v10540_v36  ;;  %v6057_v49 = vmul.f32 %v13485_v2, %v5751_v25  ;;  %v5848_v59 = vpop.f32.mrb[105].mxu1  ;;  %v10521_v26 = vpop.f32.mrb[90].mxu0  ;;  %v5593_v25 = vmul.f32 %v13477_v47, %v5382_v42 }
 0xbfa   :  { %v6075_v19 = vadd.f32 %v6059_v62, %v5590_v54  ;;  %v6061_v20 = vmul.f32 %v13485_v2, %v5848_v59  ;;  %v6060_v41 = vmul.f32 %v13494_v18, %v10521_v26  ;;  %v10541_v63 = vpop.f32.mrb[106].mxu1  ;;  %v5754_v51 = vpop.f32.mrb[91].mxu0 }
 0xbfb   :  { %v6079_v43 = vadd.f32 %v6063_v12, %v5594_v31  ;;  %v6073_v55 = vadd.f32 %v6057_v49, %v5588_v30  ;;  %v6064_v3 = vmul.f32 %v13494_v18, %v10541_v63  ;;  %v6058_v16 = vmul.f32 %v13506_v61, %v5754_v51  ;;  %v5851_v36 = vpop.f32.mrb[107].mxu1 }
 0xbfc   :  { %v6077_v14 = vadd.f32 %v6061_v20, %v5592_v9  ;;  %v6076_v23 = vadd.f32 %v6060_v41, %v5591_v0  ;;  %v6062_v8 = vmul.f32 %v13506_v61, %v5851_v36  ;;  %v5601_v12 = vmul.f32 %v13477_v47, %v13581_v38 }
 0xbfd   :  { %v6080_v54 = vadd.f32 %v6064_v3, %v5595_v48  ;;  %v6074_v62 = vadd.f32 %v6058_v16, %v5589_v29  ;;  %v14144_v16 = vpack.c.bf16 %v13558_v15, %v13544_v10  ;;  %v14145_v36 = vpack.c.bf16 %v13561_v13, %v13548_v34 }
 0xbfe   :  { %v6551_v59 = vpack.c.bf16 %v6076_v23, %v6075_v19  ;;  %v6078_v22 = vadd.f32 %v6062_v8, %v5593_v25 }
 0xbff   :  { %v6553_v26 = vpack.c.bf16 %v6080_v54, %v6079_v43  ;;  %v6550_v37 = vpack.c.bf16 %v6074_v62, %v6073_v55  ;;  %v14141_v43 = vpack.c.bf16 %v13517_v52, %v13500_v60  ;;  %v5600_v60 = vmul.f32 %v13453_v6, %v5573_v21 }
 0xc00   :  { %v6552_v58 = vpack.c.bf16 %v6078_v22, %v6077_v14  ;;  %v6568_v23 = vsel %vm2591_vm1, %v6551_v59, 0  ;;  %v14143_v14 = vpack.c.bf16 %v13567_v17, %v13556_v33  ;;  %v5603_v33 = vmul.f32 %v13462_v28, %v13577_v44 }
 0xc01   :  { %10810 = vmatprep.subr.msk.bf16.mxu0 %vm2591_vm1, %v6550_v37  ;;  %v6565_v31 = vsel %vm2591_vm1, %v6550_v37, 0  ;;  %v6629_v55 = vsel %vm2591_vm1, %v6553_v26, 0  ;;  %v5598_v37 = vmul.f32 %v13441_v4, %v10480_v27 }
 0xc02   :  { %10812 = vmatprep.subr.msk.bf16.mxu1 %vm2591_vm1, %v6552_v58  ;;  %10663 = vmatpush3.bf16.xpose.msra.mxu0 %v6565_v31  ;;  %v6626_v42 = vsel %vm2591_vm1, %v6552_v58, 0  ;;  %v14142_v58 = vpack.c.bf16 %v13563_v50, %v13550_v39  ;;  %v5599_v50 = vmul.f32 %v13462_v28, %v13575_v5 }
 0xc03   :  { %10671 = vmatpush3.bf16.xpose.msra.mxu1 %v6626_v42  ;;  %10811 = vmatprep.subr.msk.bf16.mxu0 %vm2591_vm1, %v6551_v59 }
 0xc04   :  { %10813 = vmatprep.subr.msk.bf16.mxu1 %vm2591_vm1, %v6553_v26 }
 0xc0a   :  { %10665 = vmatpush3.bf16.xpose.msra.mxu0 %v6568_v23 }
 0xc0b   :  { %10673 = vmatpush3.bf16.xpose.msra.mxu1 %v6629_v55 }
 0xc11   :  { %10667 = vmatmul.mubr.msk.bf16.vlgmr.msra.gmra.mrb[104].mxu0 %vm2591_vm1, %v6543_v57  ;;  %v5596_v57 = vmul.f32 %v13453_v6, %v5476_v56 }
 0xc12   :  { %10675 = vmatmul.mubr.msk.bf16.vlgmr.msra.gmra.mrb[120].mxu1 %vm2591_vm1, %v14141_v43  ;;  %10682 = vmatprep.mubr.msk.bf16.mxu0 %vm2591_vm1, %v14142_v58 }
 0xc13   :  { %10690 = vmatprep.mubr.msk.bf16.mxu1 %vm2591_vm1, %v14143_v14 }
 0xc17   :  { %v10560_v32 = vpop.f32.mrb[92].mxu0 }
 0xc18   :  { %v6067_v52 = vmul.f32 %v13469_v24, %v10560_v32  ;;  %v10580_v22 = vpop.f32.mrb[108].mxu1  ;;  %v5945_v39 = vpop.f32.mrb[93].mxu0 }
 0xc19   :  { %v6071_v17 = vmul.f32 %v13469_v24, %v10580_v22  ;;  %v6065_v27 = vmul.f32 %v13485_v2, %v5945_v39  ;;  %v6042_v30 = vpop.f32.mrb[109].mxu1  ;;  %v10561_v4 = vpop.f32.mrb[94].mxu0 }
 0xc1a   :  { %v6083_v6 = vadd.f32 %v6067_v52, %v5598_v37  ;;  %v6069_v56 = vmul.f32 %v13485_v2, %v6042_v30  ;;  %v6068_v21 = vmul.f32 %v13494_v18, %v10561_v4  ;;  %v10581_v9 = vpop.f32.mrb[110].mxu1  ;;  %v5948_v0 = vpop.f32.mrb[95].mxu0 }
 0xc1b   :  { %v6087_v5 = vadd.f32 %v6071_v17, %v5602_v45  ;;  %v6081_v48 = vadd.f32 %v6065_v27, %v5596_v57  ;;  %v6072_v28 = vmul.f32 %v13494_v18, %v10581_v9  ;;  %v6066_v24 = vmul.f32 %v13506_v61, %v5948_v0  ;;  %v6045_v44 = vpop.f32.mrb[111].mxu1  ;;  %v11538_v17 = vld [vmem:[%s14118_s1] sm:$0xff]  ;;  %v11540_v9 = vld [vmem:[%s14118_s1 + $0x8] sm:$0xff] }
 0xc1c   :  { %v6085_v49 = vadd.f32 %v6069_v56, %v5600_v60  ;;  %v6084_v29 = vadd.f32 %v6068_v21, %v5599_v50  ;;  %v6070_v1 = vmul.f32 %v13506_v61, %v6045_v44  ;;  %v11539_v56 = vld [vmem:[%s14118_s1 + $0x10] sm:$0xff] }
 0xc1d   :  { %v6088_v19 = vadd.f32 %v6072_v28, %v5603_v33  ;;  %v6082_v2 = vadd.f32 %v6066_v24, %v5597_v40  ;;  %v11541_v28 = vld [vmem:[%s14118_s1 + $0x18] sm:$0xff] }
 0xc1e   :  { %v6555_v20 = vpack.c.bf16 %v6084_v29, %v6083_v6  ;;  %v6086_v41 = vadd.f32 %v6070_v1, %v5601_v12 }
 0xc1f   :  { %v6557_v63 = vpack.c.bf16 %v6088_v19, %v6087_v5  ;;  %v6554_v51 = vpack.c.bf16 %v6082_v2, %v6081_v48 }
 0xc20   :  { %v6556_v3 = vpack.c.bf16 %v6086_v41, %v6085_v49  ;;  %v6690_v61 = vsel %vm2591_vm1, %v6555_v20, 0 }
 0xc21   :  { %10814 = vmatprep.subr.msk.bf16.mxu0 %vm2591_vm1, %v6554_v51  ;;  %v6687_v18 = vsel %vm2591_vm1, %v6554_v51, 0  ;;  %v6751_v38 = vsel %vm2591_vm1, %v6557_v63, 0 }
 0xc22   :  { %10816 = vmatprep.subr.msk.bf16.mxu1 %vm2591_vm1, %v6556_v3  ;;  %10679 = vmatpush3.bf16.xpose.msra.mxu0 %v6687_v18  ;;  %v6748_v47 = vsel %vm2591_vm1, %v6556_v3, 0 }
 0xc23   :  { %10687 = vmatpush3.bf16.xpose.msra.mxu1 %v6748_v47  ;;  %10815 = vmatprep.subr.msk.bf16.mxu0 %vm2591_vm1, %v6555_v20 }
 0xc24   :  { %10817 = vmatprep.subr.msk.bf16.mxu1 %vm2591_vm1, %v6557_v63 }
 0xc2a   :  { %10681 = vmatpush3.bf16.xpose.msra.mxu0 %v6690_v61 }
 0xc2b   :  { %10689 = vmatpush3.bf16.xpose.msra.mxu1 %v6751_v38 }
 0xc31   :  { %10683 = vmatmul.mubr.msk.bf16.vlgmr.msra.gmra.mrb[108].mxu0 %vm2591_vm1, %v14144_v16 }
 0xc32   :  { %10691 = vmatmul.mubr.msk.bf16.vlgmr.msra.gmra.mrb[124].mxu1 %vm2591_vm1, %v14145_v36 }
 0xc37   :  { %v10600_v25 = vpop.f32.mrb[96].mxu0 }
 0xc38   :  { %v10620_v8 = vpop.f32.mrb[112].mxu1  ;;  %v6236_v54 = vpop.f32.mrb[97].mxu0 }
 0xc39   :  { %v6333_v62 = vpop.f32.mrb[113].mxu1  ;;  %v10601_v59 = vpop.f32.mrb[98].mxu0 }
 0xc3a   :  { %v6987_v26 = vpack.c.bf16 %v10601_v59, %v10600_v25  ;;  %v10621_v31 = vpop.f32.mrb[114].mxu1  ;;  %v6239_v42 = vpop.f32.mrb[99].mxu0 }
 0xc3b   :  { %v6989_v23 = vpack.c.bf16 %v10621_v31, %v10620_v8  ;;  %v6986_v55 = vpack.c.bf16 %v6239_v42, %v6236_v54  ;;  %v6336_v43 = vpop.f32.mrb[115].mxu1 }
 0xc3c   :  { %v6988_v58 = vpack.c.bf16 %v6336_v43, %v6333_v62 }
 0xc3d   :  { %10694 = vmatprep.subr.bf16.mxu0 %v6986_v55 }
 0xc3e   :  { %10702 = vmatprep.subr.bf16.mxu1 %v6988_v58  ;;  %10695 = vmatpush3.bf16.msra.mxu0 %v6986_v55 }
 0xc3f   :  { %10703 = vmatpush3.bf16.msra.mxu1 %v6988_v58  ;;  %10696 = vmatprep.subr.bf16.mxu0 %v6987_v26 }
 0xc40   :  { %10704 = vmatprep.subr.bf16.mxu1 %v6989_v23 }
 0xc42   :  { %10697 = vmatpush3.bf16.msra.mxu0 %v6987_v26 }
 0xc43   :  { %10705 = vmatpush3.bf16.msra.mxu1 %v6989_v23 }
 0xc57   :  { %v10640_v10 = vpop.f32.mrb[100].mxu0 }
 0xc58   :  { %v10660_v34 = vpop.f32.mrb[116].mxu1  ;;  %v6430_v15 = vpop.f32.mrb[101].mxu0 }
 0xc59   :  { %v6527_v13 = vpop.f32.mrb[117].mxu1  ;;  %v10641_v14 = vpop.f32.mrb[102].mxu0 }
 0xc5a   :  { %v13659_v37 = vpack.c.bf16 %v10641_v14, %v10640_v10  ;;  %v10661_v32 = vpop.f32.mrb[118].mxu1  ;;  %v6433_v45 = vpop.f32.mrb[103].mxu0 }
 0xc5b   :  { %v13661_v57 = vpack.c.bf16 %v10661_v32, %v10660_v34  ;;  %v13663_v60 = vpack.c.bf16 %v6433_v45, %v6430_v15  ;;  %v6530_v52 = vpop.f32.mrb[119].mxu1 }
 0xc5c   :  { %v13665_v22 = vpack.c.bf16 %v6530_v52, %v6527_v13 }
 0xc5d   :  { %10710 = vmatprep.subr.bf16.mxu0 %v13663_v60 }
 0xc5e   :  { %10718 = vmatprep.subr.bf16.mxu1 %v13665_v22 }
 0xce4   :  { %v10668_v39 = vpop.f32.mrb[104].mxu0 }
 0xce5   :  { %v10676_v50 = vpop.f32.mrb[120].mxu1  ;;  %v6604_v33 = vpop.f32.mrb[105].mxu0  ;;  %v13677_v21 = vadd.f32 %v11539_v56, %v10668_v39 }
 0xce6   :  { %v13672_v27 = vadd.f32 %v11538_v17, %v6604_v33  ;;  %v6665_v30 = vpop.f32.mrb[121].mxu1  ;;  %v10669_v4 = vpop.f32.mrb[106].mxu0  ;;  %v13701_v19 = vadd.f32 %v11539_v56, %v10676_v50 }
 0xce7   :  { %v10677_v40 = vpop.f32.mrb[122].mxu1  ;;  %v6607_v6 = vpop.f32.mrb[107].mxu0  ;;  %v13689_v24 = vadd.f32 %v11541_v28, %v10669_v4  ;;  %v13693_v12 = vadd.f32 %v11538_v17, %v6665_v30  ;;  %v6808_v49 = vsel %vm2591_vm1, %v13677_v21, -inf }
 0xce8   :  { %v13682_v0 = vadd.f32 %v11540_v9, %v6607_v6  ;;  %v6668_v5 = vpop.f32.mrb[123].mxu1  ;;  %v6802_v48 = vsel %vm2591_vm1, %v13672_v27, -inf  ;;  %v13705_v20 = vadd.f32 %v11541_v28, %v10677_v40  ;;  %v6820_v63 = vsel %vm2591_vm1, %v13701_v19, -inf }
 0xce9   :  { %6803 = vmax.xlane.f32.xlu0 %v6802_v48  ;;  %v13697_v29 = vadd.f32 %v11540_v9, %v6668_v5  ;;  %v6811_v1 = vsel %vm2591_vm1, %v13689_v24, -inf  ;;  %v6814_v2 = vsel %vm2591_vm1, %v13693_v12, -inf }
 0xcea   :  { %v6805_v44 = vsel %vm2591_vm1, %v13682_v0, -inf  ;;  %v6823_v51 = vsel %vm2591_vm1, %v13705_v20, -inf }
 0xceb   :  { %6806 = vmax.xlane.f32.xlu1 %v6805_v44  ;;  %v6817_v41 = vsel %vm2591_vm1, %v13697_v29, -inf }
 0xced   :  { %6809 = vmax.xlane.f32.xlu0 %v6808_v49 }
 0xcef   :  { %6812 = vmax.xlane.f32.xlu1 %v6811_v1 }
 0xcf1   :  { %6815 = vmax.xlane.f32.xlu0 %v6814_v2 }
 0xcf3   :  { %6818 = vmax.xlane.f32.xlu1 %v6817_v41 }
 0xcf5   :  { %6821 = vmax.xlane.f32.xlu0 %v6820_v63 }
 0xcf7   :  { %6824 = vmax.xlane.f32.xlu1 %v6823_v51 }
 0xd04   :  { %v10684_v3 = vpop.f32.mrb[108].mxu0 }
 0xd05   :  { %v10692_v18 = vpop.f32.mrb[124].mxu1  ;;  %v6726_v47 = vpop.f32.mrb[109].mxu0  ;;  %v13715_v8 = vadd.f32 %v11539_v56, %v10684_v3 }
 0xd06   :  { %v13713_v61 = vadd.f32 %v11538_v17, %v6726_v47  ;;  %v6787_v38 = vpop.f32.mrb[125].mxu1  ;;  %v10685_v16 = vpop.f32.mrb[110].mxu0  ;;  %v13733_v58 = vadd.f32 %v11539_v56, %v10692_v18 }
 0xd07   :  { %v10693_v36 = vpop.f32.mrb[126].mxu1  ;;  %v6729_v25 = vpop.f32.mrb[111].mxu0  ;;  %v13721_v26 = vadd.f32 %v11541_v28, %v10685_v16  ;;  %v13725_v42 = vadd.f32 %v11538_v17, %v6787_v38  ;;  %v6832_v23 = vsel %vm2591_vm1, %v13715_v8, -inf }
 0xd08   :  { %v13717_v54 = vadd.f32 %v11540_v9, %v6729_v25  ;;  %v6790_v62 = vpop.f32.mrb[127].mxu1  ;;  %v6826_v59 = vsel %vm2591_vm1, %v13713_v61, -inf  ;;  %v13737_v34 = vadd.f32 %v11541_v28, %v10693_v36  ;;  %v6844_v13 = vsel %vm2591_vm1, %v13733_v58, -inf }
 0xd09   :  { %6827 = vmax.xlane.f32.xlu0 %v6826_v59  ;;  %v13729_v55 = vadd.f32 %v11540_v9, %v6790_v62  ;;  %v6835_v43 = vsel %vm2591_vm1, %v13721_v26, -inf  ;;  %v6838_v10 = vsel %vm2591_vm1, %v13725_v42, -inf }
 0xd0a   :  { %v6829_v31 = vsel %vm2591_vm1, %v13717_v54, -inf  ;;  %v6847_v14 = vsel %vm2591_vm1, %v13737_v34, -inf }
 0xd0b   :  { %6830 = vmax.xlane.f32.xlu1 %v6829_v31  ;;  %v6841_v15 = vsel %vm2591_vm1, %v13729_v55, -inf }
 0xd0d   :  { %6833 = vmax.xlane.f32.xlu0 %v6832_v23 }
 0xd0f   :  { %6836 = vmax.xlane.f32.xlu1 %v6835_v43 }
 0xd11   :  { %6839 = vmax.xlane.f32.xlu0 %v6838_v10 }
 0xd13   :  { %6842 = vmax.xlane.f32.xlu1 %v6841_v15 }
 0xd15   :  { %6845 = vmax.xlane.f32.xlu0 %v6844_v13 }
 0xd17   :  { %6848 = vmax.xlane.f32.xlu1 %v6847_v14 }
 0xd76   :  { %v6804_v32 = vpop.xlane.xlu0 %6803 }
 0xd77   :  { %v6850_v45 = vsub.f32 %v13672_v27, %v6804_v32 }
 0xd78   :  { %v6807_v52 = vpop.xlane.xlu1 %6806 }
 0xd79   :  { %v6866_v39 = vmul.f32 1.442695, %v6850_v45  ;;  %v6851_v50 = vsub.f32 %v13682_v0, %v6807_v52 }
 0xd7a   :  { %v6810_v33 = vpop.xlane.xlu0 %6809 }
 0xd7b   :  { %11417 = vpow2.f32 %v6866_v39  ;;  %v6868_v17 = vmul.f32 1.442695, %v6851_v50  ;;  %v6852_v30 = vsub.f32 %v13677_v21, %v6810_v33 }
 0xd7c   :  { %v6813_v4 = vpop.xlane.xlu1 %6812 }
 0xd7d   :  { %11419 = vpow2.f32 %v6868_v17  ;;  %v6870_v40 = vmul.f32 1.442695, %v6852_v30  ;;  %v6853_v6 = vsub.f32 %v13689_v24, %v6813_v4 }
 0xd7e   :  { %v6816_v56 = vpop.xlane.xlu0 %6815 }
 0xd7f   :  { %11421 = vpow2.f32 %v6870_v40  ;;  %v6872_v9 = vmul.f32 1.442695, %v6853_v6  ;;  %v6854_v5 = vsub.f32 %v13693_v12, %v6816_v56 }
 0xd80   :  { %v6819_v27 = vpop.xlane.xlu1 %6818 }
 0xd81   :  { %11423 = vpow2.f32 %v6872_v9  ;;  %v6874_v48 = vmul.f32 1.442695, %v6854_v5  ;;  %v6855_v0 = vsub.f32 %v13697_v29, %v6819_v27 }
 0xd82   :  { %v6822_v28 = vpop.xlane.xlu0 %6821 }
 0xd83   :  { %11425 = vpow2.f32 %v6874_v48  ;;  %v6876_v44 = vmul.f32 1.442695, %v6855_v0  ;;  %v6856_v21 = vsub.f32 %v13701_v19, %v6822_v28 }
 0xd84   :  { %v6825_v49 = vpop.xlane.xlu1 %6824 }
 0xd85   :  { %v13752_v1 = vpop.eup %11417  ;;  %11427 = vpow2.f32 %v6876_v44  ;;  %v6878_v24 = vmul.f32 1.442695, %v6856_v21  ;;  %v6857_v2 = vsub.f32 %v13705_v20, %v6825_v49 }
 0xd86   :  { %v6898_v12 = vsel %vm2591_vm1, %v13752_v1, 0.0 }
 0xd87   :  { %v13757_v41 = vpop.eup %11419  ;;  %11429 = vpow2.f32 %v6878_v24  ;;  %v6880_v63 = vmul.f32 1.442695, %v6857_v2  ;;  %6899 = vadd.xlane.f32.xlu0 %v6898_v12 }
 0xd88   :  { %v6901_v29 = vsel %vm2591_vm1, %v13757_v41, 0.0 }
 0xd89   :  { %v13761_v51 = vpop.eup %11421  ;;  %11431 = vpow2.f32 %v6880_v63  ;;  %6902 = vadd.xlane.f32.xlu1 %v6901_v29 }
 0xd8a   :  { %v6904_v19 = vsel %vm2591_vm1, %v13761_v51, 0.0 }
 0xd8b   :  { %v13765_v3 = vpop.eup %11423  ;;  %6905 = vadd.xlane.f32.xlu0 %v6904_v19 }
 0xd8c   :  { %v6907_v20 = vsel %vm2591_vm1, %v13765_v3, 0.0 }
 0xd8d   :  { %v13769_v18 = vpop.eup %11425  ;;  %6908 = vadd.xlane.f32.xlu1 %v6907_v20 }
 0xd8e   :  { %v6910_v47 = vsel %vm2591_vm1, %v13769_v18, 0.0 }
 0xd8f   :  { %v13773_v38 = vpop.eup %11427  ;;  %6911 = vadd.xlane.f32.xlu0 %v6910_v47 }
 0xd90   :  { %v6913_v16 = vsel %vm2591_vm1, %v13773_v38, 0.0 }
 0xd91   :  { %v13777_v36 = vpop.eup %11429  ;;  %6914 = vadd.xlane.f32.xlu1 %v6913_v16 }
 0xd92   :  { %v6916_v25 = vsel %vm2591_vm1, %v13777_v36, 0.0 }
 0xd93   :  { %v13781_v62 = vpop.eup %11431  ;;  %6917 = vadd.xlane.f32.xlu0 %v6916_v25 }
 0xd94   :  { %v6919_v59 = vsel %vm2591_vm1, %v13781_v62, 0.0 }
 0xd95   :  { %6920 = vadd.xlane.f32.xlu1 %v6919_v59 }
 0xd96   :  { %v6828_v31 = vpop.xlane.xlu0 %6827 }
 0xd97   :  { %v6858_v23 = vsub.f32 %v13713_v61, %v6828_v31 }
 0xd98   :  { %v6831_v43 = vpop.xlane.xlu1 %6830 }
 0xd99   :  { %v6882_v10 = vmul.f32 1.442695, %v6858_v23  ;;  %v6859_v15 = vsub.f32 %v13717_v54, %v6831_v43 }
 0xd9a   :  { %v6834_v13 = vpop.xlane.xlu0 %6833 }
 0xd9b   :  { %11433 = vpow2.f32 %v6882_v10  ;;  %v6884_v14 = vmul.f32 1.442695, %v6859_v15  ;;  %v6860_v32 = vsub.f32 %v13715_v8, %v6834_v13 }
 0xd9c   :  { %v6837_v45 = vpop.xlane.xlu1 %6836 }
 0xd9d   :  { %11435 = vpow2.f32 %v6884_v14  ;;  %v6886_v52 = vmul.f32 1.442695, %v6860_v32  ;;  %v6861_v39 = vsub.f32 %v13721_v26, %v6837_v45 }
 0xd9e   :  { %v6840_v50 = vpop.xlane.xlu0 %6839 }
 0xd9f   :  { %11437 = vpow2.f32 %v6886_v52  ;;  %v6888_v33 = vmul.f32 1.442695, %v6861_v39  ;;  %v6862_v17 = vsub.f32 %v13725_v42, %v6840_v50 }
 0xda0   :  { %v6843_v61 = vpop.xlane.xlu1 %6842 }
 0xda1   :  { %11439 = vpow2.f32 %v6888_v33  ;;  %v6890_v30 = vmul.f32 1.442695, %v6862_v17  ;;  %v6863_v54 = vsub.f32 %v13729_v55, %v6843_v61 }
 0xda2   :  { %v6846_v4 = vpop.xlane.xlu0 %6845 }
 0xda3   :  { %11441 = vpow2.f32 %v6890_v30  ;;  %v6892_v40 = vmul.f32 1.442695, %v6863_v54  ;;  %v6864_v8 = vsub.f32 %v13733_v58, %v6846_v4 }
 0xda4   :  { %v6849_v6 = vpop.xlane.xlu1 %6848 }
 0xda5   :  { %v13792_v56 = vpop.eup %11433  ;;  %11443 = vpow2.f32 %v6892_v40  ;;  %v6894_v26 = vmul.f32 1.442695, %v6864_v8  ;;  %v6865_v9 = vsub.f32 %v13737_v34, %v6849_v6 }
 0xda6   :  { %v6922_v42 = vsel %vm2591_vm1, %v13792_v56, 0.0 }
 0xda7   :  { %v13797_v5 = vpop.eup %11435  ;;  %11445 = vpow2.f32 %v6894_v26  ;;  %v6896_v27 = vmul.f32 1.442695, %v6865_v9  ;;  %6923 = vadd.xlane.f32.xlu0 %v6922_v42 }
 0xda8   :  { %v6925_v55 = vsel %vm2591_vm1, %v13797_v5, 0.0 }
 0xda9   :  { %v13801_v48 = vpop.eup %11437  ;;  %11447 = vpow2.f32 %v6896_v27  ;;  %6926 = vadd.xlane.f32.xlu1 %v6925_v55 }
 0xdaa   :  { %v6928_v58 = vsel %vm2591_vm1, %v13801_v48, 0.0 }
 0xdab   :  { %v13805_v0 = vpop.eup %11439  ;;  %6929 = vadd.xlane.f32.xlu0 %v6928_v58 }
 0xdac   :  { %v6931_v34 = vsel %vm2591_vm1, %v13805_v0, 0.0 }
 0xdad   :  { %v13809_v28 = vpop.eup %11441  ;;  %6932 = vadd.xlane.f32.xlu1 %v6931_v34 }
 0xdae   :  { %v6934_v44 = vsel %vm2591_vm1, %v13809_v28, 0.0 }
 0xdaf   :  { %v13813_v21 = vpop.eup %11443  ;;  %6935 = vadd.xlane.f32.xlu0 %v6934_v44 }
 0xdb0   :  { %v6937_v49 = vsel %vm2591_vm1, %v13813_v21, 0.0 }
 0xdb1   :  { %v13817_v24 = vpop.eup %11445  ;;  %6938 = vadd.xlane.f32.xlu1 %v6937_v49 }
 0xdb2   :  { %v6940_v2 = vsel %vm2591_vm1, %v13817_v24, 0.0 }
 0xdb3   :  { %v13821_v12 = vpop.eup %11447  ;;  %6941 = vadd.xlane.f32.xlu0 %v6940_v2 }
 0xdb4   :  { %v6943_v63 = vsel %vm2591_vm1, %v13821_v12, 0.0 }
 0xdb5   :  { %6944 = vadd.xlane.f32.xlu1 %v6943_v63 }
 0xe14   :  { %v6900_v29 = vpop.xlane.xlu0 %6899 }
 0xe15   :  { %11449 = vrcp.f32 %v6900_v29 }
 0xe16   :  { %v6903_v19 = vpop.xlane.xlu1 %6902 }
 0xe17   :  { %11451 = vrcp.f32 %v6903_v19 }
 0xe18   :  { %v6906_v20 = vpop.xlane.xlu0 %6905 }
 0xe19   :  { %11453 = vrcp.f32 %v6906_v20  ;;  %v14146_v20 = vmov 0  }
 0xe1a   :  { %v6909_v47 = vpop.xlane.xlu1 %6908 }
 0xe1b   :  { %11455 = vrcp.f32 %v6909_v47 }
 0xe1c   :  { %v6912_v16 = vpop.xlane.xlu0 %6911 }
 0xe1d   :  { %11457 = vrcp.f32 %v6912_v16 }
 0xe1e   :  { %v6915_v25 = vpop.xlane.xlu1 %6914 }
 0xe1f   :  { %v11450_v59 = vpop.eup %11449  ;;  %11459 = vrcp.f32 %v6915_v25 }
 0xe20   :  { %v6918_v31 = vpop.xlane.xlu0 %6917  ;;  %v6962_v10 = vmul.f32 %v11450_v59, %v13752_v1 }
 0xe21   :  { %v11452_v23 = vpop.eup %11451  ;;  %11461 = vrcp.f32 %v6918_v31  ;;  %v11220_v31 = vld [vmem:[%s14119_s9 + $0x58] sm:$0xff]  }
 0xe22   :  { %v6921_v43 = vpop.xlane.xlu1 %6920  ;;  %v6963_v15 = vmul.f32 %v11452_v23, %v13757_v41 }
 0xe23   :  { %v11454_v13 = vpop.eup %11453  ;;  %11463 = vrcp.f32 %v6921_v43 }
 0xe24   :  { %v6978_v14 = vpack.c.bf16 %v6963_v15, %v6962_v10  ;;  %v6964_v45 = vmul.f32 %v11454_v13, %v13761_v51  ;;  %v11217_v51 = vld [vmem:[%s14119_s9 + $0x40] sm:$0xff]  }
 0xe25   :  { %v11456_v32 = vpop.eup %11455  ;;  %v11221_v10 = vld [vmem:[%s14119_s9 + $0x60] sm:$0xff]  }
 0xe26   :  { %v6965_v52 = vmul.f32 %v11456_v32, %v13765_v3  ;;  %10698 = vmatprep.mubr.msk.bf16.mxu0 %vm2591_vm1, %v6978_v14 }
 0xe27   :  { %v11458_v39 = vpop.eup %11457 }
 0xe28   :  { %v6979_v50 = vpack.c.bf16 %v6965_v52, %v6964_v45  ;;  %v6966_v17 = vmul.f32 %v11458_v39, %v13769_v18  ;;  %v11222_v45 = vld [vmem:[%s14119_s9 + $0x68] sm:$0xff]   ;;  %v11223_v52 = vld [vmem:[%s14119_s9 + $0x70] sm:$0xff]  }
 0xe29   :  { %v11460_v33 = vpop.eup %11459 }
 0xe2a   :  { %10699 = vmatmul.mubr.msk.bf16.vlgmr.msra.gmra.mrb[112].mxu0 %vm2591_vm1, %v6979_v50  ;;  %v6967_v1 = vmul.f32 %v11460_v33, %v13773_v38 }
 0xe2b   :  { %v11462_v41 = vpop.eup %11461  ;;  %10711 = vmatpush3.bf16.msra.mxu0 %v13663_v60 }
 0xe2c   :  { %10712 = vmatprep.subr.bf16.mxu0 %v13659_v37  ;;  %v6980_v61 = vpack.c.bf16 %v6967_v1, %v6966_v17  ;;  %v6968_v30 = vmul.f32 %v11462_v41, %v13777_v36 }
 0xe2d   :  { %v11464_v3 = vpop.eup %11463 }
 0xe2e   :  { %v6969_v54 = vmul.f32 %v11464_v3, %v13781_v62  ;;  %10706 = vmatprep.mubr.msk.bf16.mxu1 %vm2591_vm1, %v6980_v61  ;;  %v11224_v61 = vld [vmem:[%s14119_s9 + $0x78] sm:$0xff]  }
 0xe2f   :  { %10713 = vmatpush3.bf16.msra.mxu0 %v13659_v37 }
 0xe30   :  { %v6981_v18 = vpack.c.bf16 %v6969_v54, %v6968_v30  ;;  %10726 = vmatprep.subr.bf16.mxu0 %v11217_v51 }
 0xe32   :  { %10707 = vmatmul.mubr.msk.bf16.vlgmr.msra.gmra.mrb[128].mxu1 %vm2591_vm1, %v6981_v18 }
 0xe33   :  { %10719 = vmatpush3.bf16.msra.mxu1 %v13665_v22 }
 0xe34   :  { %10720 = vmatprep.subr.bf16.mxu1 %v13661_v57  ;;  %v6924_v60 = vpop.xlane.xlu0 %6923 }
 0xe35   :  { %11465 = vrcp.f32 %v6924_v60 }
 0xe36   :  { %v6927_v38 = vpop.xlane.xlu1 %6926 }
 0xe37   :  { %11467 = vrcp.f32 %v6927_v38  ;;  %10721 = vmatpush3.bf16.msra.mxu1 %v13661_v57  ;;  %v11225_v38 = vld [vmem:[%s14120_s10 + $0x100] ss:$16 sps:$4 sm:$0xff]  }
 0xe38   :  { %v6930_v36 = vpop.xlane.xlu0 %6929 }
 0xe39   :  { %11469 = vrcp.f32 %v6930_v36  ;;  %v11227_v36 = vld [vmem:[%s14120_s10 + $0x104] ss:$16 sps:$4 sm:$0xff]  }
 0xe3a   :  { %v6933_v62 = vpop.xlane.xlu1 %6932  ;;  %7754 = vmatprep.subr.bf16.mxu1 %v11227_v36 }
 0xe3b   :  { %11471 = vrcp.f32 %v6933_v62  ;;  %v11228_v62 = vld [vmem:[%s14120_s10 + $0x108] ss:$16 sps:$4 sm:$0xff]  }
 0xe3c   :  { %v6936_v4 = vpop.xlane.xlu0 %6935 }
 0xe3d   :  { %11473 = vrcp.f32 %v6936_v4  ;;  %v11230_v4 = vld [vmem:[%s14120_s10 + $0x10c] ss:$16 sps:$4 sm:$0xff]  }
 0xe3e   :  { %v6939_v37 = vpop.xlane.xlu1 %6938 }
 0xe3f   :  { %v11466_v40 = vpop.eup %11465  ;;  %11475 = vrcp.f32 %v6939_v37  ;;  %v11233_v37 = vld [vmem:[%s14120_s10 + $0x124] ss:$16 sps:$4 sm:$0xff]  }
 0xe40   :  { %v6942_v8 = vpop.xlane.xlu0 %6941  ;;  %v6970_v26 = vmul.f32 %v11466_v40, %v13792_v56  ;;  %v11236_v40 = vld [vmem:[%s14120_s10 + $0x12c] ss:$16 sps:$4 sm:$0xff]  }
 0xe41   :  { %v11468_v6 = vpop.eup %11467  ;;  %11477 = vrcp.f32 %v6942_v8  ;;  %v11231_v8 = vld [vmem:[%s14120_s10 + $0x120] ss:$16 sps:$4 sm:$0xff]  }
 0xe42   :  { %v6945_v22 = vpop.xlane.xlu1 %6944  ;;  %v6971_v9 = vmul.f32 %v11468_v6, %v13797_v5  ;;  %v11234_v6 = vld [vmem:[%s14120_s10 + $0x128] ss:$16 sps:$4 sm:$0xff]  }
 0xe43   :  { %v11470_v42 = vpop.eup %11469  ;;  %11479 = vrcp.f32 %v6945_v22  ;;  %v11239_v22 = vld [vmem:[%s14120_s10 + $0x144] ss:$16 sps:$4 sm:$0xff]  }
 0xe44   :  { %v6982_v57 = vpack.c.bf16 %v6971_v9, %v6970_v26  ;;  %v6972_v55 = vmul.f32 %v11470_v42, %v13801_v48  ;;  %v11242_v26 = vld [vmem:[%s14120_s10 + $0x14c] ss:$16 sps:$4 sm:$0xff]   ;;  %v11237_v9 = vld [vmem:[%s14120_s10 + $0x140] ss:$16 sps:$4 sm:$0xff]   ;;  %v11240_v42 = vld [vmem:[%s14120_s10 + $0x148] ss:$16 sps:$4 sm:$0xff]  }
 0xe45   :  { %v11472_v27 = vpop.eup %11471 }
 0xe46   :  { %v6973_v58 = vmul.f32 %v11472_v27, %v13805_v0  ;;  %10714 = vmatprep.mubr.msk.bf16.mxu0 %vm2591_vm1, %v6982_v57 }
 0xe47   :  { %v11474_v34 = vpop.eup %11473 }
 0xe48   :  { %v6983_v44 = vpack.c.bf16 %v6973_v58, %v6972_v55  ;;  %v6974_v2 = vmul.f32 %v11474_v34, %v13809_v28  ;;  %v11218_v28 = vld [vmem:[%s14119_s9 + $0x48] sm:$0xff]  }
 0xe49   :  { %v11476_v49 = vpop.eup %11475 }
 0xe4a   :  { %10715 = vmatmul.mubr.msk.bf16.vlgmr.msra.gmra.mrb[116].mxu0 %vm2591_vm1, %v6983_v44  ;;  %v6975_v56 = vmul.f32 %v11476_v49, %v13813_v21  ;;  %v11219_v21 = vld [vmem:[%s14119_s9 + $0x50] sm:$0xff]  }
 0xe4b   :  { %v11478_v5 = vpop.eup %11477  ;;  %10727 = vmatpush3.bf16.msra.mxu0 %v11217_v51 }
 0xe4c   :  { %v6984_v63 = vpack.c.bf16 %v6975_v56, %v6974_v2  ;;  %v6976_v19 = vmul.f32 %v11478_v5, %v13817_v24  ;;  %10728 = vmatprep.subr.bf16.mxu0 %v11218_v28 }
 0xe4d   :  { %v11480_v29 = vpop.eup %11479 }
 0xe4e   :  { %v6977_v48 = vmul.f32 %v11480_v29, %v13821_v12  ;;  %10722 = vmatprep.mubr.msk.bf16.mxu1 %vm2591_vm1, %v6984_v63  ;;  %v11243_v63 = vld [vmem:[%s14120_s10 + $0x160] ss:$16 sps:$4 sm:$0xff]   ;;  %v11246_v29 = vld [vmem:[%s14120_s10 + $0x168] ss:$16 sps:$4 sm:$0xff]  }
 0xe4f   :  { %10729 = vmatpush3.bf16.msra.mxu0 %v11218_v28  ;;  %v11252_v28 = vld [vmem:[%s14120_s10 + $0x188] ss:$16 sps:$4 sm:$0xff]  }
 0xe50   :  { %v6985_v0 = vpack.c.bf16 %v6977_v48, %v6976_v19  ;;  %10734 = vmatprep.subr.bf16.mxu0 %v11219_v21  ;;  %v11251_v19 = vld [vmem:[%s14120_s10 + $0x184] ss:$16 sps:$4 sm:$0xff]   ;;  %v11254_v48 = vld [vmem:[%s14120_s10 + $0x18c] ss:$16 sps:$4 sm:$0xff]  }
 0xe52   :  { %10723 = vmatmul.mubr.msk.bf16.vlgmr.msra.gmra.mrb[132].mxu1 %vm2591_vm1, %v6985_v0  ;;  %v11249_v0 = vld [vmem:[%s14120_s10 + $0x180] ss:$16 sps:$4 sm:$0xff]  }
 0xe53   :  { %7786 = vmatprep.mubr.bf16.mxu1 %v14146_v20  ;;  %7755 = vmatpush1.bf16.msra.mxu1 %v11225_v38 }
 0xe54   :  { %7756 = vmatprep.subr.bf16.mxu1 %v11233_v37 }
 0xe57   :  { %7757 = vmatpush1.bf16.msra.mxu1 %v11231_v8 }
 0xe58   :  { %7758 = vmatprep.subr.bf16.mxu1 %v11239_v22 }
 0xe5b   :  { %7759 = vmatpush1.bf16.msra.mxu1 %v11237_v9  ;;  %v11273_v9 = vld [vmem:[%s14121_s11 + $0xc0] sm:$0xff]  }
 0xefd   :  { %v10700_v24 = vpop.f32.mrb[112].mxu0 }
 0xefe   :  { %v7034_v12 = vpop.f32.mrb[113].mxu0 }
 0xeff   :  { %v10701_v47 = vpop.f32.mrb[114].mxu0 }
 0xf00   :  { %v7215_v16 = vpack.c.bf16 %v10701_v47, %v10700_v24  ;;  %v7037_v25 = vpop.f32.mrb[115].mxu0  ;;  %v11257_v24 = vld [vmem:[%s14120_s10 + $0x1a4] ss:$16 sps:$4 sm:$0xff]   ;;  %v11260_v47 = vld [vmem:[%s14120_s10 + $0x1ac] ss:$16 sps:$4 sm:$0xff]  }
 0xf01   :  { %v7214_v59 = vpack.c.bf16 %v7037_v25, %v7034_v12  ;;  %v11258_v12 = vld [vmem:[%s14120_s10 + $0x1a8] ss:$16 sps:$4 sm:$0xff]   ;;  %v11266_v25 = vld [vmem:[%s14120_s10 + $0x1cc] ss:$16 sps:$4 sm:$0xff]  }
 0xf03   :  { %10730 = vmatprep.mubr.msk.bf16.mxu0 %vm2591_vm1, %v7214_v59  ;;  %v11261_v59 = vld [vmem:[%s14120_s10 + $0x1c0] ss:$16 sps:$4 sm:$0xff]  }
 0xf04   :  { %10731 = vmatmul.mubr.msk.bf16.vlgmr.msra.gmra.mrb[120].mxu0 %vm2591_vm1, %v7215_v16  ;;  %v11263_v16 = vld [vmem:[%s14120_s10 + $0x1c4] ss:$16 sps:$4 sm:$0xff]  }
 0xf05   :  { %v10708_v23 = vpop.f32.mrb[128].mxu1  ;;  %10735 = vmatpush3.bf16.msra.mxu0 %v11219_v21  ;;  %v11255_v21 = vld [vmem:[%s14120_s10 + $0x1a0] ss:$16 sps:$4 sm:$0xff]  }
 0xf06   :  { %v7089_v43 = vpop.f32.mrb[129].mxu1  ;;  %10736 = vmatprep.subr.bf16.mxu0 %v11220_v31 }
 0xf07   :  { %v10709_v15 = vpop.f32.mrb[130].mxu1 }
 0xf08   :  { %v7217_v13 = vpack.c.bf16 %v10709_v15, %v10708_v23  ;;  %v7092_v14 = vpop.f32.mrb[131].mxu1  ;;  %v11269_v23 = vld [vmem:[%s14120_s10 + $0x1e4] ss:$16 sps:$4 sm:$0xff]   ;;  %v11270_v15 = vld [vmem:[%s14120_s10 + $0x1e8] ss:$16 sps:$4 sm:$0xff]  }
 0xf09   :  { %v7216_v32 = vpack.c.bf16 %v7092_v14, %v7089_v43  ;;  %10737 = vmatpush3.bf16.msra.mxu0 %v11220_v31  ;;  %v11264_v31 = vld [vmem:[%s14120_s10 + $0x1c8] ss:$16 sps:$4 sm:$0xff]   ;;  %v11272_v43 = vld [vmem:[%s14120_s10 + $0x1ec] ss:$16 sps:$4 sm:$0xff]  }
 0xf0a   :  { %10742 = vmatprep.subr.bf16.mxu0 %v11221_v10 }
 0xf0b   :  { %10738 = vmatprep.mubr.msk.bf16.mxu0 %vm2591_vm1, %v7216_v32 }
 0xf10   :  { %10739 = vmatmul.mubr.msk.bf16.vlgmr.msra.gmra.mrb[120].mxu0 %vm2591_vm1, %v7217_v13 }
 0xf11   :  { %10743 = vmatpush3.bf16.msra.mxu0 %v11221_v10  ;;  %v11267_v10 = vld [vmem:[%s14120_s10 + $0x1e0] ss:$16 sps:$4 sm:$0xff]  }
 0xf12   :  { %10744 = vmatprep.subr.bf16.mxu0 %v11222_v45 }
 0xf15   :  { %10745 = vmatpush3.bf16.msra.mxu0 %v11222_v45 }
 0xf16   :  { %10750 = vmatprep.subr.bf16.mxu0 %v11223_v52 }
 0xf1d   :  { %v10716_v39 = vpop.f32.mrb[116].mxu0 }
 0xf1e   :  { %v7144_v50 = vpop.f32.mrb[117].mxu0 }
 0xf1f   :  { %v10717_v33 = vpop.f32.mrb[118].mxu0 }
 0xf20   :  { %v7219_v17 = vpack.c.bf16 %v10717_v33, %v10716_v39  ;;  %v7147_v1 = vpop.f32.mrb[119].mxu0 }
 0xf21   :  { %v7218_v41 = vpack.c.bf16 %v7147_v1, %v7144_v50 }
 0xf23   :  { %10746 = vmatprep.mubr.msk.bf16.mxu0 %vm2591_vm1, %v7218_v41 }
 0xf24   :  { %10747 = vmatmul.mubr.msk.bf16.vlgmr.msra.gmra.mrb[120].mxu0 %vm2591_vm1, %v7219_v17 }
 0xf25   :  { %10751 = vmatpush3.bf16.msra.mxu0 %v11223_v52  ;;  %v10724_v51 = vpop.f32.mrb[132].mxu1 }
 0xf26   :  { %v7199_v3 = vpop.f32.mrb[133].mxu1  ;;  %10752 = vmatprep.subr.bf16.mxu0 %v11224_v61 }
 0xf27   :  { %v10725_v30 = vpop.f32.mrb[134].mxu1 }
 0xf28   :  { %v7221_v54 = vpack.c.bf16 %v10725_v30, %v10724_v51  ;;  %v7202_v18 = vpop.f32.mrb[135].mxu1  ;;  %v11542_v30 = vld [vmem:[%s14113_s12 + $0x2] sm:$0x3] }
 0xf29   :  { %v7220_v60 = vpack.c.bf16 %v7202_v18, %v7199_v3  ;;  %10753 = vmatpush3.bf16.msra.mxu0 %v11224_v61 }
 0xf2a   :  { %7807 = vmatprep.subr.bf16.mxu0 %v11230_v4 }
 0xf2b   :  { %10754 = vmatprep.mubr.msk.bf16.mxu0 %vm2591_vm1, %v7220_v60 }
 0xf30   :  { %10755 = vmatmul.mubr.msk.bf16.vlgmr.msra.gmra.mrb[120].mxu0 %vm2591_vm1, %v7221_v54  ;;  %v14147_v54 = vsub.s32 1, %v11734_v53 }
 0xf31   :  { %7839 = vmatprep.mubr.bf16.mxu0 %v14146_v20  ;;  %7808 = vmatpush1.bf16.msra.mxu0 %v11228_v62 }
 0xf32   :  { %7809 = vmatprep.subr.bf16.mxu0 %v11236_v40  ;;  %v7554_v18 = vrot.slane %v11542_v30, %v14147_v54 }
 0xf35   :  { %7810 = vmatpush1.bf16.msra.mxu0 %v11234_v6 }
 0xf36   :  { %7811 = vmatprep.subr.bf16.mxu0 %v11242_v26 }
 0xf39   :  { %7812 = vmatpush1.bf16.msra.mxu0 %v11240_v42  ;;  %v11274_v42 = vld [vmem:[%s14121_s11 + $0x80] sm:$0xff]  }
0x1003   :  { %v10756_v57 = vpop.f32.mrb[120].mxu0 }
0x1004   :  { %v7492_v27 = vpop.f32.mrb[121].mxu0  ;;  %v13929_v44 = vadd.f32 %v10756_v57, %v12881_v35  ;;  %v11275_v57 = vld [vmem:[%s14121_s11 + $0xc8] sm:$0xff]  }
0x1005   :  { %v13926_v55 = vadd.f32 %v7492_v27, %v12871_v46  ;;  %v10757_v58 = vpop.f32.mrb[122].mxu0  ;;  %v11277_v27 = vld [vmem:[%s14121_s11 + $0xd0] sm:$0xff]  }
0x1006   :  { %v7495_v34 = vpop.f32.mrb[123].mxu0  ;;  %v13937_v56 = vadd.f32 %v10757_v58, %v12884_v11  ;;  %v7525_v46 = vmul.f32 %v13929_v44, %v13929_v44  ;;  %v11248_v11 = vld [vmem:[%s14120_s10 + $0x16c] ss:$16 sps:$4 sm:$0xff]   ;;  %v11278_v58 = vld [vmem:[%s14121_s11 + $0x90] sm:$0xff]  }
0x1007   :  { %v13932_v49 = vadd.f32 %v7495_v34, %v12874_v7  ;;  %v7523_v2 = vmul.f32 %v13926_v55, %v13926_v55  ;;  %v11245_v7 = vld [vmem:[%s14120_s10 + $0x164] ss:$16 sps:$4 sm:$0xff]   ;;  %7813 = vmatprep.subr.bf16.mxu0 %v11248_v11  ;;  %v11279_v34 = vld [vmem:[%s14121_s11 + $0xd8] sm:$0xff]  }
0x1008   :  { %v7526_v35 = vmul.f32 %v13937_v56, %v13937_v56  ;;  %7760 = vmatprep.subr.bf16.mxu1 %v11245_v7  ;;  %7814 = vmatpush1.bf16.msra.mxu0 %v11246_v29  ;;  %v11284_v7 = vld [vmem:[%s14121_s11 + $0xa8] sm:$0xff]   ;;  %v11285_v11 = vld [vmem:[%s14121_s11 + $0xf0] sm:$0xff]   ;;  %v11287_v29 = vld [vmem:[%s14121_s11 + $0xf8] sm:$0xff]  }
0x1009   :  { %7527 = vadd.xlane.f32.xlu0 %v7523_v2  ;;  %v7524_v5 = vmul.f32 %v13932_v49, %v13932_v49  ;;  %7761 = vmatpush1.bf16.msra.mxu1 %v11243_v63  ;;  %v11280_v2 = vld [vmem:[%s14121_s11 + $0x98] sm:$0xff]   ;;  %v11286_v63 = vld [vmem:[%s14121_s11 + $0xb0] sm:$0xff]  }
0x100a   :  { %7762 = vmatprep.subr.bf16.mxu1 %v11251_v19  ;;  %7815 = vmatprep.subr.bf16.mxu0 %v11254_v48  ;;  %v11288_v19 = vld [vmem:[%s14121_s11 + $0xb8] sm:$0xff]  }
0x100b   :  { %7529 = vadd.xlane.f32.xlu1 %v7524_v5  ;;  %v11281_v5 = vld [vmem:[%s14121_s11 + $0xe0] sm:$0xff]  }
0x100c   :  { %7816 = vmatpush1.bf16.msra.mxu0 %v11252_v28 }
0x100d   :  { %7531 = vadd.xlane.f32.xlu0 %v7525_v46  ;;  %7763 = vmatpush1.bf16.msra.mxu1 %v11249_v0  ;;  %v11282_v46 = vld [vmem:[%s14121_s11 + $0xa0] sm:$0xff]  }
0x100e   :  { %7764 = vmatprep.subr.bf16.mxu1 %v11257_v24  ;;  %7817 = vmatprep.subr.bf16.mxu0 %v11260_v47 }
0x100f   :  { %7533 = vadd.xlane.f32.xlu1 %v7526_v35  ;;  %v11283_v35 = vld [vmem:[%s14121_s11 + $0xe8] sm:$0xff]  }
0x1010   :  { %7818 = vmatpush1.bf16.msra.mxu0 %v11258_v12 }
0x1011   :  { %7765 = vmatpush1.bf16.msra.mxu1 %v11255_v21  ;;  %7819 = vmatprep.subr.bf16.mxu0 %v11266_v25 }
0x1012   :  { %7766 = vmatprep.subr.bf16.mxu1 %v11263_v16 }
0x1014   :  { %7820 = vmatpush1.bf16.msra.mxu0 %v11264_v31 }
0x1015   :  { %7767 = vmatpush1.bf16.msra.mxu1 %v11261_v59  ;;  %7821 = vmatprep.subr.bf16.mxu0 %v11272_v43 }
0x1016   :  { %7768 = vmatprep.subr.bf16.mxu1 %v11269_v23 }
0x1018   :  { %7822 = vmatpush1.bf16.msra.mxu0 %v11270_v15 }
0x1019   :  { %7769 = vmatpush1.bf16.msra.mxu1 %v11267_v10 }
0x101a   :  { %9716 = vmatprep.subr.bf16.mxu1 %v11273_v9 }
0x1096   :  { %v7528_v13 = vpop.xlane.xlu0 %7527 }
0x1097   :  { %v7535_v14 = vmul.f32 0.0078125, %v7528_v13 }
0x1098   :  { %v7530_v32 = vpop.xlane.xlu1 %7529 }
0x1099   :  { %v7539_v45 = vadd.f32 1e-06, %v7535_v14  ;;  %v7536_v52 = vmul.f32 0.0078125, %v7530_v32 }
0x109a   :  { %v7532_v39 = vpop.xlane.xlu0 %7531 }
0x109b   :  { %11481 = vrsqrt.f32 %v7539_v45  ;;  %v7540_v50 = vadd.f32 1e-06, %v7536_v52  ;;  %v7537_v33 = vmul.f32 0.0078125, %v7532_v39 }
0x109c   :  { %v7534_v17 = vpop.xlane.xlu1 %7533 }
0x109d   :  { %11483 = vrsqrt.f32 %v7540_v50  ;;  %v7541_v1 = vadd.f32 1e-06, %v7537_v33  ;;  %v7538_v41 = vmul.f32 0.0078125, %v7534_v17 }
0x109f   :  { %v7542_v61 = vadd.f32 1e-06, %v7538_v41  ;;  %11485 = vrsqrt.f32 %v7541_v1 }
0x10a1   :  { %11487 = vrsqrt.f32 %v7542_v61 }
0x10a5   :  { %v11482_v51 = vpop.eup %11481 }
0x10a6   :  { %v7547_v3 = vmul.f32 %v11482_v51, %v13926_v55 }
0x10a7   :  { %v11484_v60 = vpop.eup %11483 }
0x10a8   :  { %v7548_v38 = vmul.f32 %v11484_v60, %v13932_v49  ;;  %v7555_v62 = vmul.f32 %v7554_v18, %v7547_v3 }
0x10a9   :  { %v11486_v36 = vpop.eup %11485 }
0x10aa   :  { %v7556_v4 = vmul.f32 %v7554_v18, %v7548_v38  ;;  %v7549_v6 = vmul.f32 %v11486_v36, %v13929_v44 }
0x10ab   :  { %v11488_v37 = vpop.eup %11487 }
0x10ac   :  { %v7559_v40 = vpack.c.bf16 %v7556_v4, %v7555_v62  ;;  %v7550_v8 = vmul.f32 %v11488_v37, %v13937_v56  ;;  %v7557_v22 = vmul.f32 %v7554_v18, %v7549_v6 }
0x10ae   :  { %7787 = vmatmul.mubr.bf16.vlgmr.msra.gmra.mrb[136].mxu1 %v7559_v40  ;;  %7840 = vmatmul.mubr.bf16.vlgmr.msra.gmra.mrb[124].mxu0 %v7559_v40  ;;  %v7558_v53 = vmul.f32 %v7554_v18, %v7550_v8 }
0x10af   :  { %7796 = vmatprep.mubr.bf16.mxu1 %v14146_v20  ;;  %7849 = vmatprep.mubr.bf16.mxu0 %v14146_v20  ;;  %v11276_v20 = vld [vmem:[%s14121_s11 + $0x88] sm:$0xff]  }
0x10b0   :  { %v7560_v26 = vpack.c.bf16 %v7558_v53, %v7557_v22  ;;  %9717 = vmatpush3.bf16.msra.mxu1 %v11274_v42 }
0x10b1   :  { %9718 = vmatprep.subr.bf16.mxu1 %v11275_v57 }
0x10b4   :  { %9719 = vmatpush3.bf16.msra.mxu1 %v11276_v20 }
0x10b5   :  { %9720 = vmatprep.subr.bf16.mxu1 %v11277_v27 }
0x10b6   :  { %7797 = vmatmul.mubr.bf16.gmra.mrb[140].mxu1 %v7560_v26  ;;  %7850 = vmatmul.mubr.bf16.gmra.mrb[128].mxu0 %v7560_v26 }
0x10b8   :  { %9721 = vmatpush3.bf16.msra.mxu1 %v11278_v58 }
0x10b9   :  { %9722 = vmatprep.subr.bf16.mxu1 %v11279_v34 }
0x10bc   :  { %9723 = vmatpush3.bf16.msra.mxu1 %v11280_v2 }
0x10bd   :  { %9724 = vmatprep.subr.bf16.mxu1 %v11281_v5 }
0x10c0   :  { %9725 = vmatpush3.bf16.msra.mxu1 %v11282_v46 }
0x10c1   :  { %9726 = vmatprep.subr.bf16.mxu1 %v11283_v35 }
0x10c4   :  { %9727 = vmatpush3.bf16.msra.mxu1 %v11284_v7 }
0x10c5   :  { %9728 = vmatprep.subr.bf16.mxu1 %v11285_v11 }
0x10c8   :  { %9729 = vmatpush3.bf16.msra.mxu1 %v11286_v63 }
0x10c9   :  { %9730 = vmatprep.subr.bf16.mxu1 %v11287_v29 }
0x10cc   :  { %9731 = vmatpush3.bf16.msra.mxu1 %v11288_v19 }
0x1181   :  { %v7788_v48 = vpop.f32.mrb[136].mxu1  ;;  %v7841_v0 = vpop.f32.mrb[124].mxu0 }
0x1182   :  { %v9121_v28 = vmul.f32 -1.442695, %v7788_v48  ;;  %v7790_v21 = vpop.f32.mrb[137].mxu1  ;;  %v7843_v24 = vpop.f32.mrb[125].mxu0 }
0x1183   :  { %v9122_v12 = vmul.f32 -1.442695, %v7790_v21  ;;  %v7792_v47 = vpop.f32.mrb[138].mxu1  ;;  %v7845_v16 = vpop.f32.mrb[126].mxu0 }
0x1184   :  { %11489 = vpow2.f32 %v9121_v28  ;;  %v9123_v25 = vmul.f32 -1.442695, %v7792_v47  ;;  %v7794_v59 = vpop.f32.mrb[139].mxu1  ;;  %v7847_v31 = vpop.f32.mrb[127].mxu0 }
0x1185   :  { %11491 = vpow2.f32 %v9122_v12  ;;  %v9124_v23 = vmul.f32 -1.442695, %v7794_v59 }
0x1186   :  { %11493 = vpow2.f32 %v9123_v25 }
0x1187   :  { %11495 = vpow2.f32 %v9124_v23 }
0x1189   :  { %v7798_v43 = vpop.f32.mrb[140].mxu1  ;;  %v7851_v10 = vpop.f32.mrb[128].mxu0 }
0x118a   :  { %v9125_v15 = vmul.f32 -1.442695, %v7798_v43  ;;  %v7800_v13 = vpop.f32.mrb[141].mxu1  ;;  %v7853_v14 = vpop.f32.mrb[129].mxu0 }
0x118b   :  { %v9126_v32 = vmul.f32 -1.442695, %v7800_v13  ;;  %v7802_v45 = vpop.f32.mrb[142].mxu1  ;;  %v7855_v52 = vpop.f32.mrb[130].mxu0 }
0x118c   :  { %11497 = vpow2.f32 %v9125_v15  ;;  %v9127_v39 = vmul.f32 -1.442695, %v7802_v45  ;;  %v7804_v50 = vpop.f32.mrb[143].mxu1  ;;  %v7857_v33 = vpop.f32.mrb[131].mxu0 }
0x118d   :  { %11499 = vpow2.f32 %v9126_v32  ;;  %v9128_v17 = vmul.f32 -1.442695, %v7804_v50 }
0x118e   :  { %v11490_v1 = vpop.eup %11489  ;;  %11501 = vpow2.f32 %v9127_v39 }
0x118f   :  { %v11492_v41 = vpop.eup %11491  ;;  %v7884_v61 = vadd.f32 1.0, %v11490_v1  ;;  %11503 = vpow2.f32 %v9128_v17 }
0x1190   :  { %v11494_v51 = vpop.eup %11493  ;;  %v7885_v3 = vadd.f32 1.0, %v11492_v41 }
0x1191   :  { %v11496_v30 = vpop.eup %11495  ;;  %11505 = vrcp.f32 %v7884_v61  ;;  %v7886_v54 = vadd.f32 1.0, %v11494_v51 }
0x1192   :  { %11507 = vrcp.f32 %v7885_v3  ;;  %v7887_v18 = vadd.f32 1.0, %v11496_v30  ;;  %v11291_v3 = vld [vmem:[%s14122_s16 + $0x10] sm:$0xff]   ;;  %v11294_v30 = vld [vmem:[%s14122_s16 + $0x28] sm:$0xff]  }
0x1193   :  { %11509 = vrcp.f32 %v7886_v54  ;;  %v11295_v54 = vld [vmem:[%s14122_s16 + $0x30] sm:$0xff]  }
0x1194   :  { %11511 = vrcp.f32 %v7887_v18  ;;  %v11296_v18 = vld [vmem:[%s14122_s16 + $0x38] sm:$0xff]  }
0x1196   :  { %v11498_v60 = vpop.eup %11497 }
0x1197   :  { %v11500_v38 = vpop.eup %11499  ;;  %v7888_v36 = vadd.f32 1.0, %v11498_v60 }
0x1198   :  { %v11502_v62 = vpop.eup %11501  ;;  %v7889_v4 = vadd.f32 1.0, %v11500_v38 }
0x1199   :  { %v11504_v37 = vpop.eup %11503  ;;  %11513 = vrcp.f32 %v7888_v36  ;;  %v7890_v40 = vadd.f32 1.0, %v11502_v62 }
0x119a   :  { %11515 = vrcp.f32 %v7889_v4  ;;  %v7891_v8 = vadd.f32 1.0, %v11504_v37 }
0x119b   :  { %v11506_v6 = vpop.eup %11505  ;;  %11517 = vrcp.f32 %v7890_v40 }
0x119c   :  { %v11508_v53 = vpop.eup %11507  ;;  %v7908_v22 = vmul.f32 %v11506_v6, %v7788_v48  ;;  %11519 = vrcp.f32 %v7891_v8 }
0x119d   :  { %v11510_v26 = vpop.eup %11509  ;;  %v7909_v9 = vmul.f32 %v11508_v53, %v7790_v21 }
0x119e   :  { %v11512_v42 = vpop.eup %11511  ;;  %v7916_v57 = vmul.f32 %v7908_v22, %v7841_v0  ;;  %v7910_v20 = vmul.f32 %v11510_v26, %v7792_v47 }
0x119f   :  { %v7917_v27 = vmul.f32 %v7909_v9, %v7843_v24  ;;  %v7911_v58 = vmul.f32 %v11512_v42, %v7794_v59 }
0x11a0   :  { %v7918_v34 = vmul.f32 %v7910_v20, %v7845_v16  ;;  %v11289_v16 = vld [vmem:[%s14122_s16] sm:$0xff]  }
0x11a1   :  { %v7919_v2 = vmul.f32 %v7911_v58, %v7847_v31  ;;  %10758 = vmatprep.subr.bf16.mxu0 %v11289_v16  ;;  %v9177_v20 = vld [vmem:[%s14123_s13] ss:$0 sm:$0xff] }
0x11a2   :  { %v7924_v5 = vpack.c.bf16 %v7918_v34, %v7916_v57  ;;  %10759 = vmatpush3.bf16.msra.mxu0 %v11289_v16 }
0x11a3   :  { %v11514_v46 = vpop.eup %11513  ;;  %v7925_v35 = vpack.c.bf16 %v7919_v2, %v7917_v27 }
0x11a4   :  { %v11516_v7 = vpop.eup %11515  ;;  %v7912_v11 = vmul.f32 %v11514_v46, %v7798_v43 }
0x11a5   :  { %v11518_v63 = vpop.eup %11517  ;;  %v7913_v29 = vmul.f32 %v11516_v7, %v7800_v13  ;;  %8089 = vmatprep.mubr.bf16.mxu1 %v7925_v35 }
0x11a6   :  { %v11520_v19 = vpop.eup %11519  ;;  %v7920_v48 = vmul.f32 %v7912_v11, %v7851_v10  ;;  %v7914_v28 = vmul.f32 %v11518_v63, %v7802_v45  ;;  %8090 = vmatmul.mubr.bf16.vlgmr.msra.gmra.mrb[144].mxu1 %v7924_v5 }
0x11a7   :  { %v7921_v21 = vmul.f32 %v7913_v29, %v7853_v14  ;;  %v7915_v12 = vmul.f32 %v11520_v19, %v7804_v50 }
0x11a8   :  { %v7922_v0 = vmul.f32 %v7914_v28, %v7855_v52 }
0x11a9   :  { %v7923_v47 = vmul.f32 %v7915_v12, %v7857_v33 }
0x11aa   :  { %v7926_v24 = vpack.c.bf16 %v7922_v0, %v7920_v48 }
0x11ab   :  { %v7927_v25 = vpack.c.bf16 %v7923_v47, %v7921_v21 }
0x11ad   :  { %8097 = vmatprep.mubr.bf16.mxu1 %v7927_v25 }
0x11ae   :  { %8098 = vmatmul.mubr.bf16.gmra.mrb[148].mxu1 %v7926_v24 }
0x1279   :  { %v9732_v59 = vpop.f32.mrb[144].mxu1 }
0x127a   :  { %v9733_v31 = vpop.f32.mrb[145].mxu1 }
0x127b   :  { %v9734_v23 = vadd.f32 %v9733_v31, %v9732_v59  ;;  %v9735_v43 = vpop.f32.mrb[146].mxu1 }
0x127c   :  { %v9736_v10 = vpop.f32.mrb[147].mxu1 }
0x127d   :  { %v8106_v15 = vadd.f32 %v9734_v23, %v13926_v55  ;;  %v9737_v13 = vadd.f32 %v9736_v10, %v9735_v43 }
0x127f   :  { %v8107_v14 = vadd.f32 %v9737_v13, %v13932_v49  ;;  %v8111_v32 = vmul.f32 %v8106_v15, %v8106_v15  ;;  %v11290_v49 = vld [vmem:[%s14122_s16 + $0x8] sm:$0xff]  }
0x1280   :  { %10760 = vmatprep.subr.bf16.mxu0 %v11290_v49 }
0x1281   :  { %8115 = vadd.xlane.f32.xlu0 %v8111_v32  ;;  %v9738_v45 = vpop.f32.mrb[148].mxu1  ;;  %v8112_v52 = vmul.f32 %v8107_v14, %v8107_v14  ;;  %10761 = vmatpush3.bf16.msra.mxu0 %v11290_v49 }
0x1282   :  { %v9739_v39 = vpop.f32.mrb[149].mxu1  ;;  %10762 = vmatprep.subr.bf16.mxu0 %v11291_v3 }
0x1283   :  { %v9740_v50 = vadd.f32 %v9739_v39, %v9738_v45  ;;  %8117 = vadd.xlane.f32.xlu1 %v8112_v52  ;;  %v9741_v33 = vpop.f32.mrb[150].mxu1 }
0x1284   :  { %v9742_v17 = vpop.f32.mrb[151].mxu1 }
0x1285   :  { %v8108_v1 = vadd.f32 %v9740_v50, %v13929_v44  ;;  %v9743_v41 = vadd.f32 %v9742_v17, %v9741_v33  ;;  %10763 = vmatpush3.bf16.msra.mxu0 %v11291_v3  ;;  %v11292_v44 = vld [vmem:[%s14122_s16 + $0x18] sm:$0xff]  }
0x1286   :  { %10764 = vmatprep.subr.bf16.mxu0 %v11292_v44 }
0x1287   :  { %v8109_v61 = vadd.f32 %v9743_v41, %v13937_v56  ;;  %v8113_v51 = vmul.f32 %v8108_v1, %v8108_v1  ;;  %v11293_v56 = vld [vmem:[%s14122_s16 + $0x20] sm:$0xff]  }
0x1289   :  { %8119 = vadd.xlane.f32.xlu0 %v8113_v51  ;;  %v8114_v55 = vmul.f32 %v8109_v61, %v8109_v61  ;;  %10765 = vmatpush3.bf16.msra.mxu0 %v11292_v44 }
0x128a   :  { %10766 = vmatprep.subr.bf16.mxu0 %v11293_v56 }
0x128b   :  { %8121 = vadd.xlane.f32.xlu1 %v8114_v55 }
0x128d   :  { %10767 = vmatpush3.bf16.msra.mxu0 %v11293_v56 }
0x128e   :  { %10768 = vmatprep.subr.bf16.mxu0 %v11294_v30 }
0x1291   :  { %10769 = vmatpush3.bf16.msra.mxu0 %v11294_v30 }
0x1292   :  { %10770 = vmatprep.subr.bf16.mxu0 %v11295_v54 }
0x1295   :  { %10771 = vmatpush3.bf16.msra.mxu0 %v11295_v54 }
0x1296   :  { %10772 = vmatprep.subr.bf16.mxu0 %v11296_v18 }
0x1299   :  { %10773 = vmatpush3.bf16.msra.mxu0 %v11296_v18 }
0x130e   :  { %v8116_v60 = vpop.xlane.xlu0 %8115 }
0x130f   :  { %v8123_v38 = vmul.f32 0.0078125, %v8116_v60 }
0x1310   :  { %v8118_v36 = vpop.xlane.xlu1 %8117 }
0x1311   :  { %v8127_v62 = vadd.f32 1e-06, %v8123_v38  ;;  %v8124_v4 = vmul.f32 0.0078125, %v8118_v36 }
0x1313   :  { %11521 = vrsqrt.f32 %v8127_v62  ;;  %v8128_v37 = vadd.f32 1e-06, %v8124_v4 }
0x1315   :  { %11523 = vrsqrt.f32 %v8128_v37 }
0x1316   :  { %v8120_v40 = vpop.xlane.xlu0 %8119 }
0x1317   :  { %v8125_v8 = vmul.f32 0.0078125, %v8120_v40 }
0x1318   :  { %v8122_v6 = vpop.xlane.xlu1 %8121 }
0x1319   :  { %v8129_v53 = vadd.f32 1e-06, %v8125_v8  ;;  %v8126_v22 = vmul.f32 0.0078125, %v8122_v6 }
0x131b   :  { %11525 = vrsqrt.f32 %v8129_v53  ;;  %v8130_v26 = vadd.f32 1e-06, %v8126_v22 }
0x131d   :  { %v11522_v9 = vpop.eup %11521  ;;  %11527 = vrsqrt.f32 %v8130_v26 }
0x131e   :  { %v8135_v42 = vmul.f32 %v11522_v9, %v8106_v15 }
0x131f   :  { %v11524_v57 = vpop.eup %11523 }
0x1320   :  { %v8136_v27 = vmul.f32 %v11524_v57, %v8107_v14  ;;  %v8145_v58 = vmul.f32 %v9177_v20, %v8135_v42 }
0x1322   :  { %v8146_v34 = vmul.f32 %v9177_v20, %v8136_v27 }
0x1324   :  { %v8149_v2 = vpack.c.bf16 %v8146_v34, %v8145_v58 }
0x1325   :  { %v11526_v5 = vpop.eup %11525 }
0x1326   :  { %v8137_v46 = vmul.f32 %v11526_v5, %v8108_v1  ;;  %10774 = vmatprep.mubr.bf16.mxu0 %v8149_v2 }
0x1327   :  { %v11528_v35 = vpop.eup %11527 }
0x1328   :  { %v8138_v7 = vmul.f32 %v11528_v35, %v8109_v61  ;;  %v8147_v11 = vmul.f32 %v9177_v20, %v8137_v46 }
0x132a   :  { %v8148_v63 = vmul.f32 %v9177_v20, %v8138_v7 }
0x132c   :  { %v8150_v29 = vpack.c.bf16 %v8148_v63, %v8147_v11 }
0x132e   :  { %10775 = vmatmul.mubr.bf16.vlgmr.msra.gmra.mrb[132].mxu0 %v8150_v29 }
0x1401   :  { %v10776_v19 = vpop.f32.mrb[132].mxu0 }
0x1402   :  { %8266 = vst [vmem:[%s14124_s17 + $0x10] sm:$0xff] %v10776_v19  ;;  %v8249_v48 = vpop.f32.mrb[133].mxu0 }
0x1403   :  { %8264 = vst [vmem:[%s14124_s17] sm:$0xff] %v8249_v48  ;;  %v10777_v28 = vpop.f32.mrb[134].mxu0 }
0x1404   :  { %8267 = vst [vmem:[%s14124_s17 + $0x18] sm:$0xff] %v10777_v28  ;;  %v8252_v21 = vpop.f32.mrb[135].mxu0 }
0x1405   :  { %8265 = vst [vmem:[%s14124_s17 + $0x8] sm:$0xff] %v8252_v21 }

</bundles_post_ra>
